<compile_context>
chip_gen: v7x
topology: tpu7x:2x2x1
jax: 0.10.0
libtpu: 0.0.40
codegen_flags: <defaults>
</compile_context>

<pallas_src>
import functools

import jax
import jax.numpy as jnp
from jax.experimental import pallas as pl
from jax.experimental.pallas import tpu as pltpu

# ----------------------------- configuration --------------------------------
IMG = 16                      # spatial size (original module uses 224)
PATCH = 4
CH = 3
GRID_SIDE = IMG // PATCH
NUM_PATCHES = GRID_SIDE * GRID_SIDE          # 16
PATCH_DIM = CH * PATCH * PATCH               # 48
EMBED_DIM = 32                               # latent_dim of the wrapper
NUM_HEADS = 2
HEAD_DIM = EMBED_DIM // NUM_HEADS            # 16
DEPTH = 2
MLP_DIM = 2 * EMBED_DIM                      # 64
TOKENS = NUM_PATCHES + 1                     # CLS + patches = 17
T_PAD = 24                                   # tokens padded to a multiple of 8 sublanes
# LayerNorm eps: timm ViT uses 1e-6, torch.nn.LayerNorm default is 1e-5.  Must be set to match
# the loaded VisionTransformer checkpoint; configurable here.
LN_EPS = 1e-6
SCALE = 1.0 / (HEAD_DIM ** 0.5)

QKV_DIM = 3 * EMBED_DIM                      # 96
N_VEC_ROWS = 8                               # packed per-block gamma/beta/bias rows


# ----------------------------- shared math helpers ----------------------------
def _layernorm(x, g, b):
    mu = jnp.mean(x, axis=-1, keepdims=True)
    var = jnp.mean((x - mu) ** 2, axis=-1, keepdims=True)
    return (x - mu) * jax.lax.rsqrt(var + LN_EPS) * g + b


def _erf(x):
    # Abramowitz & Stegun 7.1.26 polynomial erf (~1.5e-7 abs err), Mosaic-friendly ops only.
    a1, a2, a3, a4, a5 = 0.254829592, -0.284496736, 1.421413741, -1.453152027, 1.061405429
    p = 0.3275911
    s = jnp.where(x >= 0.0, 1.0, -1.0)
    ax = jnp.abs(x)
    t = 1.0 / (1.0 + p * ax)
    poly = ((((a5 * t + a4) * t + a3) * t + a2) * t + a1) * t
    return s * (1.0 - poly * jnp.exp(-ax * ax))


def _gelu(x):
    # erf-based GELU, matching torch.nn.GELU() default.
    # TODO(synk): tanh-GELU (EUP tanh) would roughly halve the VPU work here at ~1e-3 numeric
    #             drift from torch's exact erf-GELU; kept exact for checkpoint fidelity.
    return 0.5 * x * (1.0 + _erf(x * 0.7071067811865475))


# -------------------------------- fused kernel --------------------------------
def fused_vit_kernel(ipb, xp_ref, pw_ref, base_ref, lnf_ref,
                     wqkv_ref, wproj_ref, wfc1_ref, wfc2_ref, vecs_ref, o_ref):
    """One grid step = `ipb` images, full ViT forward, everything in VMEM/vregs.

    xp_ref   : (ipb*T_PAD, PATCH_DIM) f32  patches in token order; CLS row (0) and pad rows
               (TOKENS..T_PAD-1) of each image are zero.
    pw_ref   : (PATCH_DIM, D)         bf16 flattened Conv2d(stride=patch) weight.
    base_ref : (T_PAD, D)             f32  row 0 = cls+pos[0]; rows 1..16 = pos[r]+patch_bias.
    lnf_ref  : (2, D)                 f32  final-LN gamma (row 0) / beta (row 1).
    wqkv_ref : (DEPTH, D, 3D)  bf16   fused q|k|v weights (heads contiguous within each).
    wproj_ref: (DEPTH, D, D)   bf16
    wfc1_ref : (DEPTH, D, MLP) bf16
    wfc2_ref : (DEPTH, MLP, D) bf16
    vecs_ref : (DEPTH, 8, 96)  f32    per-block rows: ln1g, ln1b, b_qkv, b_proj, ln2g, ln2b,
                                      b_fc1, b_fc2 (each padded to 96 lanes).
    o_ref    : (1, ipb, D)     f32    final-LN CLS embedding per image.
    """
    m = ipb * T_PAD
    bf16 = jnp.bfloat16

    # ---- patch embedding for the whole block (M = ipb*T_PAD rows, one matmul) ----
    pe = jnp.dot(xp_ref[...].astype(bf16), pw_ref[...],
                 preferred_element_type=jnp.float32)                              # (m, D) f32
    # zero CLS/pad patch rows -> adding the base table yields cls+pos / patches+b+pos / 0
    x = (pe.reshape(ipb, T_PAD, EMBED_DIM) + base_ref[...]).reshape(m, EMBED_DIM)

    # key-only additive bias masking pad key columns (broadcast over batch & query axes)
    kidx = jax.lax.broadcasted_iota(jnp.int32, (1, 1, T_PAD), 2)
    neg_bias = jnp.where(kidx < TOKENS, 0.0, -1e30).astype(jnp.float32)           # (1,1,T_PAD)

    for d in range(DEPTH):
        vec = vecs_ref[d]                                                         # (8, 96) f32
        ln1g, ln1b = vec[0:1, :EMBED_DIM], vec[1:2, :EMBED_DIM]
        bqkv = vec[2:3, :QKV_DIM]
        bproj = vec[3:4, :EMBED_DIM]
        ln2g, ln2b = vec[4:5, :EMBED_DIM], vec[5:6, :EMBED_DIM]
        bfc1 = vec[6:7, :MLP_DIM]
        bfc2 = vec[7:8, :EMBED_DIM]

        # ---- multi-head self-attention (pre-LN), fused QKV matmul ----
        xn = _layernorm(x, ln1g, ln1b)                                            # (m, D) f32
        qkv = jnp.dot(xn.astype(bf16), wqkv_ref[d],
                      preferred_element_type=jnp.float32) + bqkv                  # (m, 3D) f32

        ctx_heads = []
        for h in range(NUM_HEADS):
            qh = qkv[:, h * HEAD_DIM:(h + 1) * HEAD_DIM]
            kh = qkv[:, EMBED_DIM + h * HEAD_DIM:EMBED_DIM + (h + 1) * HEAD_DIM]
            vh = qkv[:, 2 * EMBED_DIM + h * HEAD_DIM:2 * EMBED_DIM + (h + 1) * HEAD_DIM]
            # T_PAD is a multiple of 8 -> f32 reshapes are layout no-ops; cast after reshape
            q3 = qh.reshape(ipb, T_PAD, HEAD_DIM).astype(bf16)
            k3 = kh.reshape(ipb, T_PAD, HEAD_DIM).astype(bf16)
            v3 = vh.reshape(ipb, T_PAD, HEAD_DIM).astype(bf16)
            s = jnp.einsum("btd,bsd->bts", q3, k3,
                           preferred_element_type=jnp.float32) * SCALE + neg_bias
            s = s - jnp.max(s, axis=-1, keepdims=True)
            p = jnp.exp(s)
            p = p * pl.reciprocal(jnp.sum(p, axis=-1, keepdims=True), approx=True)
            ctx = jnp.einsum("bts,bsd->btd", p.astype(bf16), v3,
                             preferred_element_type=jnp.float32)                  # (b,T,HD) f32
            ctx_heads.append(ctx.reshape(m, HEAD_DIM))

        ctx_all = jnp.concatenate(ctx_heads, axis=-1)                             # (m, D) f32
        attn = jnp.dot(ctx_all.astype(bf16), wproj_ref[d],
                       preferred_element_type=jnp.float32) + bproj
        x = x + attn

        # ---- MLP (pre-LN) ----
        xn = _layernorm(x, ln2g, ln2b)
        h1 = _gelu(jnp.dot(xn.astype(bf16), wfc1_ref[d],
                           preferred_element_type=jnp.float32) + bfc1)
        x = x + jnp.dot(h1.astype(bf16), wfc2_ref[d],
                        preferred_element_type=jnp.float32) + bfc2

    # ---- final LayerNorm on CLS tokens only -> forward(x)[1] ----
    lnf = lnf_ref[...]
    cls = x.reshape(ipb, T_PAD, EMBED_DIM)[:, 0, :]                               # (ipb, D)
    o_ref[0] = _layernorm(cls, lnf[0:1, :], lnf[1:2, :])


# ---------------------------- pallas_call wrapper -----------------------------
def _const_spec(shape):
    nd = len(shape)
    return pl.BlockSpec(shape, lambda i, _nd=nd: (0,) * _nd)


def run_fused_vit(xp_flat, pw, base, lnf, wqkv, wproj, wfc1, wfc2, vecs, ipb, n_steps):
    in_specs = [pl.BlockSpec((ipb * T_PAD, PATCH_DIM), lambda i: (i, 0)),
                _const_spec(pw.shape), _const_spec(base.shape), _const_spec(lnf.shape),
                _const_spec(wqkv.shape), _const_spec(wproj.shape),
                _const_spec(wfc1.shape), _const_spec(wfc2.shape), _const_spec(vecs.shape)]
    return pl.pallas_call(
        functools.partial(fused_vit_kernel, ipb),
        out_shape=jax.ShapeDtypeStruct((n_steps, ipb, EMBED_DIM), jnp.float32),
        grid=(n_steps,),
        in_specs=in_specs,
        out_specs=pl.BlockSpec((1, ipb, EMBED_DIM), lambda i: (i, 0, 0)),
        compiler_params=pltpu.CompilerParams(dimension_semantics=("parallel",)),
    )(xp_flat, pw, base, lnf, wqkv, wproj, wfc1, wfc2, vecs)


# ------------------------- host-side packing / glue ---------------------------
def extract_patches(x_nchw):
    # (N, C, H, W) NCHW -> (N, num_patches, C*ph*pw), channel-major like a flattened
    # Conv2d(kernel=patch, stride=patch) weight.
    n = x_nchw.shape[0]
    x = x_nchw.reshape(n, CH, GRID_SIDE, PATCH, GRID_SIDE, PATCH)
    x = x.transpose(0, 2, 4, 1, 3, 5)            # (N, gh, gw, C, ph, pw)
    return x.reshape(n, NUM_PATCHES, PATCH_DIM)


def _pad96(row):   # (1, w) -> (1, 96)
    return jnp.pad(row, ((0, 0), (0, QKV_DIM - row.shape[1])))


def _pack_kernel_params(params):
    # token "base" table: row 0 = cls+pos[0]; rows 1..16 = pos[r]+patch_bias; pad rows = 0
    base = jnp.zeros((T_PAD, EMBED_DIM), jnp.float32)
    base = base.at[0].set(params["cls"][0] + params["pos"][0])
    base = base.at[1:TOKENS].set(params["pos"][1:] + params["patch_b"][0])
    lnf = jnp.concatenate([params["ln_g"], params["ln_b"]], axis=0)               # (2, D)

    blocks = params["blocks"]
    # stacked bf16 weight tensors (one per kind) -> few DMA descriptors, half the bytes
    wqkv = jnp.stack([b[2] for b in blocks]).astype(jnp.bfloat16)                 # (DEPTH,D,3D)
    wproj = jnp.stack([b[4] for b in blocks]).astype(jnp.bfloat16)                # (DEPTH,D,D)
    wfc1 = jnp.stack([b[8] for b in blocks]).astype(jnp.bfloat16)                 # (DEPTH,D,MLP)
    wfc2 = jnp.stack([b[10] for b in blocks]).astype(jnp.bfloat16)                # (DEPTH,MLP,D)

    # one per-block "vectors" table holding all gamma/beta/bias rows (padded to 96 lanes)
    vec_rows = []
    for blk in blocks:
        (ln1g, ln1b, _, bqkv, _, bproj, ln2g, ln2b, _, bfc1, _, bfc2) = blk
        vec_rows.append(jnp.concatenate(
            [_pad96(ln1g), _pad96(ln1b), _pad96(bqkv), _pad96(bproj),
             _pad96(ln2g), _pad96(ln2b), _pad96(bfc1), _pad96(bfc2)], axis=0))    # (8, 96)
    vecs = jnp.stack(vec_rows)                                                    # (DEPTH,8,96)

    pw = params["patch_w"].astype(jnp.bfloat16)
    return pw, base, lnf, wqkv, wproj, wfc1, wfc2, vecs


def init_vit_params(key):
    def nrm(k, shape, scale=0.02):
        return scale * jax.random.normal(k, shape, dtype=jnp.float32)

    keys = iter(jax.random.split(key, 3 + 4 * DEPTH))
    params = {
        "patch_w": nrm(next(keys), (PATCH_DIM, EMBED_DIM)),
        "patch_b": jnp.zeros((1, EMBED_DIM), jnp.float32),
        "cls": nrm(next(keys), (1, EMBED_DIM)),
        "pos": nrm(next(keys), (TOKENS, EMBED_DIM)),
        "ln_g": jnp.ones((1, EMBED_DIM), jnp.float32),
        "ln_b": jnp.zeros((1, EMBED_DIM), jnp.float32),
    }
    blocks = []
    for _ in range(DEPTH):
        blocks.append((
            jnp.ones((1, EMBED_DIM), jnp.float32),          # ln1 gamma
            jnp.zeros((1, EMBED_DIM), jnp.float32),         # ln1 beta
            nrm(next(keys), (EMBED_DIM, QKV_DIM)),          # W_qkv  [q|k|v], heads contiguous
            jnp.zeros((1, QKV_DIM), jnp.float32),           # b_qkv
            nrm(next(keys), (EMBED_DIM, EMBED_DIM)),        # W_proj
            jnp.zeros((1, EMBED_DIM), jnp.float32),         # b_proj
            jnp.ones((1, EMBED_DIM), jnp.float32),          # ln2 gamma
            jnp.zeros((1, EMBED_DIM), jnp.float32),         # ln2 beta
            nrm(next(keys), (EMBED_DIM, MLP_DIM)),          # W_fc1
            jnp.zeros((1, MLP_DIM), jnp.float32),           # b_fc1
            nrm(next(keys), (MLP_DIM, EMBED_DIM)),          # W_fc2
            jnp.zeros((1, EMBED_DIM), jnp.float32),         # b_fc2
        ))
    params["blocks"] = blocks
    return params


def vitnet_wrapper_forward(x, params, imgs_per_block=64):
    """x: (batch, num_images, C, H, W) -> (batch, num_images, EMBED_DIM)."""
    b, ni = x.shape[0], x.shape[1]
    n = b * ni
    xi = x.reshape(n, CH, IMG, IMG).astype(jnp.float32)        # x.view(-1, 3, H, W)
    xp = extract_patches(xi)                                   # (N, P, PATCH_DIM)

    # Choose images-per-grid-step: prefer imgs_per_block, but force an even grid length >= 2 so
    # the xp DMA pipelines behind compute and both v7x TensorCores get work.
    ipb = max(1, min(imgs_per_block, n))
    steps = max(2, -(-n // ipb))
    steps += steps % 2
    ipb = -(-n // steps)
    n_pad = steps * ipb

    xp = jnp.pad(xp, ((0, n_pad - n), (0, 0), (0, 0)))
    # reserve token row 0 (CLS) and the pad token rows as zero "patch" rows
    xp = jnp.pad(xp, ((0, 0), (1, T_PAD - TOKENS), (0, 0)))    # (N_pad, T_PAD, PATCH_DIM)
    xp_flat = xp.reshape(n_pad * T_PAD, PATCH_DIM)

    packed = _pack_kernel_params(params)
    out = run_fused_vit(xp_flat, *packed, ipb, steps)          # (steps, ipb, D)
    out = out.reshape(n_pad, EMBED_DIM)[:n]
    return out.reshape(b, ni, EMBED_DIM)                       # x.view(B, num_images, latent)


# ------------------------- pure-JAX references (checking) ----------------------
def vit_reference(x, params, bf16_operands=False):
    """bf16_operands=True models the kernel's bf16-operand / f32-accumulate matmuls;
    False is the full f32 HIGHEST-precision reference for the original module semantics."""
    b, ni = x.shape[0], x.shape[1]
    n = b * ni
    xi = x.reshape(n, CH, IMG, IMG).astype(jnp.float32)
    xp = extract_patches(xi)

    def mm(eq, a, c):
        if bf16_operands:
            return jnp.einsum(eq, a.astype(jnp.bfloat16), c.astype(jnp.bfloat16),
                              preferred_element_type=jnp.float32)
        return jnp.einsum(eq, a, c, precision=jax.lax.Precision.HIGHEST)

    tok = mm("npc,cd->npd", xp, params["patch_w"]) + params["patch_b"]
    cls = jnp.broadcast_to(params["cls"][None], (n, 1, EMBED_DIM))
    tok = jnp.concatenate([cls, tok], axis=1) + params["pos"][None]
    for blk in params["blocks"]:
        (ln1g, ln1b, wqkv, bqkv, wproj, bproj, ln2g, ln2b, wfc1, bfc1, wfc2, bfc2) = blk
        xn = _layernorm(tok, ln1g, ln1b)
        qkv = mm("ntd,de->nte", xn, wqkv) + bqkv
        q, k, v = (qkv[..., :EMBED_DIM], qkv[..., EMBED_DIM:2 * EMBED_DIM],
                   qkv[..., 2 * EMBED_DIM:])

        def heads(z):
            return z.reshape(n, TOKENS, NUM_HEADS, HEAD_DIM).transpose(0, 2, 1, 3)

        s = mm("nhtd,nhsd->nhts", heads(q), heads(k)) * SCALE
        p = jax.nn.softmax(s, axis=-1)
        ctx = mm("nhts,nhsd->nhtd", p, heads(v))
        ctx = ctx.transpose(0, 2, 1, 3).reshape(n, TOKENS, EMBED_DIM)
        tok = tok + mm("ntd,de->nte", ctx, wproj) + bproj
        xn = _layernorm(tok, ln2g, ln2b)
        h1 = _gelu(mm("ntd,de->nte", xn, wfc1) + bfc1)
        tok = tok + mm("nte,ed->ntd", h1, wfc2) + bfc2
    cls_out = _layernorm(tok[:, 0, :], params["ln_g"], params["ln_b"])
    return cls_out.reshape(b, ni, EMBED_DIM)


# ----------------------------------- main --------------------------------------
if __name__ == "__main__":
    key = jax.random.PRNGKey(0)
    k_x, k_p = jax.random.split(key)

    batch, num_images = 2, 2
    x = jax.random.normal(k_x, (batch, num_images, CH, IMG, IMG), dtype=jnp.float32)
    params = init_vit_params(k_p)

    fwd = jax.jit(vitnet_wrapper_forward)
    out = jax.block_until_ready(fwd(x, params))

    assert out.shape == (batch, num_images, EMBED_DIM), out.shape
    assert bool(jnp.all(jnp.isfinite(out)))

    # Tight check against a reference with matched bf16 matmul operands (same math structure).
    ref_matched = vit_reference(x, params, bf16_operands=True)
    err_matched = float(jnp.max(jnp.abs(out - ref_matched)))
    assert err_matched < 5e-3, f"max abs err vs bf16-matched reference: {err_matched}"

    # Looser check against the full f32 / HIGHEST-precision reference; the gap is the expected
    # bf16-operand rounding amplified by the final LayerNorm's 1/sigma rescale.
    ref_exact = vit_reference(x, params, bf16_operands=False)
    err_exact = float(jnp.max(jnp.abs(out - ref_exact)))
    assert err_exact < 5e-2, f"max abs err vs f32 reference: {err_exact}"

    print("KERNEL_OK")
</pallas_src>

<mosaic_0001>
module attributes {stable_mosaic.version = 11 : i64} {
  func.func @fused_vit_kernel(%arg0: i32, %arg1: memref<48x48xf32, #tpu.memory_space<vmem>>, %arg2: memref<48x32xbf16, #tpu.memory_space<vmem>>, %arg3: memref<24x32xf32, #tpu.memory_space<vmem>>, %arg4: memref<2x32xf32, #tpu.memory_space<vmem>>, %arg5: memref<2x32x96xbf16, #tpu.memory_space<vmem>>, %arg6: memref<2x32x32xbf16, #tpu.memory_space<vmem>>, %arg7: memref<2x32x64xbf16, #tpu.memory_space<vmem>>, %arg8: memref<2x64x32xbf16, #tpu.memory_space<vmem>>, %arg9: memref<2x8x96xf32, #tpu.memory_space<vmem>>, %arg10: memref<1x2x32xf32, #tpu.memory_space<vmem>>) attributes {dimension_semantics = [#tpu.dimension_semantics<parallel>], iteration_bounds = array<i64: 2>, scalar_prefetch = 0 : i64, scratch_operands = 0 : i64, tpu.core_type = #tpu.core_type<tc>, window_params = [{transform_indices = @transform_0, window_bounds = array<i64: 48, 48>}, {pipeline_mode = #tpu.pipeline_mode<synchronous>, transform_indices = @transform_1, window_bounds = array<i64: 48, 32>}, {pipeline_mode = #tpu.pipeline_mode<synchronous>, transform_indices = @transform_2, window_bounds = array<i64: 24, 32>}, {pipeline_mode = #tpu.pipeline_mode<synchronous>, transform_indices = @transform_3, window_bounds = array<i64: 2, 32>}, {pipeline_mode = #tpu.pipeline_mode<synchronous>, transform_indices = @transform_4, window_bounds = array<i64: 2, 32, 96>}, {pipeline_mode = #tpu.pipeline_mode<synchronous>, transform_indices = @transform_5, window_bounds = array<i64: 2, 32, 32>}, {pipeline_mode = #tpu.pipeline_mode<synchronous>, transform_indices = @transform_6, window_bounds = array<i64: 2, 32, 64>}, {pipeline_mode = #tpu.pipeline_mode<synchronous>, transform_indices = @transform_7, window_bounds = array<i64: 2, 64, 32>}, {pipeline_mode = #tpu.pipeline_mode<synchronous>, transform_indices = @transform_8, window_bounds = array<i64: 2, 8, 96>}, {transform_indices = @transform_9, window_bounds = array<i64: 1, 2, 32>}]} {
    %c0 = arith.constant 0 : index
    %c0_0 = arith.constant 0 : index
    %0 = vector.load %arg1[%c0, %c0_0] : memref<48x48xf32, #tpu.memory_space<vmem>>, vector<48x48xf32>
    %1 = arith.truncf %0 : vector<48x48xf32> to vector<48x48xbf16>
    %c0_1 = arith.constant 0 : index
    %c0_2 = arith.constant 0 : index
    %2 = vector.load %arg2[%c0_1, %c0_2] : memref<48x32xbf16, #tpu.memory_space<vmem>>, vector<48x32xbf16>
    %cst = arith.constant dense<0.000000e+00> : vector<48x32xf32>
    %3 = tpu.matmul %1, %2, %cst {dimension_numbers = #tpu.dot_dimension_numbers<[1], [0], [0], [1], [0, 0, 1, 1], [], []>} : vector<48x48xbf16>, vector<48x32xbf16>, vector<48x32xf32> -> vector<48x32xf32>
    %4 = vector.shape_cast %3 : vector<48x32xf32> to vector<2x24x32xf32>
    %c0_3 = arith.constant 0 : index
    %c0_4 = arith.constant 0 : index
    %5 = vector.load %arg3[%c0_3, %c0_4] : memref<24x32xf32, #tpu.memory_space<vmem>>, vector<24x32xf32>
    %6 = vector.shape_cast %5 : vector<24x32xf32> to vector<1x24x32xf32>
    %7 = vector.broadcast %6 : vector<1x24x32xf32> to vector<2x24x32xf32>
    %8 = arith.addf %4, %7 : vector<2x24x32xf32>
    %9 = vector.shape_cast %8 : vector<2x24x32xf32> to vector<48x32xf32>
    %10 = tpu.iota {dimensions = array<i32: 2>} : vector<1x1x24xi32>
    %c17_i32 = arith.constant 17 : i32
    %11 = vector.broadcast %c17_i32 : i32 to vector<1x1x24xi32>
    %12 = arith.cmpi slt, %10, %11 : vector<1x1x24xi32>
    %cst_5 = arith.constant 0.000000e+00 : f32
    %cst_6 = arith.constant -1.000000e+30 : f32
    %13 = vector.broadcast %cst_5 : f32 to vector<1x1x24xf32>
    %14 = vector.broadcast %cst_6 : f32 to vector<1x1x24xf32>
    %15 = arith.select %12, %13, %14 : vector<1x1x24xi1>, vector<1x1x24xf32>
    %c0_7 = arith.constant 0 : index
    %c0_8 = arith.constant 0 : index
    %c0_9 = arith.constant 0 : index
    %16 = vector.load %arg9[%c0_7, %c0_8, %c0_9] : memref<2x8x96xf32, #tpu.memory_space<vmem>>, vector<1x8x96xf32>
    %17 = vector.shape_cast %16 : vector<1x8x96xf32> to vector<8x96xf32>
    %18 = vector.extract_strided_slice %17 {offsets = [0, 0], sizes = [1, 32], strides = [1, 1]} : vector<8x96xf32> to vector<1x32xf32>
    %19 = vector.extract_strided_slice %17 {offsets = [1, 0], sizes = [1, 32], strides = [1, 1]} : vector<8x96xf32> to vector<1x32xf32>
    %20 = vector.extract_strided_slice %17 {offsets = [2, 0], sizes = [1, 96], strides = [1, 1]} : vector<8x96xf32> to vector<1x96xf32>
    %21 = vector.extract_strided_slice %17 {offsets = [3, 0], sizes = [1, 32], strides = [1, 1]} : vector<8x96xf32> to vector<1x32xf32>
    %22 = vector.extract_strided_slice %17 {offsets = [4, 0], sizes = [1, 32], strides = [1, 1]} : vector<8x96xf32> to vector<1x32xf32>
    %23 = vector.extract_strided_slice %17 {offsets = [5, 0], sizes = [1, 32], strides = [1, 1]} : vector<8x96xf32> to vector<1x32xf32>
    %24 = vector.extract_strided_slice %17 {offsets = [6, 0], sizes = [1, 64], strides = [1, 1]} : vector<8x96xf32> to vector<1x64xf32>
    %25 = vector.extract_strided_slice %17 {offsets = [7, 0], sizes = [1, 32], strides = [1, 1]} : vector<8x96xf32> to vector<1x32xf32>
    %cst_10 = arith.constant dense<0.000000e+00> : vector<48xf32>
    %26 = vector.multi_reduction <add>, %9, %cst_10 [1] : vector<48x32xf32> to vector<48xf32>
    %27 = vector.shape_cast %26 : vector<48xf32> to vector<48x1xf32>
    %cst_11 = arith.constant 3.200000e+01 : f32
    %28 = vector.broadcast %cst_11 : f32 to vector<48x1xf32>
    %29 = arith.divf %27, %28 : vector<48x1xf32>
    %30 = vector.broadcast %29 : vector<48x1xf32> to vector<48x32xf32>
    %31 = arith.subf %9, %30 : vector<48x32xf32>
    %32 = arith.mulf %31, %31 : vector<48x32xf32>
    %cst_12 = arith.constant dense<0.000000e+00> : vector<48xf32>
    %33 = vector.multi_reduction <add>, %32, %cst_12 [1] : vector<48x32xf32> to vector<48xf32>
    %34 = vector.shape_cast %33 : vector<48xf32> to vector<48x1xf32>
    %cst_13 = arith.constant 3.200000e+01 : f32
    %35 = vector.broadcast %cst_13 : f32 to vector<48x1xf32>
    %36 = arith.divf %34, %35 : vector<48x1xf32>
    %37 = vector.broadcast %29 : vector<48x1xf32> to vector<48x32xf32>
    %38 = arith.subf %9, %37 : vector<48x32xf32>
    %cst_14 = arith.constant 9.99999997E-7 : f32
    %39 = vector.broadcast %cst_14 : f32 to vector<48x1xf32>
    %40 = arith.addf %36, %39 : vector<48x1xf32>
    %41 = math.rsqrt %40 : vector<48x1xf32>
    %42 = vector.broadcast %41 : vector<48x1xf32> to vector<48x32xf32>
    %43 = arith.mulf %38, %42 : vector<48x32xf32>
    %44 = vector.broadcast %18 : vector<1x32xf32> to vector<48x32xf32>
    %45 = arith.mulf %43, %44 : vector<48x32xf32>
    %46 = vector.broadcast %19 : vector<1x32xf32> to vector<48x32xf32>
    %47 = arith.addf %45, %46 : vector<48x32xf32>
    %48 = arith.truncf %47 : vector<48x32xf32> to vector<48x32xbf16>
    %c0_15 = arith.constant 0 : index
    %c0_16 = arith.constant 0 : index
    %c0_17 = arith.constant 0 : index
    %49 = vector.load %arg5[%c0_15, %c0_16, %c0_17] : memref<2x32x96xbf16, #tpu.memory_space<vmem>>, vector<1x32x96xbf16>
    %50 = vector.shape_cast %49 : vector<1x32x96xbf16> to vector<32x96xbf16>
    %cst_18 = arith.constant dense<0.000000e+00> : vector<48x96xf32>
    %51 = tpu.matmul %48, %50, %cst_18 {dimension_numbers = #tpu.dot_dimension_numbers<[1], [0], [0], [1], [0, 0, 1, 1], [], []>} : vector<48x32xbf16>, vector<32x96xbf16>, vector<48x96xf32> -> vector<48x96xf32>
    %52 = vector.broadcast %20 : vector<1x96xf32> to vector<48x96xf32>
    %53 = arith.addf %51, %52 : vector<48x96xf32>
    %54 = vector.extract_strided_slice %53 {offsets = [0, 0], sizes = [48, 16], strides = [1, 1]} : vector<48x96xf32> to vector<48x16xf32>
    %55 = vector.extract_strided_slice %53 {offsets = [0, 32], sizes = [48, 16], strides = [1, 1]} : vector<48x96xf32> to vector<48x16xf32>
    %56 = vector.extract_strided_slice %53 {offsets = [0, 64], sizes = [48, 16], strides = [1, 1]} : vector<48x96xf32> to vector<48x16xf32>
    %57 = vector.shape_cast %54 : vector<48x16xf32> to vector<2x24x16xf32>
    %58 = arith.truncf %57 : vector<2x24x16xf32> to vector<2x24x16xbf16>
    %59 = vector.shape_cast %55 : vector<48x16xf32> to vector<2x24x16xf32>
    %60 = arith.truncf %59 : vector<2x24x16xf32> to vector<2x24x16xbf16>
    %61 = vector.shape_cast %56 : vector<48x16xf32> to vector<2x24x16xf32>
    %62 = arith.truncf %61 : vector<2x24x16xf32> to vector<2x24x16xbf16>
    "tpu.trace_start"() <{level = 10 : i32, message = "btd,bsd->bts"}> : () -> ()
    %cst_19 = arith.constant dense<0.000000e+00> : vector<2x24x24xf32>
    %63 = tpu.matmul %58, %60, %cst_19 {dimension_numbers = #tpu.dot_dimension_numbers<[2], [2], [1], [1], [0, 0, 0, 1, 1, 1], [0], [0]>} : vector<2x24x16xbf16>, vector<2x24x16xbf16>, vector<2x24x24xf32> -> vector<2x24x24xf32>
    "tpu.trace_stop"() : () -> ()
    %cst_20 = arith.constant 2.500000e-01 : f32
    %64 = vector.broadcast %cst_20 : f32 to vector<2x24x24xf32>
    %65 = arith.mulf %63, %64 : vector<2x24x24xf32>
    %66 = vector.broadcast %15 : vector<1x1x24xf32> to vector<2x24x24xf32>
    %67 = arith.addf %65, %66 : vector<2x24x24xf32>
    %cst_21 = arith.constant dense<0xFF800000> : vector<2x24xf32>
    %68 = vector.multi_reduction <maximumf>, %67, %cst_21 [2] : vector<2x24x24xf32> to vector<2x24xf32>
    %69 = vector.shape_cast %68 : vector<2x24xf32> to vector<2x24x1xf32>
    %70 = vector.broadcast %69 : vector<2x24x1xf32> to vector<2x24x24xf32>
    %71 = arith.subf %67, %70 : vector<2x24x24xf32>
    %72 = math.exp %71 : vector<2x24x24xf32>
    %cst_22 = arith.constant dense<0.000000e+00> : vector<2x24xf32>
    %73 = vector.multi_reduction <add>, %72, %cst_22 [2] : vector<2x24x24xf32> to vector<2x24xf32>
    %74 = vector.shape_cast %73 : vector<2x24xf32> to vector<2x24x1xf32>
    %75 = tpu.reciprocal %74 {approx = true} : vector<2x24x1xf32> -> vector<2x24x1xf32>
    %76 = vector.broadcast %75 : vector<2x24x1xf32> to vector<2x24x24xf32>
    %77 = arith.mulf %72, %76 : vector<2x24x24xf32>
    %78 = arith.truncf %77 : vector<2x24x24xf32> to vector<2x24x24xbf16>
    "tpu.trace_start"() <{level = 10 : i32, message = "bts,bsd->btd"}> : () -> ()
    %cst_23 = arith.constant dense<0.000000e+00> : vector<2x24x16xf32>
    %79 = tpu.matmul %78, %62, %cst_23 {dimension_numbers = #tpu.dot_dimension_numbers<[2], [1], [1], [2], [0, 0, 0, 1, 1, 2], [0], [0]>} : vector<2x24x24xbf16>, vector<2x24x16xbf16>, vector<2x24x16xf32> -> vector<2x24x16xf32>
    "tpu.trace_stop"() : () -> ()
    %80 = vector.shape_cast %79 : vector<2x24x16xf32> to vector<48x16xf32>
    %81 = vector.extract_strided_slice %53 {offsets = [0, 16], sizes = [48, 16], strides = [1, 1]} : vector<48x96xf32> to vector<48x16xf32>
    %82 = vector.extract_strided_slice %53 {offsets = [0, 48], sizes = [48, 16], strides = [1, 1]} : vector<48x96xf32> to vector<48x16xf32>
    %83 = vector.extract_strided_slice %53 {offsets = [0, 80], sizes = [48, 16], strides = [1, 1]} : vector<48x96xf32> to vector<48x16xf32>
    %84 = vector.shape_cast %81 : vector<48x16xf32> to vector<2x24x16xf32>
    %85 = arith.truncf %84 : vector<2x24x16xf32> to vector<2x24x16xbf16>
    %86 = vector.shape_cast %82 : vector<48x16xf32> to vector<2x24x16xf32>
    %87 = arith.truncf %86 : vector<2x24x16xf32> to vector<2x24x16xbf16>
    %88 = vector.shape_cast %83 : vector<48x16xf32> to vector<2x24x16xf32>
    %89 = arith.truncf %88 : vector<2x24x16xf32> to vector<2x24x16xbf16>
    "tpu.trace_start"() <{level = 10 : i32, message = "btd,bsd->bts"}> : () -> ()
    %cst_24 = arith.constant dense<0.000000e+00> : vector<2x24x24xf32>
    %90 = tpu.matmul %85, %87, %cst_24 {dimension_numbers = #tpu.dot_dimension_numbers<[2], [2], [1], [1], [0, 0, 0, 1, 1, 1], [0], [0]>} : vector<2x24x16xbf16>, vector<2x24x16xbf16>, vector<2x24x24xf32> -> vector<2x24x24xf32>
    "tpu.trace_stop"() : () -> ()
    %cst_25 = arith.constant 2.500000e-01 : f32
    %91 = vector.broadcast %cst_25 : f32 to vector<2x24x24xf32>
    %92 = arith.mulf %90, %91 : vector<2x24x24xf32>
    %93 = vector.broadcast %15 : vector<1x1x24xf32> to vector<2x24x24xf32>
    %94 = arith.addf %92, %93 : vector<2x24x24xf32>
    %cst_26 = arith.constant dense<0xFF800000> : vector<2x24xf32>
    %95 = vector.multi_reduction <maximumf>, %94, %cst_26 [2] : vector<2x24x24xf32> to vector<2x24xf32>
    %96 = vector.shape_cast %95 : vector<2x24xf32> to vector<2x24x1xf32>
    %97 = vector.broadcast %96 : vector<2x24x1xf32> to vector<2x24x24xf32>
    %98 = arith.subf %94, %97 : vector<2x24x24xf32>
    %99 = math.exp %98 : vector<2x24x24xf32>
    %cst_27 = arith.constant dense<0.000000e+00> : vector<2x24xf32>
    %100 = vector.multi_reduction <add>, %99, %cst_27 [2] : vector<2x24x24xf32> to vector<2x24xf32>
    %101 = vector.shape_cast %100 : vector<2x24xf32> to vector<2x24x1xf32>
    %102 = tpu.reciprocal %101 {approx = true} : vector<2x24x1xf32> -> vector<2x24x1xf32>
    %103 = vector.broadcast %102 : vector<2x24x1xf32> to vector<2x24x24xf32>
    %104 = arith.mulf %99, %103 : vector<2x24x24xf32>
    %105 = arith.truncf %104 : vector<2x24x24xf32> to vector<2x24x24xbf16>
    "tpu.trace_start"() <{level = 10 : i32, message = "bts,bsd->btd"}> : () -> ()
    %cst_28 = arith.constant dense<0.000000e+00> : vector<2x24x16xf32>
    %106 = tpu.matmul %105, %89, %cst_28 {dimension_numbers = #tpu.dot_dimension_numbers<[2], [1], [1], [2], [0, 0, 0, 1, 1, 2], [0], [0]>} : vector<2x24x24xbf16>, vector<2x24x16xbf16>, vector<2x24x16xf32> -> vector<2x24x16xf32>
    "tpu.trace_stop"() : () -> ()
    %107 = vector.shape_cast %106 : vector<2x24x16xf32> to vector<48x16xf32>
    %108 = tpu.concatenate %80, %107 in 1 : vector<48x16xf32>, vector<48x16xf32> -> vector<48x32xf32>
    %109 = arith.truncf %108 : vector<48x32xf32> to vector<48x32xbf16>
    %c0_29 = arith.constant 0 : index
    %c0_30 = arith.constant 0 : index
    %c0_31 = arith.constant 0 : index
    %110 = vector.load %arg6[%c0_29, %c0_30, %c0_31] : memref<2x32x32xbf16, #tpu.memory_space<vmem>>, vector<1x32x32xbf16>
    %111 = vector.shape_cast %110 : vector<1x32x32xbf16> to vector<32x32xbf16>
    %cst_32 = arith.constant dense<0.000000e+00> : vector<48x32xf32>
    %112 = tpu.matmul %109, %111, %cst_32 {dimension_numbers = #tpu.dot_dimension_numbers<[1], [0], [0], [1], [0, 0, 1, 1], [], []>} : vector<48x32xbf16>, vector<32x32xbf16>, vector<48x32xf32> -> vector<48x32xf32>
    %113 = vector.broadcast %21 : vector<1x32xf32> to vector<48x32xf32>
    %114 = arith.addf %112, %113 : vector<48x32xf32>
    %115 = arith.addf %9, %114 : vector<48x32xf32>
    %cst_33 = arith.constant dense<0.000000e+00> : vector<48xf32>
    %116 = vector.multi_reduction <add>, %115, %cst_33 [1] : vector<48x32xf32> to vector<48xf32>
    %117 = vector.shape_cast %116 : vector<48xf32> to vector<48x1xf32>
    %cst_34 = arith.constant 3.200000e+01 : f32
    %118 = vector.broadcast %cst_34 : f32 to vector<48x1xf32>
    %119 = arith.divf %117, %118 : vector<48x1xf32>
    %120 = vector.broadcast %119 : vector<48x1xf32> to vector<48x32xf32>
    %121 = arith.subf %115, %120 : vector<48x32xf32>
    %122 = arith.mulf %121, %121 : vector<48x32xf32>
    %cst_35 = arith.constant dense<0.000000e+00> : vector<48xf32>
    %123 = vector.multi_reduction <add>, %122, %cst_35 [1] : vector<48x32xf32> to vector<48xf32>
    %124 = vector.shape_cast %123 : vector<48xf32> to vector<48x1xf32>
    %cst_36 = arith.constant 3.200000e+01 : f32
    %125 = vector.broadcast %cst_36 : f32 to vector<48x1xf32>
    %126 = arith.divf %124, %125 : vector<48x1xf32>
    %127 = vector.broadcast %119 : vector<48x1xf32> to vector<48x32xf32>
    %128 = arith.subf %115, %127 : vector<48x32xf32>
    %cst_37 = arith.constant 9.99999997E-7 : f32
    %129 = vector.broadcast %cst_37 : f32 to vector<48x1xf32>
    %130 = arith.addf %126, %129 : vector<48x1xf32>
    %131 = math.rsqrt %130 : vector<48x1xf32>
    %132 = vector.broadcast %131 : vector<48x1xf32> to vector<48x32xf32>
    %133 = arith.mulf %128, %132 : vector<48x32xf32>
    %134 = vector.broadcast %22 : vector<1x32xf32> to vector<48x32xf32>
    %135 = arith.mulf %133, %134 : vector<48x32xf32>
    %136 = vector.broadcast %23 : vector<1x32xf32> to vector<48x32xf32>
    %137 = arith.addf %135, %136 : vector<48x32xf32>
    %138 = arith.truncf %137 : vector<48x32xf32> to vector<48x32xbf16>
    %c0_38 = arith.constant 0 : index
    %c0_39 = arith.constant 0 : index
    %c0_40 = arith.constant 0 : index
    %139 = vector.load %arg7[%c0_38, %c0_39, %c0_40] : memref<2x32x64xbf16, #tpu.memory_space<vmem>>, vector<1x32x64xbf16>
    %140 = vector.shape_cast %139 : vector<1x32x64xbf16> to vector<32x64xbf16>
    %cst_41 = arith.constant dense<0.000000e+00> : vector<48x64xf32>
    %141 = tpu.matmul %138, %140, %cst_41 {dimension_numbers = #tpu.dot_dimension_numbers<[1], [0], [0], [1], [0, 0, 1, 1], [], []>} : vector<48x32xbf16>, vector<32x64xbf16>, vector<48x64xf32> -> vector<48x64xf32>
    %142 = vector.broadcast %24 : vector<1x64xf32> to vector<48x64xf32>
    %143 = arith.addf %141, %142 : vector<48x64xf32>
    %cst_42 = arith.constant 5.000000e-01 : f32
    %144 = vector.broadcast %cst_42 : f32 to vector<48x64xf32>
    %145 = arith.mulf %144, %143 : vector<48x64xf32>
    %cst_43 = arith.constant 0.707106769 : f32
    %146 = vector.broadcast %cst_43 : f32 to vector<48x64xf32>
    %147 = arith.mulf %143, %146 : vector<48x64xf32>
    %cst_44 = arith.constant 0.000000e+00 : f32
    %148 = vector.broadcast %cst_44 : f32 to vector<48x64xf32>
    %149 = arith.cmpf oge, %147, %148 : vector<48x64xf32>
    %cst_45 = arith.constant 1.000000e+00 : f32
    %cst_46 = arith.constant -1.000000e+00 : f32
    %150 = vector.broadcast %cst_45 : f32 to vector<48x64xf32>
    %151 = vector.broadcast %cst_46 : f32 to vector<48x64xf32>
    %152 = arith.select %149, %150, %151 : vector<48x64xi1>, vector<48x64xf32>
    %153 = math.absf %147 : vector<48x64xf32>
    %cst_47 = arith.constant 0.327591091 : f32
    %154 = vector.broadcast %cst_47 : f32 to vector<48x64xf32>
    %155 = arith.mulf %154, %153 : vector<48x64xf32>
    %cst_48 = arith.constant 1.000000e+00 : f32
    %156 = vector.broadcast %cst_48 : f32 to vector<48x64xf32>
    %157 = arith.addf %156, %155 : vector<48x64xf32>
    %cst_49 = arith.constant 1.000000e+00 : f32
    %158 = vector.broadcast %cst_49 : f32 to vector<48x64xf32>
    %159 = arith.divf %158, %157 : vector<48x64xf32>
    %cst_50 = arith.constant 1.06140542 : f32
    %160 = vector.broadcast %cst_50 : f32 to vector<48x64xf32>
    %161 = arith.mulf %160, %159 : vector<48x64xf32>
    %cst_51 = arith.constant -1.45315206 : f32
    %162 = vector.broadcast %cst_51 : f32 to vector<48x64xf32>
    %163 = arith.addf %161, %162 : vector<48x64xf32>
    %164 = arith.mulf %163, %159 : vector<48x64xf32>
    %cst_52 = arith.constant 1.42141378 : f32
    %165 = vector.broadcast %cst_52 : f32 to vector<48x64xf32>
    %166 = arith.addf %164, %165 : vector<48x64xf32>
    %167 = arith.mulf %166, %159 : vector<48x64xf32>
    %cst_53 = arith.constant -0.284496725 : f32
    %168 = vector.broadcast %cst_53 : f32 to vector<48x64xf32>
    %169 = arith.addf %167, %168 : vector<48x64xf32>
    %170 = arith.mulf %169, %159 : vector<48x64xf32>
    %cst_54 = arith.constant 0.254829586 : f32
    %171 = vector.broadcast %cst_54 : f32 to vector<48x64xf32>
    %172 = arith.addf %170, %171 : vector<48x64xf32>
    %173 = arith.mulf %172, %159 : vector<48x64xf32>
    %cst_55 = arith.constant 0.000000e+00 : f32
    %174 = vector.broadcast %cst_55 : f32 to vector<48x64xf32>
    %175 = arith.subf %174, %153 : vector<48x64xf32>
    %176 = arith.mulf %175, %153 : vector<48x64xf32>
    %177 = math.exp %176 : vector<48x64xf32>
    %178 = arith.mulf %173, %177 : vector<48x64xf32>
    %cst_56 = arith.constant 1.000000e+00 : f32
    %179 = vector.broadcast %cst_56 : f32 to vector<48x64xf32>
    %180 = arith.subf %179, %178 : vector<48x64xf32>
    %181 = arith.mulf %152, %180 : vector<48x64xf32>
    %cst_57 = arith.constant 1.000000e+00 : f32
    %182 = vector.broadcast %cst_57 : f32 to vector<48x64xf32>
    %183 = arith.addf %182, %181 : vector<48x64xf32>
    %184 = arith.mulf %145, %183 : vector<48x64xf32>
    %185 = arith.truncf %184 : vector<48x64xf32> to vector<48x64xbf16>
    %c0_58 = arith.constant 0 : index
    %c0_59 = arith.constant 0 : index
    %c0_60 = arith.constant 0 : index
    %186 = vector.load %arg8[%c0_58, %c0_59, %c0_60] : memref<2x64x32xbf16, #tpu.memory_space<vmem>>, vector<1x64x32xbf16>
    %187 = vector.shape_cast %186 : vector<1x64x32xbf16> to vector<64x32xbf16>
    %cst_61 = arith.constant dense<0.000000e+00> : vector<48x32xf32>
    %188 = tpu.matmul %185, %187, %cst_61 {dimension_numbers = #tpu.dot_dimension_numbers<[1], [0], [0], [1], [0, 0, 1, 1], [], []>} : vector<48x64xbf16>, vector<64x32xbf16>, vector<48x32xf32> -> vector<48x32xf32>
    %189 = arith.addf %115, %188 : vector<48x32xf32>
    %190 = vector.broadcast %25 : vector<1x32xf32> to vector<48x32xf32>
    %191 = arith.addf %189, %190 : vector<48x32xf32>
    %c1 = arith.constant 1 : index
    %c0_62 = arith.constant 0 : index
    %c0_63 = arith.constant 0 : index
    %192 = vector.load %arg9[%c1, %c0_62, %c0_63] : memref<2x8x96xf32, #tpu.memory_space<vmem>>, vector<1x8x96xf32>
    %193 = vector.shape_cast %192 : vector<1x8x96xf32> to vector<8x96xf32>
    %194 = vector.extract_strided_slice %193 {offsets = [0, 0], sizes = [1, 32], strides = [1, 1]} : vector<8x96xf32> to vector<1x32xf32>
    %195 = vector.extract_strided_slice %193 {offsets = [1, 0], sizes = [1, 32], strides = [1, 1]} : vector<8x96xf32> to vector<1x32xf32>
    %196 = vector.extract_strided_slice %193 {offsets = [2, 0], sizes = [1, 96], strides = [1, 1]} : vector<8x96xf32> to vector<1x96xf32>
    %197 = vector.extract_strided_slice %193 {offsets = [3, 0], sizes = [1, 32], strides = [1, 1]} : vector<8x96xf32> to vector<1x32xf32>
    %198 = vector.extract_strided_slice %193 {offsets = [4, 0], sizes = [1, 32], strides = [1, 1]} : vector<8x96xf32> to vector<1x32xf32>
    %199 = vector.extract_strided_slice %193 {offsets = [5, 0], sizes = [1, 32], strides = [1, 1]} : vector<8x96xf32> to vector<1x32xf32>
    %200 = vector.extract_strided_slice %193 {offsets = [6, 0], sizes = [1, 64], strides = [1, 1]} : vector<8x96xf32> to vector<1x64xf32>
    %201 = vector.extract_strided_slice %193 {offsets = [7, 0], sizes = [1, 32], strides = [1, 1]} : vector<8x96xf32> to vector<1x32xf32>
    %cst_64 = arith.constant dense<0.000000e+00> : vector<48xf32>
    %202 = vector.multi_reduction <add>, %191, %cst_64 [1] : vector<48x32xf32> to vector<48xf32>
    %203 = vector.shape_cast %202 : vector<48xf32> to vector<48x1xf32>
    %cst_65 = arith.constant 3.200000e+01 : f32
    %204 = vector.broadcast %cst_65 : f32 to vector<48x1xf32>
    %205 = arith.divf %203, %204 : vector<48x1xf32>
    %206 = vector.broadcast %205 : vector<48x1xf32> to vector<48x32xf32>
    %207 = arith.subf %191, %206 : vector<48x32xf32>
    %208 = arith.mulf %207, %207 : vector<48x32xf32>
    %cst_66 = arith.constant dense<0.000000e+00> : vector<48xf32>
    %209 = vector.multi_reduction <add>, %208, %cst_66 [1] : vector<48x32xf32> to vector<48xf32>
    %210 = vector.shape_cast %209 : vector<48xf32> to vector<48x1xf32>
    %cst_67 = arith.constant 3.200000e+01 : f32
    %211 = vector.broadcast %cst_67 : f32 to vector<48x1xf32>
    %212 = arith.divf %210, %211 : vector<48x1xf32>
    %213 = vector.broadcast %205 : vector<48x1xf32> to vector<48x32xf32>
    %214 = arith.subf %191, %213 : vector<48x32xf32>
    %cst_68 = arith.constant 9.99999997E-7 : f32
    %215 = vector.broadcast %cst_68 : f32 to vector<48x1xf32>
    %216 = arith.addf %212, %215 : vector<48x1xf32>
    %217 = math.rsqrt %216 : vector<48x1xf32>
    %218 = vector.broadcast %217 : vector<48x1xf32> to vector<48x32xf32>
    %219 = arith.mulf %214, %218 : vector<48x32xf32>
    %220 = vector.broadcast %194 : vector<1x32xf32> to vector<48x32xf32>
    %221 = arith.mulf %219, %220 : vector<48x32xf32>
    %222 = vector.broadcast %195 : vector<1x32xf32> to vector<48x32xf32>
    %223 = arith.addf %221, %222 : vector<48x32xf32>
    %224 = arith.truncf %223 : vector<48x32xf32> to vector<48x32xbf16>
    %c1_69 = arith.constant 1 : index
    %c0_70 = arith.constant 0 : index
    %c0_71 = arith.constant 0 : index
    %225 = vector.load %arg5[%c1_69, %c0_70, %c0_71] : memref<2x32x96xbf16, #tpu.memory_space<vmem>>, vector<1x32x96xbf16>
    %226 = vector.shape_cast %225 : vector<1x32x96xbf16> to vector<32x96xbf16>
    %cst_72 = arith.constant dense<0.000000e+00> : vector<48x96xf32>
    %227 = tpu.matmul %224, %226, %cst_72 {dimension_numbers = #tpu.dot_dimension_numbers<[1], [0], [0], [1], [0, 0, 1, 1], [], []>} : vector<48x32xbf16>, vector<32x96xbf16>, vector<48x96xf32> -> vector<48x96xf32>
    %228 = vector.broadcast %196 : vector<1x96xf32> to vector<48x96xf32>
    %229 = arith.addf %227, %228 : vector<48x96xf32>
    %230 = vector.extract_strided_slice %229 {offsets = [0, 0], sizes = [48, 16], strides = [1, 1]} : vector<48x96xf32> to vector<48x16xf32>
    %231 = vector.extract_strided_slice %229 {offsets = [0, 32], sizes = [48, 16], strides = [1, 1]} : vector<48x96xf32> to vector<48x16xf32>
    %232 = vector.extract_strided_slice %229 {offsets = [0, 64], sizes = [48, 16], strides = [1, 1]} : vector<48x96xf32> to vector<48x16xf32>
    %233 = vector.shape_cast %230 : vector<48x16xf32> to vector<2x24x16xf32>
    %234 = arith.truncf %233 : vector<2x24x16xf32> to vector<2x24x16xbf16>
    %235 = vector.shape_cast %231 : vector<48x16xf32> to vector<2x24x16xf32>
    %236 = arith.truncf %235 : vector<2x24x16xf32> to vector<2x24x16xbf16>
    %237 = vector.shape_cast %232 : vector<48x16xf32> to vector<2x24x16xf32>
    %238 = arith.truncf %237 : vector<2x24x16xf32> to vector<2x24x16xbf16>
    "tpu.trace_start"() <{level = 10 : i32, message = "btd,bsd->bts"}> : () -> ()
    %cst_73 = arith.constant dense<0.000000e+00> : vector<2x24x24xf32>
    %239 = tpu.matmul %234, %236, %cst_73 {dimension_numbers = #tpu.dot_dimension_numbers<[2], [2], [1], [1], [0, 0, 0, 1, 1, 1], [0], [0]>} : vector<2x24x16xbf16>, vector<2x24x16xbf16>, vector<2x24x24xf32> -> vector<2x24x24xf32>
    "tpu.trace_stop"() : () -> ()
    %cst_74 = arith.constant 2.500000e-01 : f32
    %240 = vector.broadcast %cst_74 : f32 to vector<2x24x24xf32>
    %241 = arith.mulf %239, %240 : vector<2x24x24xf32>
    %242 = vector.broadcast %15 : vector<1x1x24xf32> to vector<2x24x24xf32>
    %243 = arith.addf %241, %242 : vector<2x24x24xf32>
    %cst_75 = arith.constant dense<0xFF800000> : vector<2x24xf32>
    %244 = vector.multi_reduction <maximumf>, %243, %cst_75 [2] : vector<2x24x24xf32> to vector<2x24xf32>
    %245 = vector.shape_cast %244 : vector<2x24xf32> to vector<2x24x1xf32>
    %246 = vector.broadcast %245 : vector<2x24x1xf32> to vector<2x24x24xf32>
    %247 = arith.subf %243, %246 : vector<2x24x24xf32>
    %248 = math.exp %247 : vector<2x24x24xf32>
    %cst_76 = arith.constant dense<0.000000e+00> : vector<2x24xf32>
    %249 = vector.multi_reduction <add>, %248, %cst_76 [2] : vector<2x24x24xf32> to vector<2x24xf32>
    %250 = vector.shape_cast %249 : vector<2x24xf32> to vector<2x24x1xf32>
    %251 = tpu.reciprocal %250 {approx = true} : vector<2x24x1xf32> -> vector<2x24x1xf32>
    %252 = vector.broadcast %251 : vector<2x24x1xf32> to vector<2x24x24xf32>
    %253 = arith.mulf %248, %252 : vector<2x24x24xf32>
    %254 = arith.truncf %253 : vector<2x24x24xf32> to vector<2x24x24xbf16>
    "tpu.trace_start"() <{level = 10 : i32, message = "bts,bsd->btd"}> : () -> ()
    %cst_77 = arith.constant dense<0.000000e+00> : vector<2x24x16xf32>
    %255 = tpu.matmul %254, %238, %cst_77 {dimension_numbers = #tpu.dot_dimension_numbers<[2], [1], [1], [2], [0, 0, 0, 1, 1, 2], [0], [0]>} : vector<2x24x24xbf16>, vector<2x24x16xbf16>, vector<2x24x16xf32> -> vector<2x24x16xf32>
    "tpu.trace_stop"() : () -> ()
    %256 = vector.shape_cast %255 : vector<2x24x16xf32> to vector<48x16xf32>
    %257 = vector.extract_strided_slice %229 {offsets = [0, 16], sizes = [48, 16], strides = [1, 1]} : vector<48x96xf32> to vector<48x16xf32>
    %258 = vector.extract_strided_slice %229 {offsets = [0, 48], sizes = [48, 16], strides = [1, 1]} : vector<48x96xf32> to vector<48x16xf32>
    %259 = vector.extract_strided_slice %229 {offsets = [0, 80], sizes = [48, 16], strides = [1, 1]} : vector<48x96xf32> to vector<48x16xf32>
    %260 = vector.shape_cast %257 : vector<48x16xf32> to vector<2x24x16xf32>
    %261 = arith.truncf %260 : vector<2x24x16xf32> to vector<2x24x16xbf16>
    %262 = vector.shape_cast %258 : vector<48x16xf32> to vector<2x24x16xf32>
    %263 = arith.truncf %262 : vector<2x24x16xf32> to vector<2x24x16xbf16>
    %264 = vector.shape_cast %259 : vector<48x16xf32> to vector<2x24x16xf32>
    %265 = arith.truncf %264 : vector<2x24x16xf32> to vector<2x24x16xbf16>
    "tpu.trace_start"() <{level = 10 : i32, message = "btd,bsd->bts"}> : () -> ()
    %cst_78 = arith.constant dense<0.000000e+00> : vector<2x24x24xf32>
    %266 = tpu.matmul %261, %263, %cst_78 {dimension_numbers = #tpu.dot_dimension_numbers<[2], [2], [1], [1], [0, 0, 0, 1, 1, 1], [0], [0]>} : vector<2x24x16xbf16>, vector<2x24x16xbf16>, vector<2x24x24xf32> -> vector<2x24x24xf32>
    "tpu.trace_stop"() : () -> ()
    %cst_79 = arith.constant 2.500000e-01 : f32
    %267 = vector.broadcast %cst_79 : f32 to vector<2x24x24xf32>
    %268 = arith.mulf %266, %267 : vector<2x24x24xf32>
    %269 = vector.broadcast %15 : vector<1x1x24xf32> to vector<2x24x24xf32>
    %270 = arith.addf %268, %269 : vector<2x24x24xf32>
    %cst_80 = arith.constant dense<0xFF800000> : vector<2x24xf32>
    %271 = vector.multi_reduction <maximumf>, %270, %cst_80 [2] : vector<2x24x24xf32> to vector<2x24xf32>
    %272 = vector.shape_cast %271 : vector<2x24xf32> to vector<2x24x1xf32>
    %273 = vector.broadcast %272 : vector<2x24x1xf32> to vector<2x24x24xf32>
    %274 = arith.subf %270, %273 : vector<2x24x24xf32>
    %275 = math.exp %274 : vector<2x24x24xf32>
    %cst_81 = arith.constant dense<0.000000e+00> : vector<2x24xf32>
    %276 = vector.multi_reduction <add>, %275, %cst_81 [2] : vector<2x24x24xf32> to vector<2x24xf32>
    %277 = vector.shape_cast %276 : vector<2x24xf32> to vector<2x24x1xf32>
    %278 = tpu.reciprocal %277 {approx = true} : vector<2x24x1xf32> -> vector<2x24x1xf32>
    %279 = vector.broadcast %278 : vector<2x24x1xf32> to vector<2x24x24xf32>
    %280 = arith.mulf %275, %279 : vector<2x24x24xf32>
    %281 = arith.truncf %280 : vector<2x24x24xf32> to vector<2x24x24xbf16>
    "tpu.trace_start"() <{level = 10 : i32, message = "bts,bsd->btd"}> : () -> ()
    %cst_82 = arith.constant dense<0.000000e+00> : vector<2x24x16xf32>
    %282 = tpu.matmul %281, %265, %cst_82 {dimension_numbers = #tpu.dot_dimension_numbers<[2], [1], [1], [2], [0, 0, 0, 1, 1, 2], [0], [0]>} : vector<2x24x24xbf16>, vector<2x24x16xbf16>, vector<2x24x16xf32> -> vector<2x24x16xf32>
    "tpu.trace_stop"() : () -> ()
    %283 = vector.shape_cast %282 : vector<2x24x16xf32> to vector<48x16xf32>
    %284 = tpu.concatenate %256, %283 in 1 : vector<48x16xf32>, vector<48x16xf32> -> vector<48x32xf32>
    %285 = arith.truncf %284 : vector<48x32xf32> to vector<48x32xbf16>
    %c1_83 = arith.constant 1 : index
    %c0_84 = arith.constant 0 : index
    %c0_85 = arith.constant 0 : index
    %286 = vector.load %arg6[%c1_83, %c0_84, %c0_85] : memref<2x32x32xbf16, #tpu.memory_space<vmem>>, vector<1x32x32xbf16>
    %287 = vector.shape_cast %286 : vector<1x32x32xbf16> to vector<32x32xbf16>
    %cst_86 = arith.constant dense<0.000000e+00> : vector<48x32xf32>
    %288 = tpu.matmul %285, %287, %cst_86 {dimension_numbers = #tpu.dot_dimension_numbers<[1], [0], [0], [1], [0, 0, 1, 1], [], []>} : vector<48x32xbf16>, vector<32x32xbf16>, vector<48x32xf32> -> vector<48x32xf32>
    %289 = vector.broadcast %197 : vector<1x32xf32> to vector<48x32xf32>
    %290 = arith.addf %288, %289 : vector<48x32xf32>
    %291 = arith.addf %191, %290 : vector<48x32xf32>
    %cst_87 = arith.constant dense<0.000000e+00> : vector<48xf32>
    %292 = vector.multi_reduction <add>, %291, %cst_87 [1] : vector<48x32xf32> to vector<48xf32>
    %293 = vector.shape_cast %292 : vector<48xf32> to vector<48x1xf32>
    %cst_88 = arith.constant 3.200000e+01 : f32
    %294 = vector.broadcast %cst_88 : f32 to vector<48x1xf32>
    %295 = arith.divf %293, %294 : vector<48x1xf32>
    %296 = vector.broadcast %295 : vector<48x1xf32> to vector<48x32xf32>
    %297 = arith.subf %291, %296 : vector<48x32xf32>
    %298 = arith.mulf %297, %297 : vector<48x32xf32>
    %cst_89 = arith.constant dense<0.000000e+00> : vector<48xf32>
    %299 = vector.multi_reduction <add>, %298, %cst_89 [1] : vector<48x32xf32> to vector<48xf32>
    %300 = vector.shape_cast %299 : vector<48xf32> to vector<48x1xf32>
    %cst_90 = arith.constant 3.200000e+01 : f32
    %301 = vector.broadcast %cst_90 : f32 to vector<48x1xf32>
    %302 = arith.divf %300, %301 : vector<48x1xf32>
    %303 = vector.broadcast %295 : vector<48x1xf32> to vector<48x32xf32>
    %304 = arith.subf %291, %303 : vector<48x32xf32>
    %cst_91 = arith.constant 9.99999997E-7 : f32
    %305 = vector.broadcast %cst_91 : f32 to vector<48x1xf32>
    %306 = arith.addf %302, %305 : vector<48x1xf32>
    %307 = math.rsqrt %306 : vector<48x1xf32>
    %308 = vector.broadcast %307 : vector<48x1xf32> to vector<48x32xf32>
    %309 = arith.mulf %304, %308 : vector<48x32xf32>
    %310 = vector.broadcast %198 : vector<1x32xf32> to vector<48x32xf32>
    %311 = arith.mulf %309, %310 : vector<48x32xf32>
    %312 = vector.broadcast %199 : vector<1x32xf32> to vector<48x32xf32>
    %313 = arith.addf %311, %312 : vector<48x32xf32>
    %314 = arith.truncf %313 : vector<48x32xf32> to vector<48x32xbf16>
    %c1_92 = arith.constant 1 : index
    %c0_93 = arith.constant 0 : index
    %c0_94 = arith.constant 0 : index
    %315 = vector.load %arg7[%c1_92, %c0_93, %c0_94] : memref<2x32x64xbf16, #tpu.memory_space<vmem>>, vector<1x32x64xbf16>
    %316 = vector.shape_cast %315 : vector<1x32x64xbf16> to vector<32x64xbf16>
    %cst_95 = arith.constant dense<0.000000e+00> : vector<48x64xf32>
    %317 = tpu.matmul %314, %316, %cst_95 {dimension_numbers = #tpu.dot_dimension_numbers<[1], [0], [0], [1], [0, 0, 1, 1], [], []>} : vector<48x32xbf16>, vector<32x64xbf16>, vector<48x64xf32> -> vector<48x64xf32>
    %318 = vector.broadcast %200 : vector<1x64xf32> to vector<48x64xf32>
    %319 = arith.addf %317, %318 : vector<48x64xf32>
    %cst_96 = arith.constant 5.000000e-01 : f32
    %320 = vector.broadcast %cst_96 : f32 to vector<48x64xf32>
    %321 = arith.mulf %320, %319 : vector<48x64xf32>
    %cst_97 = arith.constant 0.707106769 : f32
    %322 = vector.broadcast %cst_97 : f32 to vector<48x64xf32>
    %323 = arith.mulf %319, %322 : vector<48x64xf32>
    %cst_98 = arith.constant 0.000000e+00 : f32
    %324 = vector.broadcast %cst_98 : f32 to vector<48x64xf32>
    %325 = arith.cmpf oge, %323, %324 : vector<48x64xf32>
    %cst_99 = arith.constant 1.000000e+00 : f32
    %cst_100 = arith.constant -1.000000e+00 : f32
    %326 = vector.broadcast %cst_99 : f32 to vector<48x64xf32>
    %327 = vector.broadcast %cst_100 : f32 to vector<48x64xf32>
    %328 = arith.select %325, %326, %327 : vector<48x64xi1>, vector<48x64xf32>
    %329 = math.absf %323 : vector<48x64xf32>
    %cst_101 = arith.constant 0.327591091 : f32
    %330 = vector.broadcast %cst_101 : f32 to vector<48x64xf32>
    %331 = arith.mulf %330, %329 : vector<48x64xf32>
    %cst_102 = arith.constant 1.000000e+00 : f32
    %332 = vector.broadcast %cst_102 : f32 to vector<48x64xf32>
    %333 = arith.addf %332, %331 : vector<48x64xf32>
    %cst_103 = arith.constant 1.000000e+00 : f32
    %334 = vector.broadcast %cst_103 : f32 to vector<48x64xf32>
    %335 = arith.divf %334, %333 : vector<48x64xf32>
    %cst_104 = arith.constant 1.06140542 : f32
    %336 = vector.broadcast %cst_104 : f32 to vector<48x64xf32>
    %337 = arith.mulf %336, %335 : vector<48x64xf32>
    %cst_105 = arith.constant -1.45315206 : f32
    %338 = vector.broadcast %cst_105 : f32 to vector<48x64xf32>
    %339 = arith.addf %337, %338 : vector<48x64xf32>
    %340 = arith.mulf %339, %335 : vector<48x64xf32>
    %cst_106 = arith.constant 1.42141378 : f32
    %341 = vector.broadcast %cst_106 : f32 to vector<48x64xf32>
    %342 = arith.addf %340, %341 : vector<48x64xf32>
    %343 = arith.mulf %342, %335 : vector<48x64xf32>
    %cst_107 = arith.constant -0.284496725 : f32
    %344 = vector.broadcast %cst_107 : f32 to vector<48x64xf32>
    %345 = arith.addf %343, %344 : vector<48x64xf32>
    %346 = arith.mulf %345, %335 : vector<48x64xf32>
    %cst_108 = arith.constant 0.254829586 : f32
    %347 = vector.broadcast %cst_108 : f32 to vector<48x64xf32>
    %348 = arith.addf %346, %347 : vector<48x64xf32>
    %349 = arith.mulf %348, %335 : vector<48x64xf32>
    %cst_109 = arith.constant 0.000000e+00 : f32
    %350 = vector.broadcast %cst_109 : f32 to vector<48x64xf32>
    %351 = arith.subf %350, %329 : vector<48x64xf32>
    %352 = arith.mulf %351, %329 : vector<48x64xf32>
    %353 = math.exp %352 : vector<48x64xf32>
    %354 = arith.mulf %349, %353 : vector<48x64xf32>
    %cst_110 = arith.constant 1.000000e+00 : f32
    %355 = vector.broadcast %cst_110 : f32 to vector<48x64xf32>
    %356 = arith.subf %355, %354 : vector<48x64xf32>
    %357 = arith.mulf %328, %356 : vector<48x64xf32>
    %cst_111 = arith.constant 1.000000e+00 : f32
    %358 = vector.broadcast %cst_111 : f32 to vector<48x64xf32>
    %359 = arith.addf %358, %357 : vector<48x64xf32>
    %360 = arith.mulf %321, %359 : vector<48x64xf32>
    %361 = arith.truncf %360 : vector<48x64xf32> to vector<48x64xbf16>
    %c1_112 = arith.constant 1 : index
    %c0_113 = arith.constant 0 : index
    %c0_114 = arith.constant 0 : index
    %362 = vector.load %arg8[%c1_112, %c0_113, %c0_114] : memref<2x64x32xbf16, #tpu.memory_space<vmem>>, vector<1x64x32xbf16>
    %363 = vector.shape_cast %362 : vector<1x64x32xbf16> to vector<64x32xbf16>
    %cst_115 = arith.constant dense<0.000000e+00> : vector<48x32xf32>
    %364 = tpu.matmul %361, %363, %cst_115 {dimension_numbers = #tpu.dot_dimension_numbers<[1], [0], [0], [1], [0, 0, 1, 1], [], []>} : vector<48x64xbf16>, vector<64x32xbf16>, vector<48x32xf32> -> vector<48x32xf32>
    %365 = arith.addf %291, %364 : vector<48x32xf32>
    %366 = vector.broadcast %201 : vector<1x32xf32> to vector<48x32xf32>
    %367 = arith.addf %365, %366 : vector<48x32xf32>
    %c0_116 = arith.constant 0 : index
    %c0_117 = arith.constant 0 : index
    %368 = vector.load %arg4[%c0_116, %c0_117] : memref<2x32xf32, #tpu.memory_space<vmem>>, vector<2x32xf32>
    %369 = vector.shape_cast %367 : vector<48x32xf32> to vector<2x24x32xf32>
    %370 = vector.extract_strided_slice %369 {offsets = [0, 0, 0], sizes = [2, 1, 32], strides = [1, 1, 1]} : vector<2x24x32xf32> to vector<2x1x32xf32>
    %371 = vector.shape_cast %370 : vector<2x1x32xf32> to vector<2x32xf32>
    %372 = vector.extract_strided_slice %368 {offsets = [0, 0], sizes = [1, 32], strides = [1, 1]} : vector<2x32xf32> to vector<1x32xf32>
    %373 = vector.extract_strided_slice %368 {offsets = [1, 0], sizes = [1, 32], strides = [1, 1]} : vector<2x32xf32> to vector<1x32xf32>
    %cst_118 = arith.constant dense<0.000000e+00> : vector<2xf32>
    %374 = vector.multi_reduction <add>, %371, %cst_118 [1] : vector<2x32xf32> to vector<2xf32>
    %375 = vector.shape_cast %374 : vector<2xf32> to vector<2x1xf32>
    %cst_119 = arith.constant 3.200000e+01 : f32
    %376 = vector.broadcast %cst_119 : f32 to vector<2x1xf32>
    %377 = arith.divf %375, %376 : vector<2x1xf32>
    %378 = vector.broadcast %377 : vector<2x1xf32> to vector<2x32xf32>
    %379 = arith.subf %371, %378 : vector<2x32xf32>
    %380 = arith.mulf %379, %379 : vector<2x32xf32>
    %cst_120 = arith.constant dense<0.000000e+00> : vector<2xf32>
    %381 = vector.multi_reduction <add>, %380, %cst_120 [1] : vector<2x32xf32> to vector<2xf32>
    %382 = vector.shape_cast %381 : vector<2xf32> to vector<2x1xf32>
    %cst_121 = arith.constant 3.200000e+01 : f32
    %383 = vector.broadcast %cst_121 : f32 to vector<2x1xf32>
    %384 = arith.divf %382, %383 : vector<2x1xf32>
    %385 = vector.broadcast %377 : vector<2x1xf32> to vector<2x32xf32>
    %386 = arith.subf %371, %385 : vector<2x32xf32>
    %cst_122 = arith.constant 9.99999997E-7 : f32
    %387 = vector.broadcast %cst_122 : f32 to vector<2x1xf32>
    %388 = arith.addf %384, %387 : vector<2x1xf32>
    %389 = math.rsqrt %388 : vector<2x1xf32>
    %390 = vector.broadcast %389 : vector<2x1xf32> to vector<2x32xf32>
    %391 = arith.mulf %386, %390 : vector<2x32xf32>
    %392 = vector.broadcast %372 : vector<1x32xf32> to vector<2x32xf32>
    %393 = arith.mulf %391, %392 : vector<2x32xf32>
    %394 = vector.broadcast %373 : vector<1x32xf32> to vector<2x32xf32>
    %395 = arith.addf %393, %394 : vector<2x32xf32>
    %c0_123 = arith.constant 0 : index
    %c0_124 = arith.constant 0 : index
    %c0_125 = arith.constant 0 : index
    %396 = vector.load %arg10[%c0_123, %c0_124, %c0_125] : memref<1x2x32xf32, #tpu.memory_space<vmem>>, vector<1x2x32xf32>
    %397 = vector.shape_cast %396 : vector<1x2x32xf32> to vector<2x32xf32>
    %398 = vector.shape_cast %395 : vector<2x32xf32> to vector<1x2x32xf32>
    tpu.vector_store %arg10[%c0_123, %c0_124, %c0_125], %398 {strides = array<i32>} : memref<1x2x32xf32, #tpu.memory_space<vmem>>, vector<1x2x32xf32>,
    return
  }
  func.func @transform_0(%arg0: i32) -> (i32, i32) {
    %c0_i32 = arith.constant 0 : i32
    %c0_i32_0 = arith.constant 0 : i32
    return %arg0, %c0_i32 : i32, i32
  }
  func.func @transform_1(%arg0: i32) -> (i32, i32) {
    %c0_i32 = arith.constant 0 : i32
    %c0_i32_0 = arith.constant 0 : i32
    %c0_i32_1 = arith.constant 0 : i32
    return %c0_i32, %c0_i32_0 : i32, i32
  }
  func.func @transform_2(%arg0: i32) -> (i32, i32) {
    %c0_i32 = arith.constant 0 : i32
    %c0_i32_0 = arith.constant 0 : i32
    %c0_i32_1 = arith.constant 0 : i32
    return %c0_i32, %c0_i32_0 : i32, i32
  }
  func.func @transform_3(%arg0: i32) -> (i32, i32) {
    %c0_i32 = arith.constant 0 : i32
    %c0_i32_0 = arith.constant 0 : i32
    %c0_i32_1 = arith.constant 0 : i32
    return %c0_i32, %c0_i32_0 : i32, i32
  }
  func.func @transform_4(%arg0: i32) -> (i32, i32, i32) {
    %c0_i32 = arith.constant 0 : i32
    %c0_i32_0 = arith.constant 0 : i32
    %c0_i32_1 = arith.constant 0 : i32
    %c0_i32_2 = arith.constant 0 : i32
    return %c0_i32, %c0_i32_0, %c0_i32_1 : i32, i32, i32
  }
  func.func @transform_5(%arg0: i32) -> (i32, i32, i32) {
    %c0_i32 = arith.constant 0 : i32
    %c0_i32_0 = arith.constant 0 : i32
    %c0_i32_1 = arith.constant 0 : i32
    %c0_i32_2 = arith.constant 0 : i32
    return %c0_i32, %c0_i32_0, %c0_i32_1 : i32, i32, i32
  }
  func.func @transform_6(%arg0: i32) -> (i32, i32, i32) {
    %c0_i32 = arith.constant 0 : i32
    %c0_i32_0 = arith.constant 0 : i32
    %c0_i32_1 = arith.constant 0 : i32
    %c0_i32_2 = arith.constant 0 : i32
    return %c0_i32, %c0_i32_0, %c0_i32_1 : i32, i32, i32
  }
  func.func @transform_7(%arg0: i32) -> (i32, i32, i32) {
    %c0_i32 = arith.constant 0 : i32
    %c0_i32_0 = arith.constant 0 : i32
    %c0_i32_1 = arith.constant 0 : i32
    %c0_i32_2 = arith.constant 0 : i32
    return %c0_i32, %c0_i32_0, %c0_i32_1 : i32, i32, i32
  }
  func.func @transform_8(%arg0: i32) -> (i32, i32, i32) {
    %c0_i32 = arith.constant 0 : i32
    %c0_i32_0 = arith.constant 0 : i32
    %c0_i32_1 = arith.constant 0 : i32
    %c0_i32_2 = arith.constant 0 : i32
    return %c0_i32, %c0_i32_0, %c0_i32_1 : i32, i32, i32
  }
  func.func @transform_9(%arg0: i32) -> (i32, i32, i32) {
    %c0_i32 = arith.constant 0 : i32
    %c0_i32_0 = arith.constant 0 : i32
    %c0_i32_1 = arith.constant 0 : i32
    return %arg0, %c0_i32, %c0_i32_0 : i32, i32, i32
  }
}

</mosaic_0001>

<bundles_post_ra>
// kernel: vitnet_wrapper_forward.1
= control target key start
LH: loop header
LB: loop body
LE: loop exit
PB: predicated region body
PF: predicated region fallthrough
CT: control target
= control target key end

     0   :  { %14 = vsyncpa [#allocation3], 0  ;;  %s5499_s0 = inlined_call_operand.vmem [shape: f32[96,48], index: 0, kind: input, shape index: {}]   ;;  %s5500_s1 = inlined_call_operand.vmem [shape: bf16[48,32], index: 1, kind: input, shape index: {}]   ;;  %s5501_s2 = inlined_call_operand.vmem [shape: f32[24,32], index: 2, kind: input, shape index: {}]   ;;  %s5502_s3 = inlined_call_operand.vmem [shape: f32[2,32], index: 3, kind: input, shape index: {}]   ;;  %s5503_s4 = inlined_call_operand.vmem [shape: bf16[2,32,96], index: 4, kind: input, shape index: {}]   ;;  %s5504_s5 = inlined_call_operand.vmem [shape: bf16[2,32,32], index: 5, kind: input, shape index: {}]   ;;  %s5505_s6 = inlined_call_operand.vmem [shape: bf16[2,32,64], index: 6, kind: input, shape index: {}]   ;;  %s5506_s7 = inlined_call_operand.vmem [shape: bf16[2,64,32], index: 7, kind: input, shape index: {}]   ;;  %s5507_s8 = inlined_call_operand.vmem [shape: f32[2,8,96], index: 8, kind: input, shape index: {}]   ;;  %s5508_s9 = inlined_call_operand.hbm [shape: f32[2,2,32], index: 9, kind: output, shape index: {}]  }
   0x1   :  { %16 = vsyncpa [#allocation3 + $0x1], 0  ;;  %s4456_s30 = smov 0   ;;  %s4458_s10 = smov 0  }
   0x2   :  { %s4460_s11 = smov 0   ;;  %s4462_s12 = smov 0  }
   0x3 LB: > { %s4477_s13 = sadd.s32 4294967295, %s4393_s12   ;;  %s3500_s14 = sadd.s32 4294967294, %s4393_s12   ;;  %s4393_s12 = sphi %s4462_s12, %s5517_s12   ;;  %s4389_s11 = sphi %s4460_s11, %s5516_s11   ;;  %s4385_s10 = sphi %s4458_s10, %s5515_s10   ;;  %s4381_s30 = sphi %s4456_s30, %s5514_s30  }
   0x4   : > { %s4481_s15 = sadd.s32 1, %s4393_s12   ;;  %s223_s16 = sadd.s32 1, %s4389_s11 }
   0x5   : > { %s220_s17 = ssub.s32 %s4393_s12, %s4481_s15  ;;  %p233_p0 = scmp.ne.s32.totalorder %s4389_s11, %s4385_s10 }
   0x6   : > { %p221_p1 = scmp.eq.s32.totalorder %s220_s17, 0  ;;  %p234_p2 = scmp.eq.s32.totalorder %s4477_s13, 1 }
   0x7   : > { %p239_p3 = scmp.ne.s32.totalorder %s4385_s10, %s4381_s30  ;;  %p240_p4 = scmp.eq.s32.totalorder %s3500_s14, 1 }
   0x8   : > { %s4492_s18 = scalar_select %p221_p1, %s4389_s11, %s223_s16  }
   0x9   : > { %p4494_p5 = por %p234_p2, %p233_p0  ;;  %p4498_p6 = por %p240_p4, %p239_p3 }
   0xa   : > { %p3503_p7 = scmp.ge.s32.totalorder %s4393_s12, 1  ;;  %p291_p8 = scmp.lt.s32.totalorder %s4393_s12, 3 }
   0xc   : > { %p292_p9 = pnand %p3503_p7, %p291_p8 }
   0xd   : > { %v4112_v0 = vld [vmem:[%s5500_s1] sm:$0xff] (!%p292_p9)   ;;  %v4395_v1 = vmov (!%p292_p9), 0.0   ;;  %v4113_v2 = vld [vmem:[%s5500_s1 + $0x8] sm:$0xff] (!%p292_p9)   ;;  %vm4396_vm0 = vmmov (!%p292_p9), 0   ;;  %s327_s25 = smul.u32 (!%p292_p9), 6, %s4477_s13  ;;  %v4114_v3 = vld [vmem:[%s5500_s1 + $0x10] sm:$0xff] (!%p292_p9)  }
   0xe   : > { %295 = sbr.rel (%p292_p9) target bundleno = 6944 (0x1b20), region = 56  ;;  %3727 = vmatprep.subr.bf16.mxu0 (!%p292_p9), %v4395_v1  ;;  %3745 = vmatprep.subr.bf16.mxu1 (!%p292_p9), %v4395_v1  ;;  %vm367_vm1 = vcmask (!%p292_p9), 392192   ;;  %v434_v13 = vld [vmem:[%s5501_s2] sm:$0xff] (!%p292_p9)  ;;  %v435_v15 = vld [vmem:[%s5501_s2 + $0x8] sm:$0xff] (!%p292_p9)  ;;  %vm448_vm2 = vcmask (!%p292_p9), 261120   ;;  %v436_v22 = vld [vmem:[%s5501_s2 + $0x10] sm:$0xff] (!%p292_p9) }
   0xf   : > { %3728 = vmatpush3.bf16.msra.mxu0 (!%p292_p9), %v4112_v0  ;;  %3733 = vmatprep.mubr.msk.bf16.mxu0 (!%p292_p9), %vm4396_vm0, %v4395_v1  ;;  %p328_p10 = scmp.lt.s32.totalorder (!%p292_p9), %s327_s25, 11  ;;  %vm647_vm3 = vcmask (!%p292_p9), 130048   ;;  %s4397_s17 = smov (!%p292_p9), 96   ;;  %vm786_vm5 = vcmask (!%p292_p9), 195584   ;;  %vm868_vm6 = vcmask (!%p292_p9), 1043456   ;;  %vm1833_vm10 = vcmask (!%p292_p9), 523264  }
  0x10   : > { %3729 = vmatprep.subr.bf16.mxu0 (!%p292_p9), %v4395_v1  ;;  %3749 = vmatprep.mubr.msk.bf16.mxu1 (!%p292_p9), %vm4396_vm0, %v4395_v1  ;;  %s4399_s21 = smov (!%p292_p9), 64   ;;  %s4400_s22 = smov (!%p292_p9), 80  }
  0x11   : > { %s4401_s23 = smov (!%p292_p9), 112   ;;  %s4402_s24 = smov (!%p292_p9), 48  }
  0x12   : > { %s5509_s29 = smov (!%p292_p9), 16  }
  0x13   : > { %3730 = vmatpush3.bf16.msra.mxu0 (!%p292_p9), %v4113_v2 }
  0x14   : > { %3731 = vmatprep.subr.bf16.mxu0 (!%p292_p9), %v4395_v1 }
  0x15   : > { %s5519_s25 = smov (!%p328_p10, %s327_s25), 11 }
  0x16   : > { %s3505_s28 = sshll.u32 %s5519_s25, 3 }
  0x17   : > { %s331_s16 = scalar_lea.vmem %s5499_s0, %s3505_s28  ;;  %3732 = vmatpush3.bf16.msra.mxu0 %v4114_v3  ;;  %s3610_s28 = sshll.u32 %s4477_s13, 5 }
  0x18   : > { %v334_v4 = vld [vmem:[%s331_s16] sm:$0xff]  ;;  %v335_v5 = vld [vmem:[%s331_s16 + $0x8] sm:$0xff]  ;;  %v336_v7 = vld [vmem:[%s331_s16 + $0x10] sm:$0xff] }
  0x19   : > { %v340_v6 = vpack.c.bf16 %v335_v5, %v334_v4  ;;  %v337_v8 = vld [vmem:[%s331_s16 + $0x18] sm:$0xff]  ;;  %v338_v10 = vld [vmem:[%s331_s16 + $0x20] sm:$0xff]  ;;  %v339_v11 = vld [vmem:[%s331_s16 + $0x28] sm:$0xff]  ;;  %s324_s16 = sand.u32 1, %s4385_s10  }
  0x1a   : > { %v341_v9 = vpack.c.bf16 %v337_v8, %v336_v7  ;;  %v342_v12 = vpack.c.bf16 %v339_v11, %v338_v10  ;;  %v4115_v7 = vld [vmem:[%s5503_s4] sm:$0xff]   ;;  %v4116_v8 = vld [vmem:[%s5503_s4 + $0x8] sm:$0xff]   ;;  %s3504_s27 = sshll.u32 %s324_s16, 1  ;;  %s3428_s14 = scalar_lea.sflag [#allocation3], %s324_s16 }
  0x1b   : > { %3734 = vmatmul.mubr.msk.bf16.vlgmr.msra.gmra.mrb[0].mxu0 %vm367_vm1, %v340_v6  ;;  %3746 = vmatpush3.bf16.msra.mxu1 %v4115_v7 }
  0x1c   : > { %3737 = vmatprep.mubr.msk.bf16.mxu0 %vm4396_vm0, %v4395_v1  ;;  %3747 = vmatprep.subr.bf16.mxu1 %v4395_v1 }
  0x1f   : > { %3748 = vmatpush3.bf16.msra.mxu1 %v4116_v8 }
  0x23   : > { %3738 = vmatmul.mubr.msk.bf16.gmra.mrb[4].mxu0 %vm367_vm1, %v341_v9 }
  0x24   : > { %3741 = vmatprep.mubr.msk.bf16.mxu0 %vm4396_vm0, %v4395_v1 }
  0x2b   : > { %3742 = vmatmul.mubr.msk.bf16.gmra.mrb[8].mxu0 %vm367_vm1, %v342_v12 }
  0xee   : > { %v411_v14 = vpop.f32.mrb[0].mxu0 }
  0xef   : > { %v4535_v16 = vadd.f32 %v434_v13, %v411_v14  ;;  %v3735_v17 = vpop.f32.mrb[1].mxu0 }
  0xf0   : > { %v414_v18 = vpop.f32.mrb[2].mxu0 }
  0xf1   : > { %v4537_v19 = vadd.f32 %v435_v15, %v414_v18  ;;  %v3736_v20 = vpop.f32.mrb[3].mxu0  ;;  %v449_v21 = vsel %vm448_vm2, %v4535_v16, 0.0 }
  0xf2   : > { %450 = vadd.xlane.f32.xlu0 %v449_v21 }
  0xf3   : > { %v452_v23 = vsel %vm448_vm2, %v4537_v19, 0.0 }
  0xf6   : > { %453 = vadd.xlane.f32.xlu0 %v452_v23  ;;  %v419_v24 = vpop.f32.mrb[4].mxu0 }
  0xf7   : > { %v4546_v25 = vadd.f32 %v436_v22, %v419_v24  ;;  %v3739_v26 = vpop.f32.mrb[5].mxu0 }
  0xf8   : > { %v422_v27 = vpop.f32.mrb[6].mxu0  ;;  %v4610_v26 = vld [vmem:[%s5507_s8] sm:$0xff] }
  0xf9   : > { %v4548_v28 = vadd.f32 %v434_v13, %v422_v27  ;;  %v3740_v29 = vpop.f32.mrb[7].mxu0  ;;  %v455_v30 = vsel %vm448_vm2, %v4546_v25, 0.0  ;;  %v443_v13 = vlaneseq }
  0xfa   : > { %456 = vadd.xlane.f32.xlu1 %v455_v30 }
  0xfb   : > { %v458_v31 = vsel %vm448_vm2, %v4548_v28, 0.0  ;;  %v4602_v18 = vshrl.u32 %v443_v13, 7 }
  0xfd   : > { %v4605_v23 = vsub.s32 0, %v4602_v18 }
  0xfe   : > { %459 = vadd.xlane.f32.xlu1 %v458_v31  ;;  %v427_v32 = vpop.f32.mrb[8].mxu0 }
  0xff   : > { %v4554_v33 = vadd.f32 %v435_v15, %v427_v32  ;;  %v3743_v34 = vpop.f32.mrb[9].mxu0  ;;  %v531_v32 = vrot.slane %v4610_v26, %v4605_v23 }
 0x100   : > { %v430_v35 = vpop.f32.mrb[10].mxu0  ;;  %v4615_v34 = vsub.s32 1, %v4602_v18 }
 0x101   : > { %v4556_v36 = vadd.f32 %v436_v22, %v430_v35  ;;  %v461_v37 = vsel %vm448_vm2, %v4554_v33, 0.0  ;;  %v3744_v38 = vpop.f32.mrb[11].mxu0 }
 0x102   : > { %462 = vadd.xlane.f32.xlu0 %v461_v37 }
 0x103   : > { %v464_v39 = vsel %vm448_vm2, %v4556_v36, 0.0 }
 0x104   : > { %465 = vadd.xlane.f32.xlu1 %v464_v39 }
 0x17f   : > { %v451_v40 = vpop.xlane.xlu0 %450 }
 0x180   : > { %v468_v41 = vmul.f32 0.03125, %v451_v40 }
 0x182   : > { %v474_v42 = vsub.f32 %v4535_v16, %v468_v41 }
 0x183   : > { %v454_v43 = vpop.xlane.xlu0 %453 }
 0x184   : > { %v469_v44 = vmul.f32 0.03125, %v454_v43  ;;  %v480_v45 = vmul.f32 %v474_v42, %v474_v42 }
 0x186   : > { %v4564_v46 = vsub.f32 %v4537_v19, %v469_v44  ;;  %v486_v47 = vsel %vm448_vm2, %v480_v45, 0.0  ;;  %v541_v44 = vrot.slane %v4610_v26, %v4615_v34 }
 0x187   : > { %v457_v48 = vpop.xlane.xlu1 %456  ;;  %487 = vadd.xlane.f32.xlu0 %v486_v47 }
 0x188   : > { %v470_v49 = vmul.f32 0.03125, %v457_v48  ;;  %v481_v50 = vmul.f32 %v4564_v46, %v4564_v46 }
 0x18a   : > { %v4570_v51 = vsub.f32 %v4546_v25, %v470_v49  ;;  %v489_v52 = vsel %vm448_vm2, %v481_v50, 0.0 }
 0x18b   : > { %v460_v53 = vpop.xlane.xlu1 %459  ;;  %490 = vadd.xlane.f32.xlu1 %v489_v52 }
 0x18c   : > { %v471_v54 = vmul.f32 0.03125, %v460_v53  ;;  %v482_v55 = vmul.f32 %v4570_v51, %v4570_v51 }
 0x18e   : > { %v4576_v56 = vsub.f32 %v4548_v28, %v471_v54  ;;  %v492_v57 = vsel %vm448_vm2, %v482_v55, 0.0 }
 0x18f   : > { %493 = vadd.xlane.f32.xlu0 %v492_v57  ;;  %v463_v58 = vpop.xlane.xlu0 %462 }
 0x190   : > { %v472_v59 = vmul.f32 0.03125, %v463_v58  ;;  %v483_v60 = vmul.f32 %v4576_v56, %v4576_v56 }
 0x191   : > { %v466_v61 = vpop.xlane.xlu1 %465 }
 0x192   : > { %v4582_v62 = vsub.f32 %v4554_v33, %v472_v59  ;;  %v473_v63 = vmul.f32 0.03125, %v466_v61  ;;  %v495_v0 = vsel %vm448_vm2, %v483_v60, 0.0 }
 0x193   : > { %496 = vadd.xlane.f32.xlu1 %v495_v0 }
 0x194   : > { %v4586_v2 = vsub.f32 %v4556_v36, %v473_v63  ;;  %v484_v3 = vmul.f32 %v4582_v62, %v4582_v62 }
 0x196   : > { %v498_v4 = vsel %vm448_vm2, %v484_v3, 0.0  ;;  %v485_v5 = vmul.f32 %v4586_v2, %v4586_v2 }
 0x197   : > { %499 = vadd.xlane.f32.xlu0 %v498_v4 }
 0x198   : > { %v501_v6 = vsel %vm448_vm2, %v485_v5, 0.0 }
 0x199   : > { %502 = vadd.xlane.f32.xlu1 %v501_v6  ;;  %v557_v6 = vsub.s32 2, %v4602_v18 }
 0x214   : > { %v488_v9 = vpop.xlane.xlu0 %487 }
 0x215   : > { %v504_v10 = vmul.f32 0.03125, %v488_v9 }
 0x217   : > { %v510_v11 = vadd.f32 1e-06, %v504_v10 }
 0x218   : > { %v491_v12 = vpop.xlane.xlu1 %490 }
 0x219   : > { %4135 = vrsqrt.f32 %v510_v11  ;;  %v505_v14 = vmul.f32 0.03125, %v491_v12 }
 0x21b   : > { %v511_v15 = vadd.f32 1e-06, %v505_v14 }
 0x21c   : > { %v494_v17 = vpop.xlane.xlu0 %493 }
 0x21d   : > { %4137 = vrsqrt.f32 %v511_v15  ;;  %v506_v20 = vmul.f32 0.03125, %v494_v17 }
 0x21f   : > { %v512_v21 = vadd.f32 1e-06, %v506_v20 }
 0x220   : > { %v497_v22 = vpop.xlane.xlu1 %496 }
 0x221   : > { %4139 = vrsqrt.f32 %v512_v21  ;;  %v507_v24 = vmul.f32 0.03125, %v497_v22 }
 0x223   : > { %v4136_v27 = vpop.eup %4135  ;;  %v513_v29 = vadd.f32 1e-06, %v507_v24 }
 0x224   : > { %v500_v30 = vpop.xlane.xlu0 %499  ;;  %v522_v31 = vmul.f32 %v4136_v27, %v474_v42 }
 0x225   : > { %4141 = vrsqrt.f32 %v513_v29  ;;  %v508_v35 = vmul.f32 0.03125, %v500_v30 }
 0x226   : > { %v503_v37 = vpop.xlane.xlu1 %502  ;;  %v532_v43 = vmul.f32 %v531_v32, %v522_v31 }
 0x227   : > { %v4138_v38 = vpop.eup %4137  ;;  %v514_v39 = vadd.f32 1e-06, %v508_v35  ;;  %v509_v40 = vmul.f32 0.03125, %v503_v37 }
 0x228   : > { %v523_v41 = vmul.f32 %v4138_v38, %v4564_v46  ;;  %v542_v48 = vadd.f32 %v541_v44, %v532_v43 }
 0x229   : > { %4143 = vrsqrt.f32 %v514_v39  ;;  %v515_v42 = vadd.f32 1e-06, %v509_v40 }
 0x22a   : > { %v533_v45 = vmul.f32 %v531_v32, %v523_v41 }
 0x22b   : > { %v4140_v47 = vpop.eup %4139  ;;  %4145 = vrsqrt.f32 %v515_v42 }
 0x22c   : > { %v543_v49 = vadd.f32 %v541_v44, %v533_v45  ;;  %v524_v50 = vmul.f32 %v4140_v47, %v4570_v51 }
 0x22e   : > { %v548_v52 = vpack.c.bf16 %v543_v49, %v542_v48  ;;  %v534_v46 = vmul.f32 %v531_v32, %v524_v50  ;;  %v444_v48 = vand.u32 127, %v443_v13  ;;  %v4398_v49 = vmov -1e+30  }
 0x22f   : > { %v4142_v53 = vpop.eup %4141 }
 0x230   : > { %3750 = vmatmul.mubr.msk.bf16.vlgmr.msra.gmra.mrb[0].mxu1 %vm448_vm2, %v548_v52  ;;  %v525_v54 = vmul.f32 %v4142_v53, %v4576_v56  ;;  %v544_v58 = vadd.f32 %v541_v44, %v534_v46  ;;  %vm445_vm4 = vcmp.lt.s32.totalorder %v444_v48, 17 }
 0x231   : > { %3753 = vmatprep.mubr.msk.bf16.mxu1 %vm4396_vm0, %v4395_v1  ;;  %v4668_v50 = vsel %vm445_vm4, 0.0, %v4398_v49  ;;  %vm3376_vm4 = vcmask 1041409  }
 0x232   : > { %v535_v55 = vmul.f32 %v531_v32, %v525_v54 }
 0x233   : > { %v4144_v57 = vpop.eup %4143 }
 0x234   : > { %v545_v59 = vadd.f32 %v541_v44, %v535_v55  ;;  %v526_v60 = vmul.f32 %v4144_v57, %v4582_v62  ;;  %v558_v62 = vrot.slane %v4610_v26, %v557_v6 }
 0x235   : > { %v4146_v61 = vpop.eup %4145 }
 0x236   : > { %v549_v63 = vpack.c.bf16 %v545_v59, %v544_v58  ;;  %v527_v51 = vmul.f32 %v4146_v61, %v4586_v2  ;;  %v536_v0 = vmul.f32 %v531_v32, %v526_v60 }
 0x238   : > { %3754 = vmatmul.mubr.msk.bf16.gmra.mrb[4].mxu1 %vm448_vm2, %v549_v63  ;;  %v537_v3 = vmul.f32 %v531_v32, %v527_v51  ;;  %v546_v4 = vadd.f32 %v541_v44, %v536_v0 }
 0x239   : > { %3757 = vmatprep.mubr.msk.bf16.mxu1 %vm4396_vm0, %v4395_v1 }
 0x23a   : > { %v547_v56 = vadd.f32 %v541_v44, %v537_v3 }
 0x23c   : > { %v550_v5 = vpack.c.bf16 %v547_v56, %v546_v4 }
 0x240   : > { %3758 = vmatmul.mubr.msk.bf16.gmra.mrb[8].mxu1 %vm448_vm2, %v550_v5 }
 0x303   : > { %v614_v7 = vpop.f32.mrb[0].mxu1 }
 0x304   : > { %v3751_v2 = vpop.f32.mrb[1].mxu1  ;;  %v615_v9 = vadd.f32 %v614_v7, %v558_v62 }
 0x305   : > { %v617_v8 = vpop.f32.mrb[2].mxu1 }
 0x306   : > { %v618_v10 = vadd.f32 %v617_v8, %v558_v62  ;;  %v3752_v11 = vpop.f32.mrb[3].mxu1 }
 0x308   : > { %v4635_v12 = vpack.c.bf16 %v618_v10, %v615_v9 }
 0x30a   : > { %643 = vrot.lane.b32.xlu0 %v4635_v12, %s4397_s17  ;;  %3765 = vmatprep.mubr.msk.bf16.mxu1 %vm647_vm3, %v4635_v12 }
 0x30b   : > { %v622_v14 = vpop.f32.mrb[4].mxu1 }
 0x30c   : > { %v623_v15 = vadd.f32 %v622_v14, %v558_v62  ;;  %v3755_v17 = vpop.f32.mrb[5].mxu1 }
 0x30d   : > { %v625_v20 = vpop.f32.mrb[6].mxu1 }
 0x30e   : > { %v4641_v21 = vpack.c.bf16 %v623_v15, %v623_v15  ;;  %v3756_v22 = vpop.f32.mrb[7].mxu1  ;;  %v626_v27 = vadd.f32 %v625_v20, %v558_v62 }
 0x310   : > { %645 = vrot.lane.b32.xlu1 %v4641_v21, %s4397_s17 }
 0x313   : > { %v630_v24 = vpop.f32.mrb[8].mxu1 }
 0x314   : > { %v631_v29 = vadd.f32 %v630_v24, %v558_v62  ;;  %v3759_v30 = vpop.f32.mrb[9].mxu1 }
 0x315   : > { %v633_v31 = vpop.f32.mrb[10].mxu1 }
 0x316   : > { %v4645_v32 = vpack.c.bf16 %v631_v29, %v626_v27  ;;  %v634_v35 = vadd.f32 %v633_v31, %v558_v62  ;;  %v3760_v37 = vpop.f32.mrb[11].mxu1 }
 0x318   : > { %710 = vrot.lane.b32.xlu1 %v4645_v32, %s4397_s17  ;;  %3773 = vmatprep.mubr.msk.bf16.mxu0 %vm647_vm3, %v4645_v32  ;;  %v4651_v38 = vpack.c.bf16 %v634_v35, %v634_v35 }
 0x31c   : > { %712 = vrot.lane.b32.xlu1 %v4651_v38, %s4397_s17 }
 0x37c   : > { %v644_v39 = vpop.permute.xlu0 %643 }
 0x37d   : > { %4009 = vmatprep.subr.msk.bf16.mxu1 %vm647_vm3, %v644_v39  ;;  %v655_v40 = vsel %vm647_vm3, %v644_v39, 0 }
 0x37e   : > { %3762 = vmatpush3.bf16.xpose.msra.mxu1 %v655_v40 }
 0x382   : > { %v646_v41 = vpop.permute.xlu1 %645 }
 0x383   : > { %4010 = vmatprep.subr.msk.bf16.mxu1 %vm647_vm3, %v646_v41  ;;  %v658_v43 = vsel %vm647_vm3, %v646_v41, 0 }
 0x386   : > { %3764 = vmatpush3.bf16.xpose.msra.mxu1 %v658_v43 }
 0x38a   : > { %v711_v44 = vpop.permute.xlu1 %710 }
 0x38b   : > { %4011 = vmatprep.subr.msk.bf16.mxu0 %vm647_vm3, %v711_v44  ;;  %v721_v42 = vsel %vm647_vm3, %v711_v44, 0 }
 0x38c   : > { %3770 = vmatpush3.bf16.xpose.msra.mxu0 %v721_v42 }
 0x38d   : > { %3766 = vmatmul.mubr.msk.bf16.vlgmr.msra.gmra.mrb[12].mxu1 %vm647_vm3, %v4641_v21 }
 0x38e   : > { %v713_v45 = vpop.permute.xlu1 %712 }
 0x38f   : > { %4012 = vmatprep.subr.msk.bf16.mxu0 %vm647_vm3, %v713_v45  ;;  %v724_v47 = vsel %vm647_vm3, %v713_v45, 0 }
 0x394   : > { %3772 = vmatpush3.bf16.xpose.msra.mxu0 %v724_v47 }
 0x39b   : > { %3774 = vmatmul.mubr.msk.bf16.vlgmr.msra.gmra.mrb[12].mxu0 %vm647_vm3, %v4651_v38 }
 0x460   : > { %v3767_v52 = vpop.f32.mrb[12].mxu1 }
 0x461   : > { %v776_v53 = vmul.f32 0.25, %v3767_v52  ;;  %v694_v54 = vpop.f32.mrb[13].mxu1 }
 0x462   : > { %v774_v46 = vmul.f32 0.25, %v694_v54  ;;  %v3768_v55 = vpop.f32.mrb[14].mxu1 }
 0x463   : > { %v697_v57 = vpop.f32.mrb[15].mxu1  ;;  %v782_v58 = vadd.f32 %v776_v53, %v4668_v50 }
 0x464   : > { %v775_v59 = vmul.f32 0.25, %v697_v57  ;;  %v780_v61 = vadd.f32 %v774_v46, %v4668_v50 }
 0x465   : > { %v793_v60 = vsel %vm786_vm5, %v782_v58, -inf }
 0x466   : > { %794 = vmax.xlane.f32.xlu0 %v793_v60  ;;  %v781_v13 = vadd.f32 %v775_v59, %v4668_v50  ;;  %v787_v51 = vsel %vm786_vm5, %v780_v61, -inf }
 0x468   : > { %v790_v63 = vsel %vm786_vm5, %v781_v13, -inf }
 0x469   : > { %791 = vmax.xlane.f32.xlu1 %v790_v63 }
 0x46a   : > { %788 = vmax.xlane.f32.xlu0 %v787_v51 }
 0x46e   : > { %v3775_v0 = vpop.f32.mrb[12].mxu0 }
 0x46f   : > { %v779_v3 = vmul.f32 0.25, %v3775_v0  ;;  %v760_v56 = vpop.f32.mrb[13].mxu0 }
 0x470   : > { %v777_v4 = vmul.f32 0.25, %v760_v56  ;;  %v3776_v5 = vpop.f32.mrb[14].mxu0 }
 0x471   : > { %v763_v62 = vpop.f32.mrb[15].mxu0  ;;  %v785_v7 = vadd.f32 %v779_v3, %v4668_v50 }
 0x472   : > { %v778_v2 = vmul.f32 0.25, %v763_v62  ;;  %v783_v8 = vadd.f32 %v777_v4, %v4668_v50 }
 0x473   : > { %v802_v9 = vsel %vm786_vm5, %v785_v7, -inf }
 0x474   : > { %803 = vmax.xlane.f32.xlu1 %v802_v9  ;;  %v796_v10 = vsel %vm786_vm5, %v783_v8, -inf  ;;  %v784_v11 = vadd.f32 %v778_v2, %v4668_v50 }
 0x475   : > { %797 = vmax.xlane.f32.xlu0 %v796_v10 }
 0x476   : > { %v799_v14 = vsel %vm786_vm5, %v784_v11, -inf }
 0x479   : > { %800 = vmax.xlane.f32.xlu0 %v799_v14 }
 0x485   : > { %859 = vrot.lane.b32.xlu1 %v4641_v21, %s4399_s21 }
 0x489   : > { %920 = vrot.lane.b32.xlu1 %v4645_v32, %s4399_s21 }
 0x48d   : > { %986 = vrot.lane.b32.xlu1 %v4635_v12, %s4400_s22 }
 0x48f   : > { %857 = vrot.lane.b32.xlu0 %v4635_v12, %s4399_s21 }
 0x4f3   : > { %v795_v15 = vpop.xlane.xlu0 %794 }
 0x4f4   : > { %v807_v17 = vsub.f32 %v782_v58, %v795_v15 }
 0x4f6   : > { %v815_v20 = vmul.f32 1.442695, %v807_v17  ;;  %v792_v22 = vpop.xlane.xlu1 %791 }
 0x4f7   : > { %v806_v24 = vsub.f32 %v781_v13, %v792_v22  ;;  %v789_v27 = vpop.xlane.xlu0 %788 }
 0x4f8   : > { %4147 = vpow2.f32 %v815_v20  ;;  %v805_v29 = vsub.f32 %v780_v61, %v789_v27 }
 0x4f9   : > { %v813_v30 = vmul.f32 1.442695, %v806_v24 }
 0x4fa   : > { %v811_v31 = vmul.f32 1.442695, %v805_v29 }
 0x4fb   : > { %4149 = vpow2.f32 %v813_v30 }
 0x4fc   : > { %4151 = vpow2.f32 %v811_v31 }
 0x501   : > { %v804_v35 = vpop.xlane.xlu1 %803 }
 0x502   : > { %v4690_v37 = vpop.eup %4147  ;;  %v798_v39 = vpop.xlane.xlu0 %797  ;;  %v810_v46 = vsub.f32 %v785_v7, %v804_v35 }
 0x503   : > { %v829_v40 = vsel %vm786_vm5, %v4690_v37, 0.0  ;;  %v808_v58 = vsub.f32 %v783_v8, %v798_v39 }
 0x504   : > { %830 = vadd.xlane.f32.xlu0 %v829_v40  ;;  %v821_v57 = vmul.f32 1.442695, %v810_v46 }
 0x505   : > { %v4150_v41 = vpop.eup %4149  ;;  %v860_v43 = vpop.permute.xlu1 %859  ;;  %v817_v60 = vmul.f32 1.442695, %v808_v58 }
 0x506   : > { %v4152_v44 = vpop.eup %4151  ;;  %v801_v42 = vpop.xlane.xlu0 %800  ;;  %v826_v45 = vsel %vm786_vm5, %v4150_v41, 0.0  ;;  %v870_v54 = vsel %vm868_vm6, %v860_v43, 0  ;;  %4153 = vpow2.f32 %v821_v57 }
 0x507   : > { %827 = vadd.xlane.f32.xlu1 %v826_v45  ;;  %v823_v47 = vsel %vm786_vm5, %v4152_v44, 0.0  ;;  %v809_v55 = vsub.f32 %v784_v11, %v801_v42 }
 0x508   : > { %824 = vadd.xlane.f32.xlu0 %v823_v47 }
 0x509   : > { %v921_v48 = vpop.permute.xlu1 %920  ;;  %v819_v59 = vmul.f32 1.442695, %v809_v55 }
 0x50a   : > { %v858_v49 = vpop.permute.xlu0 %857 }
 0x50b   : > { %3777 = vmatprep.subr.bf16.mxu0 %v858_v49  ;;  %4155 = vpow2.f32 %v819_v59 }
 0x50c   : > { %3778 = vmatpush3.bf16.msra.mxu0 %v858_v49  ;;  %4157 = vpow2.f32 %v817_v60 }
 0x50d   : > { %v987_v52 = vpop.permute.xlu1 %986  ;;  %4013 = vmatprep.subr.msk.bf16.mxu0 %vm868_vm6, %v860_v43 }
 0x50e   : > { %4015 = vmatprep.subr.msk.bf16.mxu1 %vm647_vm3, %v987_v52  ;;  %v997_v53 = vsel %vm647_vm3, %v987_v52, 0 }
 0x50f   : > { %3794 = vmatpush3.bf16.xpose.msra.mxu1 %v997_v53 }
 0x510   : > { %3780 = vmatpush3.bf16.msra.mxu0 %v870_v54  ;;  %v4154_v61 = vpop.eup %4153 }
 0x511   : > { %3785 = vmatprep.subr.bf16.mxu0 %v921_v48  ;;  %v838_v63 = vsel %vm786_vm5, %v4154_v61, 0.0 }
 0x515   : > { %v4156_v13 = vpop.eup %4155 }
 0x516   : > { %v4158_v51 = vpop.eup %4157  ;;  %v835_v0 = vsel %vm786_vm5, %v4156_v13, 0.0 }
 0x517   : > { %v832_v3 = vsel %vm786_vm5, %v4158_v51, 0.0 }
 0x518   : > { %988 = vrot.lane.b32.xlu1 %v4641_v21, %s4400_s22 }
 0x51e   : > { %922 = vrot.lane.b32.xlu0 %v4651_v38, %s4399_s21 }
 0x53c   : > { %839 = vadd.xlane.f32.xlu1 %v838_v63 }
 0x53d   : > { %836 = vadd.xlane.f32.xlu0 %v835_v0 }
 0x540   : > { %833 = vadd.xlane.f32.xlu1 %v832_v3 }
 0x551   : > { %982 = vrot.lane.b32.xlu1 %v4635_v12, %s4401_s23 }
 0x553   : > { %1054 = vrot.lane.b32.xlu0 %v4645_v32, %s4400_s22 }
 0x555   : > { %1056 = vrot.lane.b32.xlu1 %v4651_v38, %s4400_s22 }
 0x557   : > { %984 = vrot.lane.b32.xlu0 %v4641_v21, %s4401_s23 }
 0x559   : > { %1052 = vrot.lane.b32.xlu1 %v4651_v38, %s4401_s23 }
 0x55b   : > { %1050 = vrot.lane.b32.xlu0 %v4645_v32, %s4401_s23 }
 0x591   : > { %v831_v56 = vpop.xlane.xlu0 %830 }
 0x592   : > { %4159 = vrcp.f32 %v831_v56 }
 0x594   : > { %v828_v4 = vpop.xlane.xlu1 %827 }
 0x595   : > { %4161 = vrcp.f32 %v828_v4  ;;  %v825_v5 = vpop.xlane.xlu0 %824 }
 0x596   : > { %4163 = vrcp.f32 %v825_v5 }
 0x598   : > { %v989_v62 = vpop.permute.xlu1 %988 }
 0x599   : > { %4016 = vmatprep.subr.msk.bf16.mxu1 %vm647_vm3, %v989_v62  ;;  %v1000_v7 = vsel %vm647_vm3, %v989_v62, 0  ;;  %v923_v20 = vpop.permute.xlu0 %922 }
 0x59a   : > { %3796 = vmatpush3.bf16.xpose.msra.mxu1 %v1000_v7  ;;  %v932_v22 = vsel %vm868_vm6, %v923_v20, 0 }
 0x59c   : > { %v4160_v2 = vpop.eup %4159 }
 0x59d   : > { %v849_v11 = vmul.f32 %v4160_v2, %v4690_v37 }
 0x59f   : > { %v4162_v8 = vpop.eup %4161  ;;  %v854_v17 = vpack.c.bf16 %v849_v11, %v849_v11 }
 0x5a0   : > { %v4164_v9 = vpop.eup %4163  ;;  %v848_v10 = vmul.f32 %v4162_v8, %v4150_v41 }
 0x5a1   : > { %v847_v14 = vmul.f32 %v4164_v9, %v4152_v44 }
 0x5a3   : > { %v853_v15 = vpack.c.bf16 %v848_v10, %v847_v14 }
 0x5a5   : > { %3781 = vmatprep.mubr.msk.bf16.mxu0 %vm786_vm5, %v853_v15 }
 0x5a6   : > { %3782 = vmatmul.mubr.msk.bf16.vlgmr.msra.gmra.mrb[16].mxu0 %vm786_vm5, %v854_v17 }
 0x5a7   : > { %3786 = vmatpush3.bf16.msra.mxu0 %v921_v48 }
 0x5a8   : > { %4014 = vmatprep.subr.msk.bf16.mxu0 %vm868_vm6, %v923_v20 }
 0x5ab   : > { %3788 = vmatpush3.bf16.msra.mxu0 %v932_v22 }
 0x5c9   : > { %v840_v24 = vpop.xlane.xlu1 %839 }
 0x5ca   : > { %v837_v27 = vpop.xlane.xlu0 %836  ;;  %4165 = vrcp.f32 %v840_v24 }
 0x5cb   : > { %4167 = vrcp.f32 %v837_v27 }
 0x5cd   : > { %v834_v29 = vpop.xlane.xlu1 %833 }
 0x5ce   : > { %4169 = vrcp.f32 %v834_v29  ;;  %v1055_v30 = vpop.permute.xlu0 %1054 }
 0x5cf   : > { %4017 = vmatprep.subr.msk.bf16.mxu0 %vm647_vm3, %v1055_v30  ;;  %v1065_v48 = vsel %vm647_vm3, %v1055_v30, 0 }
 0x5d1   : > { %v983_v31 = vpop.permute.xlu1 %982 }
 0x5d2   : > { %3797 = vmatprep.mubr.msk.bf16.mxu1 %vm647_vm3, %v983_v31  ;;  %v985_v35 = vpop.permute.xlu0 %984 }
 0x5d3   : > { %3798 = vmatmul.mubr.msk.bf16.vlgmr.msra.gmra.mrb[16].mxu1 %vm647_vm3, %v985_v35 }
 0x5d4   : > { %v4166_v37 = vpop.eup %4165 }
 0x5d5   : > { %v4168_v39 = vpop.eup %4167  ;;  %v852_v41 = vmul.f32 %v4166_v37, %v4154_v61  ;;  %v1057_v49 = vpop.permute.xlu1 %1056 }
 0x5d6   : > { %v851_v44 = vmul.f32 %v4168_v39, %v4156_v13  ;;  %v1051_v47 = vpop.permute.xlu0 %1050  ;;  %v1068_v52 = vsel %vm647_vm3, %v1057_v49, 0 }
 0x5d7   : > { %v856_v45 = vpack.c.bf16 %v852_v41, %v852_v41 }
 0x5d8   : > { %v4170_v40 = vpop.eup %4169 }
 0x5d9   : > { %v850_v43 = vmul.f32 %v4170_v40, %v4158_v51  ;;  %v1053_v53 = vpop.permute.xlu1 %1052 }
 0x5db   : > { %v855_v42 = vpack.c.bf16 %v851_v44, %v850_v43 }
 0x5dd   : > { %3789 = vmatprep.mubr.msk.bf16.mxu0 %vm786_vm5, %v855_v42 }
 0x5de   : > { %3790 = vmatmul.mubr.msk.bf16.vlgmr.msra.gmra.mrb[20].mxu0 %vm786_vm5, %v856_v45 }
 0x5df   : > { %3802 = vmatpush3.bf16.xpose.msra.mxu0 %v1065_v48  ;;  %3805 = vmatprep.mubr.msk.bf16.mxu0 %vm647_vm3, %v1051_v47 }
 0x5e0   : > { %4018 = vmatprep.subr.msk.bf16.mxu0 %vm647_vm3, %v1057_v49 }
 0x5e7   : > { %3804 = vmatpush3.bf16.xpose.msra.mxu0 %v1068_v52 }
 0x5ee   : > { %3806 = vmatmul.mubr.msk.bf16.vlgmr.msra.gmra.mrb[24].mxu0 %vm647_vm3, %v1053_v53 }
 0x679   : > { %v4736_v54 = vpop.f32.mrb[16].mxu0 }
 0x67a   : > { %v4738_v46 = vpop.f32.mrb[17].mxu0 }
 0x67b   : > { %v3784_v55 = vpop.f32.mrb[18].mxu0 }
 0x67c   : > { %v4740_v57 = vpop.f32.mrb[19].mxu0 }
 0x6a6   : > { %v3799_v58 = vpop.f32.mrb[16].mxu1 }
 0x6a7   : > { %v1036_v59 = vpop.f32.mrb[17].mxu1  ;;  %v1120_v60 = vmul.f32 0.25, %v3799_v58 }
 0x6a8   : > { %v1118_v61 = vmul.f32 0.25, %v1036_v59  ;;  %v3800_v13 = vpop.f32.mrb[18].mxu1 }
 0x6a9   : > { %v1039_v63 = vpop.f32.mrb[19].mxu1  ;;  %v1126_v4 = vadd.f32 %v1120_v60, %v4668_v50 }
 0x6aa   : > { %v1119_v51 = vmul.f32 0.25, %v1039_v63  ;;  %v1124_v0 = vadd.f32 %v1118_v61, %v4668_v50 }
 0x6ab   : > { %v1136_v62 = vsel %vm786_vm5, %v1126_v4, -inf }
 0x6ac   : > { %v1130_v3 = vsel %vm786_vm5, %v1124_v0, -inf  ;;  %v1125_v56 = vadd.f32 %v1119_v51, %v4668_v50 }
 0x6ad   : > { %1131 = vmax.xlane.f32.xlu0 %v1130_v3 }
 0x6ae   : > { %v1133_v5 = vsel %vm786_vm5, %v1125_v56, -inf }
 0x6af   : > { %1134 = vmax.xlane.f32.xlu1 %v1133_v5 }
 0x6b1   : > { %v4748_v7 = vpop.f32.mrb[20].mxu0  ;;  %1137 = vmax.xlane.f32.xlu0 %v1136_v62 }
 0x6b2   : > { %v4750_v2 = vpop.f32.mrb[21].mxu0 }
 0x6b3   : > { %v3792_v8 = vpop.f32.mrb[22].mxu0 }
 0x6b4   : > { %v4752_v9 = vpop.f32.mrb[23].mxu0 }
 0x6c1   : > { %v3807_v10 = vpop.f32.mrb[24].mxu0 }
 0x6c2   : > { %v1123_v11 = vmul.f32 0.25, %v3807_v10  ;;  %v1104_v14 = vpop.f32.mrb[25].mxu0 }
 0x6c3   : > { %v1121_v15 = vmul.f32 0.25, %v1104_v14  ;;  %v3808_v17 = vpop.f32.mrb[26].mxu0 }
 0x6c4   : > { %v1107_v20 = vpop.f32.mrb[27].mxu0  ;;  %v1129_v22 = vadd.f32 %v1123_v11, %v4668_v50 }
 0x6c5   : > { %v1122_v24 = vmul.f32 0.25, %v1107_v20  ;;  %v1127_v27 = vadd.f32 %v1121_v15, %v4668_v50 }
 0x6c6   : > { %v1145_v29 = vsel %vm786_vm5, %v1129_v22, -inf }
 0x6c7   : > { %1146 = vmax.xlane.f32.xlu1 %v1145_v29  ;;  %v1139_v30 = vsel %vm786_vm5, %v1127_v27, -inf  ;;  %v1128_v31 = vadd.f32 %v1122_v24, %v4668_v50 }
 0x6c8   : > { %1140 = vmax.xlane.f32.xlu0 %v1139_v30 }
 0x6c9   : > { %v1142_v35 = vsel %vm786_vm5, %v1128_v31, -inf }
 0x6cc   : > { %1143 = vmax.xlane.f32.xlu0 %v1142_v35 }
 0x73a   : > { %v1132_v37 = vpop.xlane.xlu0 %1131 }
 0x73b   : > { %v1148_v39 = vsub.f32 %v1124_v0, %v1132_v37 }
 0x73c   : > { %v1135_v40 = vpop.xlane.xlu1 %1134 }
 0x73d   : > { %v1154_v41 = vmul.f32 1.442695, %v1148_v39  ;;  %v1149_v43 = vsub.f32 %v1125_v56, %v1135_v40 }
 0x73e   : > { %v1138_v44 = vpop.xlane.xlu0 %1137 }
 0x73f   : > { %4171 = vpow2.f32 %v1154_v41  ;;  %v1156_v42 = vmul.f32 1.442695, %v1149_v43  ;;  %v1150_v45 = vsub.f32 %v1126_v4, %v1138_v44 }
 0x741   : > { %4173 = vpow2.f32 %v1156_v42  ;;  %v1158_v47 = vmul.f32 1.442695, %v1150_v45 }
 0x743   : > { %4175 = vpow2.f32 %v1158_v47 }
 0x749   : > { %v4172_v48 = vpop.eup %4171 }
 0x74a   : > { %v1166_v49 = vsel %vm786_vm5, %v4172_v48, 0.0 }
 0x74b   : > { %v4174_v52 = vpop.eup %4173  ;;  %1167 = vadd.xlane.f32.xlu0 %v1166_v49 }
 0x74c   : > { %v1169_v53 = vsel %vm786_vm5, %v4174_v52, 0.0 }
 0x74d   : > { %v4176_v55 = vpop.eup %4175  ;;  %1170 = vadd.xlane.f32.xlu1 %v1169_v53 }
 0x74e   : > { %v1172_v58 = vsel %vm786_vm5, %v4176_v55, 0.0 }
 0x74f   : > { %1173 = vadd.xlane.f32.xlu0 %v1172_v58  ;;  %v4118_v58 = vld [vmem:[%s5504_s5 + $0x8] sm:$0xff]  }
 0x754   : > { %v1147_v59 = vpop.xlane.xlu1 %1146 }
 0x755   : > { %v1153_v60 = vsub.f32 %v1129_v22, %v1147_v59  ;;  %v1141_v61 = vpop.xlane.xlu0 %1140 }
 0x756   : > { %v1151_v13 = vsub.f32 %v1127_v27, %v1141_v61 }
 0x757   : > { %v1164_v63 = vmul.f32 1.442695, %v1153_v60 }
 0x758   : > { %v1160_v51 = vmul.f32 1.442695, %v1151_v13 }
 0x759   : > { %4177 = vpow2.f32 %v1164_v63  ;;  %v1144_v0 = vpop.xlane.xlu0 %1143 }
 0x75a   : > { %v1152_v3 = vsub.f32 %v1128_v31, %v1144_v0  ;;  %4179 = vpow2.f32 %v1160_v51 }
 0x75c   : > { %v1162_v56 = vmul.f32 1.442695, %v1152_v3 }
 0x75e   : > { %4181 = vpow2.f32 %v1162_v56 }
 0x763   : > { %v4178_v4 = vpop.eup %4177 }
 0x764   : > { %v1181_v5 = vsel %vm786_vm5, %v4178_v4, 0.0  ;;  %v4180_v62 = vpop.eup %4179 }
 0x765   : > { %1182 = vadd.xlane.f32.xlu1 %v1181_v5  ;;  %v1175_v10 = vsel %vm786_vm5, %v4180_v62, 0.0 }
 0x768   : > { %v4182_v8 = vpop.eup %4181 }
 0x769   : > { %1176 = vadd.xlane.f32.xlu1 %v1175_v10  ;;  %v1178_v11 = vsel %vm786_vm5, %v4182_v8, 0.0 }
 0x76a   : > { %1179 = vadd.xlane.f32.xlu0 %v1178_v11 }
 0x77a   : > { %1202 = vrot.lane.b32.xlu1 %v4641_v21, %s4402_s24 }
 0x77e   : > { %1262 = vrot.lane.b32.xlu1 %v4645_v32, %s4402_s24 }
 0x780   : > { %1200 = vrot.lane.b32.xlu0 %v4635_v12, %s4402_s24 }
 0x782   : > { %1264 = vrot.lane.b32.xlu1 %v4651_v38, %s4402_s24 }
 0x7d8   : > { %v1168_v14 = vpop.xlane.xlu0 %1167 }
 0x7d9   : > { %4183 = vrcp.f32 %v1168_v14 }
 0x7da   : > { %v1171_v15 = vpop.xlane.xlu1 %1170 }
 0x7db   : > { %4185 = vrcp.f32 %v1171_v15 }
 0x7dc   : > { %v1174_v21 = vpop.xlane.xlu0 %1173 }
 0x7dd   : > { %4187 = vrcp.f32 %v1174_v21 }
 0x7e3   : > { %v4184_v17 = vpop.eup %4183 }
 0x7e4   : > { %v1190_v22 = vmul.f32 %v4184_v17, %v4172_v48 }
 0x7e5   : > { %v4186_v20 = vpop.eup %4185 }
 0x7e6   : > { %v1191_v24 = vmul.f32 %v4186_v20, %v4174_v52 }
 0x7e7   : > { %v4188_v30 = vpop.eup %4187 }
 0x7e8   : > { %v1196_v27 = vpack.c.bf16 %v1191_v24, %v1190_v22  ;;  %v1192_v35 = vmul.f32 %v4188_v30, %v4176_v55  ;;  %v4117_v55 = vld [vmem:[%s5504_s5] sm:$0xff]  }
 0x7ea   : > { %3813 = vmatprep.mubr.msk.bf16.mxu1 %vm786_vm5, %v1196_v27  ;;  %v1197_v45 = vpack.c.bf16 %v1192_v35, %v1192_v35 }
 0x7f2   : > { %v1183_v32 = vpop.xlane.xlu1 %1182 }
 0x7f3   : > { %4189 = vrcp.f32 %v1183_v32 }
 0x7f6   : > { %v1177_v29 = vpop.xlane.xlu1 %1176 }
 0x7f7   : > { %4191 = vrcp.f32 %v1177_v29  ;;  %v1180_v12 = vpop.xlane.xlu0 %1179 }
 0x7f8   : > { %4193 = vrcp.f32 %v1180_v12 }
 0x7fa   : > { %v1203_v38 = vpop.permute.xlu1 %1202 }
 0x7fb   : > { %v1201_v31 = vpop.permute.xlu0 %1200  ;;  %v1212_v40 = vsel %vm868_vm6, %v1203_v38, 0 }
 0x7fc   : > { %3809 = vmatprep.subr.bf16.mxu1 %v1201_v31 }
 0x7fd   : > { %3810 = vmatpush3.bf16.msra.mxu1 %v1201_v31  ;;  %v4190_v39 = vpop.eup %4189 }
 0x7fe   : > { %v1263_v37 = vpop.permute.xlu1 %1262  ;;  %4019 = vmatprep.subr.msk.bf16.mxu1 %vm868_vm6, %v1203_v38  ;;  %v1195_v44 = vmul.f32 %v4190_v39, %v4178_v4 }
 0x7ff   : > { %3817 = vmatprep.subr.bf16.mxu0 %v1263_v37 }
 0x800   : > { %3818 = vmatpush3.bf16.msra.mxu0 %v1263_v37  ;;  %v1199_v53 = vpack.c.bf16 %v1195_v44, %v1195_v44 }
 0x801   : > { %v4192_v41 = vpop.eup %4191  ;;  %3812 = vmatpush3.bf16.msra.mxu1 %v1212_v40 }
 0x802   : > { %v4194_v43 = vpop.eup %4193  ;;  %v1265_v42 = vpop.permute.xlu1 %1264  ;;  %v1193_v47 = vmul.f32 %v4192_v41, %v4180_v62  ;;  %3825 = vmatprep.subr.bf16.mxu1 %v4395_v1 }
 0x803   : > { %v1274_v48 = vsel %vm868_vm6, %v1265_v42, 0  ;;  %4020 = vmatprep.subr.msk.bf16.mxu0 %vm868_vm6, %v1265_v42  ;;  %v1194_v49 = vmul.f32 %v4194_v43, %v4182_v8 }
 0x804   : > { %3814 = vmatmul.mubr.msk.bf16.vlgmr.msra.gmra.mrb[20].mxu1 %vm786_vm5, %v1197_v45  ;;  %3820 = vmatpush3.bf16.msra.mxu0 %v1274_v48 }
 0x805   : > { %v1198_v52 = vpack.c.bf16 %v1194_v49, %v1193_v47  ;;  %3829 = vmatprep.mubr.msk.bf16.mxu1 %vm4396_vm0, %v4395_v1  ;;  %3841 = vmatprep.subr.bf16.mxu0 %v4395_v1 }
 0x806   : > { %3826 = vmatpush3.bf16.msra.mxu1 %v4117_v55 }
 0x807   : > { %3821 = vmatprep.mubr.msk.bf16.mxu0 %vm786_vm5, %v1198_v52  ;;  %3827 = vmatprep.subr.bf16.mxu1 %v4395_v1 }
 0x808   : > { %3822 = vmatmul.mubr.msk.bf16.vlgmr.msra.gmra.mrb[28].mxu0 %vm786_vm5, %v1199_v53 }
 0x809   : > { %3845 = vmatprep.mubr.msk.bf16.mxu0 %vm4396_vm0, %v4395_v1 }
 0x80a   : > { %3828 = vmatpush3.bf16.msra.mxu1 %v4118_v58 }
 0x80b   : > { %3857 = vmatprep.subr.bf16.mxu1 %v4395_v1 }
 0x8d7   : > { %v3815_v59 = vpop.f32.mrb[20].mxu1 }
 0x8d8   : > { %v1248_v60 = vpop.f32.mrb[21].mxu1 }
 0x8d9   : > { %v3816_v61 = vpop.f32.mrb[22].mxu1 }
 0x8da   : > { %v1251_v13 = vpop.f32.mrb[23].mxu1 }
 0x8db   : > { %v4082_v63 = vpack.i.bf16 %v1251_v13, %v1248_v60  ;;  %v3823_v51 = vpop.f32.mrb[28].mxu0 }
 0x8dc   : > { %v1310_v0 = vpop.f32.mrb[29].mxu0 }
 0x8dd   : > { %v4087_v3 = vpack.i.bf16 %v1310_v0, %v3815_v59  ;;  %v3824_v56 = vpop.f32.mrb[30].mxu0  ;;  %4083 = vrot.lane.b32.xlu0 %v4082_v63, %s5509_s29 }
 0x8de   : > { %v1313_v4 = vpop.f32.mrb[31].mxu0 }
 0x8df   : > { %v4092_v5 = vpack.i.bf16 %v3823_v51, %v1313_v4  ;;  %4088 = vrot.lane.b32.xlu1 %v4087_v3, %s5509_s29 }
 0x8e1   : > { %4093 = vrot.lane.b32.xlu0 %v4092_v5, %s5509_s29  ;;  %s4405_s29 = smov [#allocation2]  }
 0x8e2   : > { %s4335_s25 = sshll.u32 %s4405_s29, 4  ;;  %s4336_s25 = int_to_ptr.vmem [resolvable:$false] %s4335_s25 }
 0x8e3   : > { %s4337_s26 = scalar_lea.vmem %s4336_s25, 64 }
 0x94f   : > { %v4084_v62 = vpop.permute.xlu0 %4083 }
 0x950   : > { %v4086_v8 = vunpack.i.h.bf16 %v4084_v62  ;;  %v4085_v10 = vunpack.i.l.bf16 %v4084_v62 }
 0x951   : > { %v4089_v11 = vpop.permute.xlu1 %4088 }
 0x952   : > { %v1349_v14 = vsel %vm647_vm3, %v4740_v57, %v4086_v8  ;;  %v1348_v15 = vsel %vm647_vm3, %v4738_v46, %v4085_v10  ;;  %v4091_v17 = vunpack.i.h.bf16 %v4089_v11  ;;  %v4090_v20 = vunpack.i.l.bf16 %v4089_v11 }
 0x953   : > { %v1354_v22 = vpack.c.bf16 %v1349_v14, %v1348_v15  ;;  %v4094_v24 = vpop.permute.xlu0 %4093 }
 0x954   : > { %v1351_v27 = vsel %vm647_vm3, %v4750_v2, %v4091_v17  ;;  %v1350_v21 = vsel %vm647_vm3, %v4736_v54, %v4090_v20  ;;  %v4096_v32 = vunpack.i.h.bf16 %v4094_v24  ;;  %v4095_v29 = vunpack.i.l.bf16 %v4094_v24 }
 0x955   : > { %v1355_v12 = vpack.c.bf16 %v1351_v27, %v1350_v21  ;;  %3830 = vmatmul.mubr.msk.bf16.vlgmr.msra.gmra.mrb[24].mxu1 %vm448_vm2, %v1354_v22  ;;  %v1363_v54 = vsub.s32 3, %v4602_v18 }
 0x956   : > { %v1353_v57 = vsel %vm647_vm3, %v4748_v7, %v4096_v32  ;;  %v1352_v46 = vsel %vm647_vm3, %v4752_v9, %v4095_v29  ;;  %3833 = vmatprep.mubr.msk.bf16.mxu1 %vm4396_vm0, %v4395_v1 }
 0x957   : > { %v1356_v38 = vpack.c.bf16 %v1353_v57, %v1352_v46  ;;  %v1364_v7 = vrot.slane %v4610_v26, %v1363_v54 }
 0x95d   : > { %3834 = vmatmul.mubr.msk.bf16.gmra.mrb[28].mxu1 %vm448_vm2, %v1355_v12 }
 0x95e   : > { %3837 = vmatprep.mubr.msk.bf16.mxu1 %vm4396_vm0, %v4395_v1 }
 0x965   : > { %3838 = vmatmul.mubr.msk.bf16.gmra.mrb[32].mxu1 %vm448_vm2, %v1356_v38 }
 0x966   : > { %3865 = vmatprep.mubr.msk.bf16.mxu1 %vm4396_vm0, %v4395_v1 }
 0xa28   : > { %v1420_v2 = vpop.f32.mrb[24].mxu1 }
 0xa29   : > { %v1421_v9 = vadd.f32 %v1420_v2, %v1364_v7  ;;  %v3831_v30 = vpop.f32.mrb[25].mxu1 }
 0xa2a   : > { %v1423_v31 = vpop.f32.mrb[26].mxu1 }
 0xa2b   : > { %v4825_v35 = vadd.f32 %v1421_v9, %v4535_v16  ;;  %v1424_v37 = vadd.f32 %v1423_v31, %v1364_v7  ;;  %v3832_v39 = vpop.f32.mrb[27].mxu1  ;;  %v4119_v31 = vld [vmem:[%s5505_s6] sm:$0xff]  }
 0xa2c   : > { %3842 = vmatpush3.bf16.msra.mxu0 %v4119_v31 }
 0xa2d   : > { %v4828_v40 = vadd.f32 %v1424_v37, %v4537_v19  ;;  %v1449_v41 = vsel %vm448_vm2, %v4825_v35, 0.0  ;;  %3843 = vmatprep.subr.bf16.mxu0 %v4395_v1  ;;  %v4120_v37 = vld [vmem:[%s5505_s6 + $0x8] sm:$0xff]  }
 0xa2e   : > { %1450 = vadd.xlane.f32.xlu1 %v1449_v41 }
 0xa2f   : > { %v1452_v43 = vsel %vm448_vm2, %v4828_v40, 0.0 }
 0xa30   : > { %1453 = vadd.xlane.f32.xlu0 %v1452_v43  ;;  %v1428_v26 = vpop.f32.mrb[28].mxu1  ;;  %3844 = vmatpush3.bf16.msra.mxu0 %v4120_v37 }
 0xa31   : > { %v1429_v44 = vadd.f32 %v1428_v26, %v1364_v7  ;;  %v3835_v42 = vpop.f32.mrb[29].mxu1  ;;  %3877 = vmatprep.subr.bf16.mxu0 %v4395_v1 }
 0xa32   : > { %v1431_v45 = vpop.f32.mrb[30].mxu1 }
 0xa33   : > { %v4835_v16 = vadd.f32 %v1429_v44, %v4546_v25  ;;  %v1432_v47 = vadd.f32 %v1431_v45, %v1364_v7  ;;  %v3836_v48 = vpop.f32.mrb[31].mxu1 }
 0xa34   : > { %v1529_v48 = vsub.s32 4, %v4602_v18 }
 0xa35   : > { %v4838_v19 = vadd.f32 %v1432_v47, %v4548_v28  ;;  %v1455_v49 = vsel %vm448_vm2, %v4835_v16, 0.0 }
 0xa36   : > { %1456 = vadd.xlane.f32.xlu0 %v1455_v49 }
 0xa37   : > { %v1458_v58 = vsel %vm448_vm2, %v4838_v19, 0.0 }
 0xa38   : > { %v1436_v52 = vpop.f32.mrb[32].mxu1 }
 0xa39   : > { %v1437_v53 = vadd.f32 %v1436_v52, %v1364_v7  ;;  %v3839_v55 = vpop.f32.mrb[33].mxu1 }
 0xa3a   : > { %1459 = vadd.xlane.f32.xlu0 %v1458_v58  ;;  %v1439_v59 = vpop.f32.mrb[34].mxu1  ;;  %v4898_v55 = vld [vmem:[%s5507_s8] sm:$0xff] }
 0xa3b   : > { %v4845_v25 = vadd.f32 %v1437_v53, %v4554_v33  ;;  %v1440_v60 = vadd.f32 %v1439_v59, %v1364_v7  ;;  %v3840_v61 = vpop.f32.mrb[35].mxu1  ;;  %v1530_v58 = vrot.slane %v4898_v55, %v1529_v48  ;;  %v1539_v59 = vsub.s32 5, %v4602_v18 }
 0xa3d   : > { %v4848_v28 = vadd.f32 %v1440_v60, %v4556_v36  ;;  %v1461_v13 = vsel %vm448_vm2, %v4845_v25, 0.0 }
 0xa3e   : > { %1462 = vadd.xlane.f32.xlu1 %v1461_v13 }
 0xa3f   : > { %v1464_v63 = vsel %vm448_vm2, %v4848_v28, 0.0 }
 0xa40   : > { %1465 = vadd.xlane.f32.xlu0 %v1464_v63 }
 0xabb   : > { %v1451_v51 = vpop.xlane.xlu1 %1450 }
 0xabc   : > { %v1467_v0 = vmul.f32 0.03125, %v1451_v51 }
 0xabd   : > { %v1454_v3 = vpop.xlane.xlu0 %1453 }
 0xabe   : > { %v1473_v56 = vsub.f32 %v4825_v35, %v1467_v0  ;;  %v1468_v33 = vmul.f32 0.03125, %v1454_v3 }
 0xac0   : > { %v4856_v4 = vsub.f32 %v4828_v40, %v1468_v33  ;;  %v1479_v5 = vmul.f32 %v1473_v56, %v1473_v56 }
 0xac2   : > { %v1485_v36 = vsel %vm448_vm2, %v1479_v5, 0.0  ;;  %v1480_v62 = vmul.f32 %v4856_v4, %v4856_v4 }
 0xac3   : > { %v1457_v8 = vpop.xlane.xlu0 %1456  ;;  %1486 = vadd.xlane.f32.xlu1 %v1485_v36  ;;  %v1540_v36 = vrot.slane %v4898_v55, %v1539_v59 }
 0xac4   : > { %v1469_v10 = vmul.f32 0.03125, %v1457_v8  ;;  %v1488_v11 = vsel %vm448_vm2, %v1480_v62, 0.0 }
 0xac5   : > { %1489 = vadd.xlane.f32.xlu0 %v1488_v11 }
 0xac6   : > { %v4863_v14 = vsub.f32 %v4835_v16, %v1469_v10 }
 0xac7   : > { %v1460_v15 = vpop.xlane.xlu0 %1459 }
 0xac8   : > { %v1470_v17 = vmul.f32 0.03125, %v1460_v15  ;;  %v1481_v20 = vmul.f32 %v4863_v14, %v4863_v14 }
 0xaca   : > { %v4868_v22 = vsub.f32 %v4838_v19, %v1470_v17  ;;  %v1491_v24 = vsel %vm448_vm2, %v1481_v20, 0.0 }
 0xacb   : > { %1492 = vadd.xlane.f32.xlu1 %v1491_v24  ;;  %v1463_v27 = vpop.xlane.xlu1 %1462 }
 0xacc   : > { %v1471_v21 = vmul.f32 0.03125, %v1463_v27  ;;  %v1482_v32 = vmul.f32 %v4868_v22, %v4868_v22 }
 0xacd   : > { %v1466_v29 = vpop.xlane.xlu0 %1465 }
 0xace   : > { %v4874_v12 = vsub.f32 %v4845_v25, %v1471_v21  ;;  %v1472_v57 = vmul.f32 0.03125, %v1466_v29  ;;  %v1494_v46 = vsel %vm448_vm2, %v1482_v32, 0.0 }
 0xacf   : > { %1495 = vadd.xlane.f32.xlu0 %v1494_v46 }
 0xad0   : > { %v4878_v38 = vsub.f32 %v4848_v28, %v1472_v57  ;;  %v1483_v7 = vmul.f32 %v4874_v12, %v4874_v12 }
 0xad2   : > { %v1497_v2 = vsel %vm448_vm2, %v1483_v7, 0.0  ;;  %v1484_v9 = vmul.f32 %v4878_v38, %v4878_v38 }
 0xad3   : > { %1498 = vadd.xlane.f32.xlu1 %v1497_v2 }
 0xad4   : > { %v1500_v30 = vsel %vm448_vm2, %v1484_v9, 0.0 }
 0xad5   : > { %1501 = vadd.xlane.f32.xlu0 %v1500_v30 }
 0xb50   : > { %v1487_v39 = vpop.xlane.xlu1 %1486 }
 0xb51   : > { %v1503_v41 = vmul.f32 0.03125, %v1487_v39 }
 0xb52   : > { %v1490_v43 = vpop.xlane.xlu0 %1489 }
 0xb53   : > { %v1509_v26 = vadd.f32 1e-06, %v1503_v41  ;;  %v1504_v44 = vmul.f32 0.03125, %v1490_v43  ;;  %v4123_v41 = vld [vmem:[%s5506_s7 + $0x10] sm:$0xff]   ;;  %v4124_v43 = vld [vmem:[%s5506_s7 + $0x18] sm:$0xff]  }
 0xb55   : > { %4195 = vrsqrt.f32 %v1509_v26  ;;  %v1510_v42 = vadd.f32 1e-06, %v1504_v44  ;;  %v1556_v26 = vsub.s32 6, %v4602_v18 }
 0xb57   : > { %4197 = vrsqrt.f32 %v1510_v42  ;;  %v1557_v44 = vrot.slane %v4898_v55, %v1556_v26 }
 0xb58   : > { %v1493_v45 = vpop.xlane.xlu1 %1492 }
 0xb59   : > { %v1505_v47 = vmul.f32 0.03125, %v1493_v45 }
 0xb5b   : > { %v1511_v49 = vadd.f32 1e-06, %v1505_v47 }
 0xb5c   : > { %v1496_v52 = vpop.xlane.xlu0 %1495 }
 0xb5d   : > { %4199 = vrsqrt.f32 %v1511_v49  ;;  %v1506_v53 = vmul.f32 0.03125, %v1496_v52 }
 0xb5f   : > { %v4196_v60 = vpop.eup %4195  ;;  %v1512_v61 = vadd.f32 1e-06, %v1506_v53 }
 0xb60   : > { %v1521_v13 = vmul.f32 %v4196_v60, %v1473_v56  ;;  %v1499_v63 = vpop.xlane.xlu1 %1498 }
 0xb61   : > { %v4198_v51 = vpop.eup %4197  ;;  %4201 = vrsqrt.f32 %v1512_v61  ;;  %v1507_v0 = vmul.f32 0.03125, %v1499_v63 }
 0xb62   : > { %v1531_v3 = vmul.f32 %v1530_v58, %v1521_v13  ;;  %v1522_v33 = vmul.f32 %v4198_v51, %v4856_v4  ;;  %v1502_v5 = vpop.xlane.xlu0 %1501 }
 0xb63   : > { %v1513_v62 = vadd.f32 1e-06, %v1507_v0  ;;  %v1508_v8 = vmul.f32 0.03125, %v1502_v5 }
 0xb64   : > { %v1532_v10 = vmul.f32 %v1530_v58, %v1522_v33  ;;  %v1541_v15 = vadd.f32 %v1540_v36, %v1531_v3 }
 0xb65   : > { %4203 = vrsqrt.f32 %v1513_v62  ;;  %v1514_v11 = vadd.f32 1e-06, %v1508_v8 }
 0xb66   : > { %v1542_v17 = vadd.f32 %v1540_v36, %v1532_v10 }
 0xb67   : > { %v4200_v56 = vpop.eup %4199  ;;  %4205 = vrsqrt.f32 %v1514_v11 }
 0xb68   : > { %v1523_v20 = vmul.f32 %v4200_v56, %v4863_v14  ;;  %v1547_v24 = vpack.c.bf16 %v1542_v17, %v1541_v15 }
 0xb6a   : > { %3846 = vmatmul.mubr.msk.bf16.vlgmr.msra.gmra.mrb[32].mxu0 %vm448_vm2, %v1547_v24  ;;  %v1533_v21 = vmul.f32 %v1530_v58, %v1523_v20 }
 0xb6b   : > { %v4202_v4 = vpop.eup %4201  ;;  %3849 = vmatprep.mubr.msk.bf16.mxu0 %vm4396_vm0, %v4395_v1 }
 0xb6c   : > { %v1524_v27 = vmul.f32 %v4202_v4, %v4868_v22  ;;  %v1543_v46 = vadd.f32 %v1540_v36, %v1533_v21 }
 0xb6e   : > { %v1534_v32 = vmul.f32 %v1530_v58, %v1524_v27 }
 0xb6f   : > { %v4204_v29 = vpop.eup %4203 }
 0xb70   : > { %v1525_v57 = vmul.f32 %v4204_v29, %v4874_v12  ;;  %v1544_v7 = vadd.f32 %v1540_v36, %v1534_v32  ;;  %v4121_v12 = vld [vmem:[%s5506_s7] sm:$0xff]  }
 0xb71   : > { %v4206_v2 = vpop.eup %4205  ;;  %3858 = vmatpush3.bf16.msra.mxu1 %v4121_v12 }
 0xb72   : > { %v1526_v9 = vmul.f32 %v4206_v2, %v4878_v38  ;;  %v1548_v14 = vpack.c.bf16 %v1544_v7, %v1543_v46  ;;  %v1535_v30 = vmul.f32 %v1530_v58, %v1525_v57  ;;  %3859 = vmatprep.subr.bf16.mxu1 %v4395_v1  ;;  %v4122_v38 = vld [vmem:[%s5506_s7 + $0x8] sm:$0xff]  }
 0xb74   : > { %3850 = vmatmul.mubr.msk.bf16.gmra.mrb[36].mxu0 %vm448_vm2, %v1548_v14  ;;  %v1536_v31 = vmul.f32 %v1530_v58, %v1526_v9  ;;  %v1545_v22 = vadd.f32 %v1540_v36, %v1535_v30 }
 0xb75   : > { %3853 = vmatprep.mubr.msk.bf16.mxu0 %vm4396_vm0, %v4395_v1  ;;  %3860 = vmatpush3.bf16.msra.mxu1 %v4122_v38 }
 0xb76   : > { %v1546_v37 = vadd.f32 %v1540_v36, %v1536_v31  ;;  %3861 = vmatprep.subr.bf16.mxu1 %v4395_v1 }
 0xb78   : > { %v1549_v39 = vpack.c.bf16 %v1546_v37, %v1545_v22 }
 0xb79   : > { %3862 = vmatpush3.bf16.msra.mxu1 %v4123_v41 }
 0xb7a   : > { %3863 = vmatprep.subr.bf16.mxu1 %v4395_v1 }
 0xb7c   : > { %3854 = vmatmul.mubr.msk.bf16.gmra.mrb[40].mxu0 %vm448_vm2, %v1549_v39 }
 0xb7d   : > { %3881 = vmatprep.mubr.msk.bf16.mxu0 %vm4396_vm0, %v4395_v1  ;;  %3864 = vmatpush3.bf16.msra.mxu1 %v4124_v43 }
 0xc3d   : > { %v1613_v42 = vpop.f32.mrb[32].mxu0 }
 0xc3e   : > { %v4940_v45 = vadd.f32 %v1613_v42, %v1557_v44  ;;  %v3847_v47 = vpop.f32.mrb[33].mxu0 }
 0xc3f   : > { %v1616_v49 = vpop.f32.mrb[34].mxu0 }
 0xc40   : > { %v4943_v52 = vmul.f32 0.70710677, %v4940_v45  ;;  %v4945_v53 = vadd.f32 %v1616_v49, %v1557_v44  ;;  %v3848_v58 = vpop.f32.mrb[35].mxu0 }
 0xc42   : > { %v1660_v60 = vand.u32 2147483647, %v4943_v52  ;;  %v4949_v61 = vmul.f32 0.70710677, %v4945_v53  ;;  %vm1648_vm7 = vcmp.ge.f32.partialorder %v4943_v52, 0.0 }
 0xc44   : > { %v1666_v13 = vmul.f32 0.3275911, %v1660_v60  ;;  %v1661_v63 = vand.u32 2147483647, %v4949_v61  ;;  %v1744_v17 = vsub.f32 0.0, %v1660_v60  ;;  %vm1649_vm8 = vcmp.ge.f32.partialorder %v4949_v61, 0.0 }
 0xc46   : > { %v1672_v51 = vadd.f32 1.0, %v1666_v13  ;;  %v1667_v0 = vmul.f32 0.3275911, %v1661_v63  ;;  %v1750_v29 = vmul.f32 %v1744_v17, %v1660_v60  ;;  %v1745_v57 = vsub.f32 0.0, %v1661_v63 }
 0xc47   : > { %v1621_v3 = vpop.f32.mrb[36].mxu0 }
 0xc48   : > { %4207 = vrcp.f32 %v1672_v51  ;;  %v1673_v33 = vadd.f32 1.0, %v1667_v0  ;;  %v3851_v5 = vpop.f32.mrb[37].mxu0  ;;  %v4952_v36 = vadd.f32 %v1621_v3, %v1557_v44  ;;  %v1756_v38 = vmul.f32 1.442695, %v1750_v29 }
 0xc49   : > { %v1624_v62 = vpop.f32.mrb[38].mxu0  ;;  %v1751_v41 = vmul.f32 %v1745_v57, %v1661_v63 }
 0xc4a   : > { %v4954_v8 = vadd.f32 %v1624_v62, %v1557_v44  ;;  %v3852_v10 = vpop.f32.mrb[39].mxu0  ;;  %4209 = vrcp.f32 %v1673_v33  ;;  %v4957_v11 = vmul.f32 0.70710677, %v4952_v36 }
 0xc4c   : > { %v4960_v15 = vmul.f32 0.70710677, %v4954_v8  ;;  %v1662_v56 = vand.u32 2147483647, %v4957_v11  ;;  %vm1650_vm9 = vcmp.ge.f32.partialorder %v4957_v11, 0.0  ;;  %v1638_v11 = vmul.f32 0.5, %v4952_v36 }
 0xc4e   : > { %v1663_v20 = vand.u32 2147483647, %v4960_v15  ;;  %v1668_v24 = vmul.f32 0.3275911, %v1662_v56  ;;  %v1746_v60 = vsub.f32 0.0, %v1662_v56  ;;  %vm1651_vm11 = vcmp.ge.f32.partialorder %v4960_v15, 0.0 }
 0xc4f   : > { %v1629_v4 = vpop.f32.mrb[40].mxu0 }
 0xc50   : > { %v1669_v27 = vmul.f32 0.3275911, %v1663_v20  ;;  %v4964_v21 = vadd.f32 %v1629_v4, %v1557_v44  ;;  %v3855_v32 = vpop.f32.mrb[41].mxu0  ;;  %v1674_v46 = vadd.f32 1.0, %v1668_v24  ;;  %v1747_v33 = vsub.f32 0.0, %v1663_v20 }
 0xc51   : > { %v1632_v7 = vpop.f32.mrb[42].mxu0  ;;  %v1752_v10 = vmul.f32 %v1746_v60, %v1662_v56 }
 0xc52   : > { %v4208_v2 = vpop.eup %4207  ;;  %v1675_v9 = vadd.f32 1.0, %v1669_v27  ;;  %v4967_v14 = vmul.f32 0.70710677, %v4964_v21  ;;  %v3856_v30 = vpop.f32.mrb[43].mxu0  ;;  %4211 = vrcp.f32 %v1674_v46  ;;  %v4969_v37 = vadd.f32 %v1632_v7, %v1557_v44 }
 0xc53   : > { %v1690_v31 = vmul.f32 1.0614054, %v4208_v2  ;;  %v1758_v44 = vmul.f32 1.442695, %v1751_v41  ;;  %v1753_v57 = vmul.f32 %v1747_v33, %v1663_v20 }
 0xc54   : > { %4213 = vrcp.f32 %v1675_v9  ;;  %v1664_v22 = vand.u32 2147483647, %v4967_v14  ;;  %v4210_v39 = vpop.eup %4209  ;;  %v4973_v49 = vmul.f32 0.70710677, %v4969_v37  ;;  %vm1652_vm12 = vcmp.ge.f32.partialorder %v4967_v14, 0.0 }
 0xc55   : > { %v1696_v12 = vadd.f32 -1.4531521, %v1690_v31  ;;  %v1691_v43 = vmul.f32 1.0614054, %v4210_v39  ;;  %4215 = vpow2.f32 %v1756_v38 }
 0xc56   : > { %v1670_v42 = vmul.f32 0.3275911, %v1664_v22  ;;  %v1665_v0 = vand.u32 2147483647, %v4973_v49  ;;  %v1748_v9 = vsub.f32 0.0, %v1664_v22  ;;  %vm1653_vm13 = vcmp.ge.f32.partialorder %v4973_v49, 0.0 }
 0xc57   : > { %v1702_v47 = vmul.f32 %v4208_v2, %v1696_v12  ;;  %v1697_v58 = vadd.f32 -1.4531521, %v1691_v43  ;;  %v1760_v12 = vmul.f32 1.442695, %v1752_v10  ;;  %v1908_v49 = vsub.s32 7, %v4602_v18 }
 0xc58   : > { %v1676_v13 = vadd.f32 1.0, %v1670_v42  ;;  %v1671_v62 = vmul.f32 0.3275911, %v1665_v0  ;;  %v1762_v42 = vmul.f32 1.442695, %v1753_v57 }
 0xc59   : > { %v1708_v51 = vadd.f32 1.4214138, %v1702_v47  ;;  %v1703_v3 = vmul.f32 %v4210_v39, %v1697_v58 }
 0xc5a   : > { %4217 = vrcp.f32 %v1676_v13  ;;  %v1677_v4 = vadd.f32 1.0, %v1671_v62  ;;  %v1754_v13 = vmul.f32 %v1748_v9, %v1664_v22  ;;  %v1749_v62 = vsub.f32 0.0, %v1665_v0 }
 0xc5b   : > { %v1714_v5 = vmul.f32 %v4208_v2, %v1708_v51  ;;  %v1709_v63 = vadd.f32 1.4214138, %v1703_v3  ;;  %4219 = vpow2.f32 %v1758_v44 }
 0xc5c   : > { %v4976_v17 = vpop.eup %4211  ;;  %4221 = vrcp.f32 %v1677_v4 }
 0xc5d   : > { %v1720_v24 = vadd.f32 -0.28449672, %v1714_v5  ;;  %v1715_v32 = vmul.f32 %v4210_v39, %v1709_v63  ;;  %v1692_v29 = vmul.f32 1.0614054, %v4976_v17  ;;  %4223 = vpow2.f32 %v1760_v12 }
 0xc5e   : > { %v4978_v27 = vpop.eup %4213  ;;  %4225 = vpow2.f32 %v1762_v42  ;;  %v1755_v12 = vmul.f32 %v1749_v62, %v1665_v0 }
 0xc5f   : > { %v1726_v46 = vmul.f32 %v4208_v2, %v1720_v24  ;;  %v1693_v7 = vmul.f32 1.0614054, %v4978_v27  ;;  %v1721_v30 = vadd.f32 -0.28449672, %v1715_v32  ;;  %v1698_v31 = vadd.f32 -1.4531521, %v1692_v29  ;;  %v4216_v47 = vpop.eup %4215 }
 0xc60   : > { %v1764_v32 = vmul.f32 1.442695, %v1754_v13  ;;  %v4404_v29 = vmov -1.0   ;;  %v1636_v13 = vmul.f32 0.5, %v4940_v45 }
 0xc61   : > { %v1732_v56 = vadd.f32 0.2548296, %v1726_v46  ;;  %v1699_v38 = vadd.f32 -1.4531521, %v1693_v7  ;;  %v1727_v41 = vmul.f32 %v4210_v39, %v1721_v30  ;;  %v1704_v43 = vmul.f32 %v4976_v17, %v1698_v31 }
 0xc62   : > { %v1654_v57 = vsel %vm1648_vm7, 1.0, %v4404_v29  ;;  %4227 = vpow2.f32 %v1764_v32  ;;  %v1659_v14 = vsel %vm1653_vm13, 1.0, %v4404_v29 }
 0xc63   : > { %v1738_v58 = vmul.f32 %v4208_v2, %v1732_v56  ;;  %v1705_v60 = vmul.f32 %v4978_v27, %v1699_v38  ;;  %v1733_v51 = vadd.f32 0.2548296, %v1727_v41  ;;  %v1710_v44 = vadd.f32 1.4214138, %v1704_v43 }
 0xc64   : > { %v4984_v20 = vpop.eup %4217  ;;  %v1655_v43 = vsel %vm1649_vm8, 1.0, %v4404_v29 }
 0xc65   : > { %v1768_v3 = vmul.f32 %v4216_v47, %v1738_v58  ;;  %v1711_v33 = vadd.f32 1.4214138, %v1705_v60  ;;  %v1694_v5 = vmul.f32 1.0614054, %v4984_v20  ;;  %v1739_v63 = vmul.f32 %v4210_v39, %v1733_v51  ;;  %v4220_v2 = vpop.eup %4219 }
 0xc66   : > { %v1716_v10 = vmul.f32 %v4976_v17, %v1710_v44  ;;  %v4994_v9 = vpop.eup %4221  ;;  %v1766_v44 = vmul.f32 1.442695, %v1755_v12  ;;  %v1657_v12 = vsel %vm1651_vm11, 1.0, %v4404_v29 }
 0xc67   : > { %v1774_v24 = vsub.f32 1.0, %v1768_v3  ;;  %v1717_v22 = vmul.f32 %v4978_v27, %v1711_v33  ;;  %v1700_v4 = vadd.f32 -1.4531521, %v1694_v5  ;;  %v1769_v46 = vmul.f32 %v4220_v2, %v1739_v63  ;;  %v4224_v3 = vpop.eup %4223 }
 0xc68   : > { %v1722_v7 = vadd.f32 -0.28449672, %v1716_v10  ;;  %v1695_v41 = vmul.f32 1.0614054, %v4994_v9  ;;  %v1637_v33 = vmul.f32 0.5, %v4945_v53  ;;  %4229 = vpow2.f32 %v1766_v44 }
 0xc69   : > { %v1780_v39 = vmul.f32 %v1774_v24, %v1654_v57  ;;  %v1723_v30 = vadd.f32 -0.28449672, %v1717_v22  ;;  %v1706_v31 = vmul.f32 %v4984_v20, %v1700_v4  ;;  %v1775_v56 = vsub.f32 1.0, %v1769_v46  ;;  %v4226_v24 = vpop.eup %4225 }
 0xc6a   : > { %v1728_v38 = vmul.f32 %v4976_v17, %v1722_v7  ;;  %v1701_v60 = vadd.f32 -1.4531521, %v1695_v41 }
 0xc6b   : > { %v1729_v52 = vmul.f32 %v4978_v27, %v1723_v30  ;;  %v1712_v42 = vadd.f32 1.4214138, %v1706_v31  ;;  %v1786_v61 = vadd.f32 1.0, %v1780_v39  ;;  %v1781_v47 = vmul.f32 %v1775_v56, %v1655_v43 }
 0xc6c   : > { %v1734_v58 = vadd.f32 0.2548296, %v1728_v38  ;;  %v1707_v63 = vmul.f32 %v4994_v9, %v1701_v60  ;;  %v4228_v15 = vpop.eup %4227 }
 0xc6d   : > { %v1735_v51 = vadd.f32 0.2548296, %v1729_v52  ;;  %v1718_v0 = vmul.f32 %v4984_v20, %v1712_v42  ;;  %v1787_v5 = vadd.f32 1.0, %v1781_v47  ;;  %v1792_v45 = vmul.f32 %v1786_v61, %v1636_v13 }
 0xc6e   : > { %v1740_v62 = vmul.f32 %v4976_v17, %v1734_v58  ;;  %v1713_v32 = vadd.f32 1.4214138, %v1707_v63  ;;  %v1639_v42 = vmul.f32 0.5, %v4954_v8  ;;  %v1641_v63 = vmul.f32 0.5, %v4969_v37 }
 0xc6f   : > { %v1741_v10 = vmul.f32 %v4978_v27, %v1735_v51  ;;  %v1724_v2 = vadd.f32 -0.28449672, %v1718_v0  ;;  %v1793_v22 = vmul.f32 %v1787_v5, %v1637_v33  ;;  %v1656_v27 = vsel %vm1650_vm9, 1.0, %v4404_v29 }
 0xc70   : > { %v1770_v4 = vmul.f32 %v4224_v3, %v1740_v62  ;;  %v1719_v7 = vmul.f32 %v4994_v9, %v1713_v32  ;;  %v1658_v3 = vsel %vm1652_vm12, 1.0, %v4404_v29 }
 0xc71   : > { %v1771_v57 = vmul.f32 %v4226_v24, %v1741_v10  ;;  %v1730_v53 = vmul.f32 %v4984_v20, %v1724_v2  ;;  %v1798_v17 = vpack.c.bf16 %v1793_v22, %v1792_v45  ;;  %v1909_v22 = vrot.slane %v4898_v55, %v1908_v49 }
 0xc72   : > { %v1776_v46 = vsub.f32 1.0, %v1770_v4  ;;  %v1725_v56 = vadd.f32 -0.28449672, %v1719_v7  ;;  %v4230_v0 = vpop.eup %4229 }
 0xc73   : > { %v1777_v39 = vsub.f32 1.0, %v1771_v57  ;;  %v1736_v30 = vadd.f32 0.2548296, %v1730_v53  ;;  %3866 = vmatmul.mubr.msk.bf16.vlgmr.msra.gmra.mrb[36].mxu1 %vm1833_vm10, %v1798_v17 }
 0xc74   : > { %v1782_v31 = vmul.f32 %v1776_v46, %v1656_v27  ;;  %3869 = vmatprep.mubr.msk.bf16.mxu1 %vm4396_vm0, %v4395_v1  ;;  %v1731_v52 = vmul.f32 %v4994_v9, %v1725_v56 }
 0xc75   : > { %v1783_v38 = vmul.f32 %v1777_v39, %v1657_v12  ;;  %v1742_v41 = vmul.f32 %v4984_v20, %v1736_v30 }
 0xc76   : > { %v1788_v43 = vadd.f32 1.0, %v1782_v31  ;;  %v1737_v58 = vadd.f32 0.2548296, %v1731_v52 }
 0xc77   : > { %v1789_v61 = vadd.f32 1.0, %v1783_v38  ;;  %v1772_v47 = vmul.f32 %v4228_v15, %v1742_v41 }
 0xc78   : > { %v1794_v60 = vmul.f32 %v1788_v43, %v1638_v11  ;;  %v1743_v20 = vmul.f32 %v4994_v9, %v1737_v58  ;;  %v1640_v9 = vmul.f32 0.5, %v4964_v21 }
 0xc79   : > { %v1795_v13 = vmul.f32 %v1789_v61, %v1639_v42  ;;  %v1778_v51 = vsub.f32 1.0, %v1772_v47 }
 0xc7a   : > { %v1773_v36 = vmul.f32 %v4230_v0, %v1743_v20 }
 0xc7b   : > { %v1799_v44 = vpack.c.bf16 %v1795_v13, %v1794_v60  ;;  %v1784_v33 = vmul.f32 %v1778_v51, %v1658_v3 }
 0xc7c   : > { %v1779_v8 = vsub.f32 1.0, %v1773_v36 }
 0xc7d   : > { %3870 = vmatmul.mubr.msk.bf16.gmra.mrb[40].mxu1 %vm1833_vm10, %v1799_v44  ;;  %v1790_v5 = vadd.f32 1.0, %v1784_v33 }
 0xc7e   : > { %3873 = vmatprep.mubr.msk.bf16.mxu1 %vm4396_vm0, %v4395_v1  ;;  %v1785_v62 = vmul.f32 %v1779_v8, %v1659_v14 }
 0xc7f   : > { %v1796_v2 = vmul.f32 %v1790_v5, %v1640_v9 }
 0xc80   : > { %v1791_v10 = vadd.f32 1.0, %v1785_v62 }
 0xc82   : > { %v1797_v24 = vmul.f32 %v1791_v10, %v1641_v63 }
 0xc84   : > { %v1800_v45 = vpack.c.bf16 %v1797_v24, %v1796_v2 }
 0xc86   : > { %3874 = vmatmul.mubr.msk.bf16.gmra.mrb[44].mxu1 %vm1833_vm10, %v1800_v45 }
 0xd46   : > { %v1877_v4 = vpop.f32.mrb[36].mxu1 }
 0xd47   : > { %v1900_v32 = vadd.f32 %v1877_v4, %v4825_v35  ;;  %v3867_v57 = vpop.f32.mrb[37].mxu1 }
 0xd48   : > { %v1880_v53 = vpop.f32.mrb[38].mxu1 }
 0xd49   : > { %v5038_v21 = vadd.f32 %v1909_v22, %v1900_v32  ;;  %v1901_v37 = vadd.f32 %v1880_v53, %v4828_v40  ;;  %v3868_v17 = vpop.f32.mrb[39].mxu1 }
 0xd4b   : > { %v5041_v46 = vadd.f32 %v1909_v22, %v1901_v37  ;;  %v1918_v7 = vsel %vm448_vm2, %v5038_v21, 0.0 }
 0xd4c   : > { %1919 = vadd.xlane.f32.xlu1 %v1918_v7 }
 0xd4d   : > { %v1921_v27 = vsel %vm448_vm2, %v5041_v46, 0.0 }
 0xd4e   : > { %1922 = vadd.xlane.f32.xlu0 %v1921_v27 }
 0xd50   : > { %v1885_v55 = vpop.f32.mrb[40].mxu1 }
 0xd51   : > { %v1902_v35 = vadd.f32 %v1885_v55, %v4835_v16  ;;  %v3871_v39 = vpop.f32.mrb[41].mxu1  ;;  %v4125_v55 = vld [vmem:[%s5503_s4 + $0x10] sm:$0xff]  }
 0xd52   : > { %v1888_v30 = vpop.f32.mrb[42].mxu1  ;;  %3878 = vmatpush3.bf16.msra.mxu0 %v4125_v55 }
 0xd53   : > { %v5048_v31 = vadd.f32 %v1909_v22, %v1902_v35  ;;  %v1903_v40 = vadd.f32 %v1888_v30, %v4838_v19  ;;  %v3872_v12 = vpop.f32.mrb[43].mxu1  ;;  %3879 = vmatprep.subr.bf16.mxu0 %v4395_v1  ;;  %v4126_v35 = vld [vmem:[%s5503_s4 + $0x18] sm:$0xff]  }
 0xd55   : > { %v5051_v56 = vadd.f32 %v1909_v22, %v1903_v40  ;;  %v1924_v15 = vsel %vm448_vm2, %v5048_v31, 0.0 }
 0xd56   : > { %1925 = vadd.xlane.f32.xlu1 %v1924_v15  ;;  %3880 = vmatpush3.bf16.msra.mxu0 %v4126_v35 }
 0xd57   : > { %v1927_v38 = vsel %vm448_vm2, %v5051_v56, 0.0 }
 0xd58   : > { %1928 = vadd.xlane.f32.xlu0 %v1927_v38 }
 0xd59   : > { %v1893_v41 = vpop.f32.mrb[44].mxu1 }
 0xd5a   : > { %v1904_v16 = vadd.f32 %v1893_v41, %v4845_v25  ;;  %v3875_v43 = vpop.f32.mrb[45].mxu1 }
 0xd5b   : > { %v1896_v52 = vpop.f32.mrb[46].mxu1  ;;  %v5101_v43 = vld [vmem:[%s5507_s8 + $0x8] sm:$0xff] }
 0xd5c   : > { %v5058_v11 = vadd.f32 %v1909_v22, %v1904_v16  ;;  %v1905_v19 = vadd.f32 %v1896_v52, %v4848_v28  ;;  %v3876_v42 = vpop.f32.mrb[47].mxu1 }
 0xd5e   : > { %v5061_v61 = vadd.f32 %v1909_v22, %v1905_v19  ;;  %v1930_v47 = vsel %vm448_vm2, %v5058_v11, 0.0 }
 0xd5f   : > { %1931 = vadd.xlane.f32.xlu1 %v1930_v47  ;;  %v1999_v47 = vrot.slane %v5101_v43, %v4605_v23 }
 0xd60   : > { %v1933_v58 = vsel %vm448_vm2, %v5061_v61, 0.0 }
 0xd61   : > { %1934 = vadd.xlane.f32.xlu0 %v1933_v58 }
 0xdd9   : > { %v1920_v60 = vpop.xlane.xlu1 %1919 }
 0xdda   : > { %v1936_v13 = vmul.f32 0.03125, %v1920_v60 }
 0xddb   : > { %v1923_v25 = vpop.xlane.xlu0 %1922 }
 0xddc   : > { %v1942_v51 = vsub.f32 %v5038_v21, %v1936_v13  ;;  %v1937_v20 = vmul.f32 0.03125, %v1923_v25 }
 0xdde   : > { %v1943_v0 = vsub.f32 %v5041_v46, %v1937_v20  ;;  %v1948_v28 = vmul.f32 %v1942_v51, %v1942_v51  ;;  %v2009_v20 = vrot.slane %v5101_v43, %v4615_v34 }
 0xde0   : > { %v1954_v44 = vsel %vm448_vm2, %v1948_v28, 0.0  ;;  %v1949_v3 = vmul.f32 %v1943_v0, %v1943_v0 }
 0xde1   : > { %1955 = vadd.xlane.f32.xlu1 %v1954_v44 }
 0xde2   : > { %v1957_v36 = vsel %vm448_vm2, %v1949_v3, 0.0 }
 0xde3   : > { %v1926_v33 = vpop.xlane.xlu1 %1925  ;;  %1958 = vadd.xlane.f32.xlu0 %v1957_v36 }
 0xde4   : > { %v1938_v8 = vmul.f32 0.03125, %v1926_v33 }
 0xde5   : > { %v1929_v14 = vpop.xlane.xlu0 %1928 }
 0xde6   : > { %v1944_v5 = vsub.f32 %v5048_v31, %v1938_v8  ;;  %v1939_v62 = vmul.f32 0.03125, %v1929_v14 }
 0xde8   : > { %v5073_v9 = vsub.f32 %v5051_v56, %v1939_v62  ;;  %v1950_v63 = vmul.f32 %v1944_v5, %v1944_v5 }
 0xdea   : > { %v1960_v10 = vsel %vm448_vm2, %v1950_v63, 0.0  ;;  %v1951_v2 = vmul.f32 %v5073_v9, %v5073_v9 }
 0xdeb   : > { %1961 = vadd.xlane.f32.xlu1 %v1960_v10 }
 0xdec   : > { %v1963_v24 = vsel %vm448_vm2, %v1951_v2, 0.0  ;;  %v1932_v45 = vpop.xlane.xlu1 %1931 }
 0xded   : > { %1964 = vadd.xlane.f32.xlu0 %v1963_v24  ;;  %v1940_v22 = vmul.f32 0.03125, %v1932_v45 }
 0xdee   : > { %v1935_v4 = vpop.xlane.xlu0 %1934 }
 0xdef   : > { %v5080_v32 = vsub.f32 %v5058_v11, %v1940_v22  ;;  %v1941_v57 = vmul.f32 0.03125, %v1935_v4 }
 0xdf1   : > { %v5083_v53 = vsub.f32 %v5061_v61, %v1941_v57  ;;  %v1952_v37 = vmul.f32 %v5080_v32, %v5080_v32 }
 0xdf3   : > { %v1966_v17 = vsel %vm448_vm2, %v1952_v37, 0.0  ;;  %v1953_v7 = vmul.f32 %v5083_v53, %v5083_v53 }
 0xdf4   : > { %1967 = vadd.xlane.f32.xlu1 %v1966_v17 }
 0xdf5   : > { %v1969_v27 = vsel %vm448_vm2, %v1953_v7, 0.0 }
 0xdf6   : > { %1970 = vadd.xlane.f32.xlu0 %v1969_v27 }
 0xe6e   : > { %v1956_v39 = vpop.xlane.xlu1 %1955 }
 0xe6f   : > { %v1972_v30 = vmul.f32 0.03125, %v1956_v39 }
 0xe70   : > { %v1959_v40 = vpop.xlane.xlu0 %1958 }
 0xe71   : > { %v1978_v12 = vadd.f32 1e-06, %v1972_v30  ;;  %v1973_v15 = vmul.f32 0.03125, %v1959_v40 }
 0xe73   : > { %4231 = vrsqrt.f32 %v1978_v12  ;;  %v1979_v38 = vadd.f32 1e-06, %v1973_v15  ;;  %v2027_v15 = vrot.slane %v5101_v43, %v557_v6 }
 0xe75   : > { %4233 = vrsqrt.f32 %v1979_v38 }
 0xe78   : > { %v1962_v41 = vpop.xlane.xlu1 %1961 }
 0xe79   : > { %v1974_v16 = vmul.f32 0.03125, %v1962_v41 }
 0xe7a   : > { %v1965_v52 = vpop.xlane.xlu0 %1964 }
 0xe7b   : > { %v1980_v19 = vadd.f32 1e-06, %v1974_v16  ;;  %v1975_v42 = vmul.f32 0.03125, %v1965_v52 }
 0xe7d   : > { %4235 = vrsqrt.f32 %v1980_v19  ;;  %v1981_v58 = vadd.f32 1e-06, %v1975_v42  ;;  %v4232_v60 = vpop.eup %4231 }
 0xe7e   : > { %v1990_v13 = vmul.f32 %v4232_v60, %v1942_v51 }
 0xe7f   : > { %4237 = vrsqrt.f32 %v1981_v58  ;;  %v4234_v25 = vpop.eup %4233 }
 0xe80   : > { %v2000_v28 = vmul.f32 %v1999_v47, %v1990_v13  ;;  %v1991_v44 = vmul.f32 %v4234_v25, %v1943_v0 }
 0xe81   : > { %v1968_v33 = vpop.xlane.xlu1 %1967 }
 0xe82   : > { %v2001_v3 = vmul.f32 %v1999_v47, %v1991_v44  ;;  %v1976_v36 = vmul.f32 0.03125, %v1968_v33  ;;  %v2010_v8 = vadd.f32 %v2009_v20, %v2000_v28 }
 0xe83   : > { %v1971_v62 = vpop.xlane.xlu0 %1970 }
 0xe84   : > { %v2011_v14 = vadd.f32 %v2009_v20, %v2001_v3  ;;  %v1982_v63 = vadd.f32 1e-06, %v1976_v36  ;;  %v1977_v10 = vmul.f32 0.03125, %v1971_v62 }
 0xe86   : > { %v2016_v24 = vpack.c.bf16 %v2011_v14, %v2010_v8  ;;  %4239 = vrsqrt.f32 %v1982_v63  ;;  %v1983_v51 = vadd.f32 1e-06, %v1977_v10 }
 0xe87   : > { %v4236_v2 = vpop.eup %4235 }
 0xe88   : > { %v1992_v45 = vmul.f32 %v4236_v2, %v1944_v5  ;;  %3882 = vmatmul.mubr.msk.bf16.vlgmr.msra.gmra.mrb[44].mxu0 %vm448_vm2, %v2016_v24  ;;  %4241 = vrsqrt.f32 %v1983_v51 }
 0xe89   : > { %v4238_v22 = vpop.eup %4237  ;;  %3885 = vmatprep.mubr.msk.bf16.mxu0 %vm4396_vm0, %v4395_v1 }
 0xe8a   : > { %v1993_v4 = vmul.f32 %v4238_v22, %v5073_v9  ;;  %v2002_v0 = vmul.f32 %v1999_v47, %v1992_v45 }
 0xe8c   : > { %v2003_v57 = vmul.f32 %v1999_v47, %v1993_v4  ;;  %v2012_v37 = vadd.f32 %v2009_v20, %v2002_v0 }
 0xe8e   : > { %v2013_v17 = vadd.f32 %v2009_v20, %v2003_v57 }
 0xe90   : > { %v2017_v7 = vpack.c.bf16 %v2013_v17, %v2012_v37  ;;  %v4240_v27 = vpop.eup %4239 }
 0xe91   : > { %v1994_v5 = vmul.f32 %v4240_v27, %v5080_v32 }
 0xe92   : > { %3886 = vmatmul.mubr.msk.bf16.gmra.mrb[48].mxu0 %vm448_vm2, %v2017_v7  ;;  %v4242_v55 = vpop.eup %4241 }
 0xe93   : > { %3889 = vmatprep.mubr.msk.bf16.mxu0 %vm4396_vm0, %v4395_v1  ;;  %v1995_v9 = vmul.f32 %v4242_v55, %v5083_v53  ;;  %v2004_v35 = vmul.f32 %v1999_v47, %v1994_v5 }
 0xe95   : > { %v2005_v39 = vmul.f32 %v1999_v47, %v1995_v9  ;;  %v2014_v30 = vadd.f32 %v2009_v20, %v2004_v35 }
 0xe97   : > { %v2015_v40 = vadd.f32 %v2009_v20, %v2005_v39 }
 0xe99   : > { %v2018_v12 = vpack.c.bf16 %v2015_v40, %v2014_v30 }
 0xe9b   : > { %3890 = vmatmul.mubr.msk.bf16.gmra.mrb[52].mxu0 %vm448_vm2, %v2018_v12 }
 0xf5b   : > { %v2083_v38 = vpop.f32.mrb[44].mxu0 }
 0xf5c   : > { %v3883_v41 = vpop.f32.mrb[45].mxu0  ;;  %v2084_v16 = vadd.f32 %v2083_v38, %v2027_v15 }
 0xf5d   : > { %v2086_v32 = vpop.f32.mrb[46].mxu0 }
 0xf5e   : > { %v2087_v52 = vadd.f32 %v2086_v32, %v2027_v15  ;;  %v3884_v19 = vpop.f32.mrb[47].mxu0 }
 0xf60   : > { %v5120_v42 = vpack.c.bf16 %v2087_v52, %v2084_v16 }
 0xf62   : > { %2112 = vrot.lane.b32.xlu1 %v5120_v42, %s4397_s17  ;;  %3897 = vmatprep.mubr.msk.bf16.mxu1 %vm647_vm3, %v5120_v42 }
 0xf65   : > { %v2091_v53 = vpop.f32.mrb[48].mxu0 }
 0xf66   : > { %v2092_v47 = vadd.f32 %v2091_v53, %v2027_v15  ;;  %v3887_v58 = vpop.f32.mrb[49].mxu0 }
 0xf67   : > { %v2094_v60 = vpop.f32.mrb[50].mxu0 }
 0xf68   : > { %v5126_v13 = vpack.c.bf16 %v2092_v47, %v2092_v47  ;;  %v3888_v6 = vpop.f32.mrb[51].mxu0  ;;  %v2095_v20 = vadd.f32 %v2094_v60, %v2027_v15 }
 0xf6a   : > { %2114 = vrot.lane.b32.xlu0 %v5126_v13, %s4397_s17 }
 0xf6e   : > { %v2099_v25 = vpop.f32.mrb[52].mxu0 }
 0xf6f   : > { %v2100_v28 = vadd.f32 %v2099_v25, %v2027_v15  ;;  %v3891_v44 = vpop.f32.mrb[53].mxu0 }
 0xf70   : > { %v2102_v3 = vpop.f32.mrb[54].mxu0 }
 0xf71   : > { %v5130_v33 = vpack.c.bf16 %v2100_v28, %v2095_v20  ;;  %v2103_v36 = vadd.f32 %v2102_v3, %v2027_v15  ;;  %v3892_v8 = vpop.f32.mrb[55].mxu0 }
 0xf73   : > { %2178 = vrot.lane.b32.xlu1 %v5130_v33, %s4397_s17  ;;  %3905 = vmatprep.mubr.msk.bf16.mxu0 %vm647_vm3, %v5130_v33  ;;  %v5136_v14 = vpack.c.bf16 %v2103_v36, %v2103_v36 }
 0xf77   : > { %2180 = vrot.lane.b32.xlu1 %v5136_v14, %s4397_s17  ;;  %s326_s17 = scalar_lea.vmem [#allocation2], %s3504_s27 }
 0xfd4   : > { %v2113_v62 = vpop.permute.xlu1 %2112 }
 0xfd5   : > { %v2123_v63 = vsel %vm647_vm3, %v2113_v62, 0  ;;  %4021 = vmatprep.subr.msk.bf16.mxu1 %vm647_vm3, %v2113_v62 }
 0xfd6   : > { %3894 = vmatpush3.bf16.xpose.msra.mxu1 %v2123_v63 }
 0xfdc   : > { %v2115_v10 = vpop.permute.xlu0 %2114 }
 0xfdd   : > { %v2126_v2 = vsel %vm647_vm3, %v2115_v10, 0  ;;  %4022 = vmatprep.subr.msk.bf16.mxu1 %vm647_vm3, %v2115_v10 }
 0xfde   : > { %3896 = vmatpush3.bf16.xpose.msra.mxu1 %v2126_v2 }
 0xfe5   : > { %3898 = vmatmul.mubr.msk.bf16.vlgmr.msra.gmra.mrb[48].mxu1 %vm647_vm3, %v5126_v13  ;;  %v2179_v24 = vpop.permute.xlu1 %2178 }
 0xfe6   : > { %v2189_v45 = vsel %vm647_vm3, %v2179_v24, 0  ;;  %4023 = vmatprep.subr.msk.bf16.mxu0 %vm647_vm3, %v2179_v24 }
 0xfe7   : > { %3902 = vmatpush3.bf16.xpose.msra.mxu0 %v2189_v45 }
 0xfe9   : > { %v2181_v51 = vpop.permute.xlu1 %2180 }
 0xfea   : > { %4024 = vmatprep.subr.msk.bf16.mxu0 %vm647_vm3, %v2181_v51  ;;  %v2192_v22 = vsel %vm647_vm3, %v2181_v51, 0 }
 0xfef   : > { %3904 = vmatpush3.bf16.xpose.msra.mxu0 %v2192_v22 }
 0xff6   : > { %3906 = vmatmul.mubr.msk.bf16.vlgmr.msra.gmra.mrb[56].mxu0 %vm647_vm3, %v5136_v14 }
0x10b8   : > { %v3899_v4 = vpop.f32.mrb[48].mxu1 }
0x10b9   : > { %v2162_v0 = vpop.f32.mrb[49].mxu1  ;;  %v2244_v7 = vmul.f32 0.25, %v3899_v4 }
0x10ba   : > { %v2242_v57 = vmul.f32 0.25, %v2162_v0  ;;  %v3900_v37 = vpop.f32.mrb[50].mxu1 }
0x10bb   : > { %v2165_v17 = vpop.f32.mrb[51].mxu1  ;;  %v2250_v39 = vadd.f32 %v2244_v7, %v4668_v50 }
0x10bc   : > { %v2243_v27 = vmul.f32 0.25, %v2165_v17  ;;  %v2248_v5 = vadd.f32 %v2242_v57, %v4668_v50 }
0x10bd   : > { %v2260_v30 = vsel %vm786_vm5, %v2250_v39, -inf }
0x10be   : > { %v2254_v55 = vsel %vm786_vm5, %v2248_v5, -inf  ;;  %v2249_v9 = vadd.f32 %v2243_v27, %v4668_v50 }
0x10bf   : > { %2255 = vmax.xlane.f32.xlu1 %v2254_v55 }
0x10c0   : > { %v2257_v35 = vsel %vm786_vm5, %v2249_v9, -inf }
0x10c1   : > { %2258 = vmax.xlane.f32.xlu0 %v2257_v35 }
0x10c5   : > { %2261 = vmax.xlane.f32.xlu0 %v2260_v30 }
0x10c9   : > { %v3907_v40 = vpop.f32.mrb[56].mxu0 }
0x10ca   : > { %v2228_v12 = vpop.f32.mrb[57].mxu0  ;;  %v2247_v15 = vmul.f32 0.25, %v3907_v40 }
0x10cb   : > { %v2245_v38 = vmul.f32 0.25, %v2228_v12  ;;  %v3908_v41 = vpop.f32.mrb[58].mxu0 }
0x10cc   : > { %v2231_v32 = vpop.f32.mrb[59].mxu0  ;;  %v2253_v19 = vadd.f32 %v2247_v15, %v4668_v50 }
0x10cd   : > { %v2251_v16 = vadd.f32 %v2245_v38, %v4668_v50  ;;  %v2246_v47 = vmul.f32 0.25, %v2231_v32 }
0x10ce   : > { %v2269_v53 = vsel %vm786_vm5, %v2253_v19, -inf }
0x10cf   : > { %v2263_v52 = vsel %vm786_vm5, %v2251_v16, -inf  ;;  %v2252_v58 = vadd.f32 %v2246_v47, %v4668_v50 }
0x10d0   : > { %2324 = vrot.lane.b32.xlu1 %v5120_v42, %s4399_s21  ;;  %2264 = vmax.xlane.f32.xlu0 %v2263_v52 }
0x10d1   : > { %v2266_v60 = vsel %vm786_vm5, %v2252_v58, -inf }
0x10d4   : > { %2386 = vrot.lane.b32.xlu1 %v5130_v33, %s4399_s21  ;;  %2270 = vmax.xlane.f32.xlu0 %v2269_v53 }
0x10d8   : > { %2452 = vrot.lane.b32.xlu1 %v5120_v42, %s4400_s22 }
0x10ea   : > { %2326 = vrot.lane.b32.xlu0 %v5126_v13, %s4399_s21 }
0x10fc   : > { %2267 = vmax.xlane.f32.xlu1 %v2266_v60 }
0x110d   : > { %2388 = vrot.lane.b32.xlu1 %v5136_v14, %s4399_s21  ;;  %s3441_s21 = sshll.u32 %s326_s17, 4  ;;  %s5457_s21 = int_to_ptr.vmem [resolvable:$true] %s3441_s21 }
0x110e   : > { %s4331_s13 = scalar_lea.vmem %s5457_s21, 32  ;;  %p4338_p0 = scmp.lt.s32.totalorder %s5457_s21, %s4336_s25 }
0x110f   : > { %p4332_p11 = scmp.ne.s32.totalorder %s5457_s21, %s4331_s13  ;;  %p4339_p1 = scmp.lt.s32.totalorder %s4337_s26, %s4331_s13 }
0x1111   : > { %p4333_p12 = pnand %p4332_p11, %p4494_p5  ;;  %p4340_p2 = por %p4339_p1, %p4338_p0 }
0x1113   : > { %p4334_p13 = pneg %p4333_p12 }
0x1115   : > { %p4341_p3 = pnand %p4340_p2, %p4334_p13 }
0x114c   : > { %v2256_v6 = vpop.xlane.xlu1 %2255 }
0x114d   : > { %v2272_v44 = vsub.f32 %v2248_v5, %v2256_v6 }
0x114e   : > { %v2259_v25 = vpop.xlane.xlu0 %2258 }
0x114f   : > { %v2273_v20 = vsub.f32 %v2249_v9, %v2259_v25  ;;  %v2278_v63 = vmul.f32 1.442695, %v2272_v44 }
0x1150   : > { %v2325_v28 = vpop.permute.xlu1 %2324 }
0x1151   : > { %v2280_v3 = vmul.f32 1.442695, %v2273_v20  ;;  %3909 = vmatprep.subr.bf16.mxu1 %v2325_v28 }
0x1152   : > { %3910 = vmatpush3.bf16.msra.mxu1 %v2325_v28  ;;  %v2262_v36 = vpop.xlane.xlu0 %2261 }
0x1153   : > { %4243 = vpow2.f32 %v2280_v3  ;;  %v2274_v8 = vsub.f32 %v2250_v39, %v2262_v36 }
0x1154   : > { %v2387_v62 = vpop.permute.xlu1 %2386 }
0x1155   : > { %v2282_v10 = vmul.f32 1.442695, %v2274_v8  ;;  %3917 = vmatprep.subr.bf16.mxu0 %v2387_v62 }
0x1156   : > { %3918 = vmatpush3.bf16.msra.mxu0 %v2387_v62 }
0x1157   : > { %4245 = vpow2.f32 %v2282_v10 }
0x1158   : > { %4247 = vpow2.f32 %v2278_v63  ;;  %v2453_v9 = vpop.permute.xlu1 %2452 }
0x1159   : > { %v2463_v63 = vsel %vm647_vm3, %v2453_v9, 0 }
0x115d   : > { %v4244_v2 = vpop.eup %4243  ;;  %v2265_v24 = vpop.xlane.xlu0 %2264 }
0x115e   : > { %v2293_v45 = vsel %vm786_vm5, %v4244_v2, 0.0  ;;  %v2275_v22 = vsub.f32 %v2251_v16, %v2265_v24 }
0x115f   : > { %2294 = vadd.xlane.f32.xlu0 %v2293_v45 }
0x1160   : > { %v2284_v17 = vmul.f32 1.442695, %v2275_v22 }
0x1161   : > { %v4246_v51 = vpop.eup %4245  ;;  %v2271_v4 = vpop.xlane.xlu0 %2270 }
0x1162   : > { %v2296_v0 = vsel %vm786_vm5, %v4246_v51, 0.0  ;;  %v4248_v57 = vpop.eup %4247  ;;  %v2277_v37 = vsub.f32 %v2253_v19, %v2271_v4 }
0x1163   : > { %2297 = vadd.xlane.f32.xlu1 %v2296_v0  ;;  %v2290_v5 = vsel %vm786_vm5, %v4248_v57, 0.0 }
0x1164   : > { %v2288_v7 = vmul.f32 1.442695, %v2277_v37 }
0x1165   : > { %v2327_v27 = vpop.permute.xlu0 %2326 }
0x1166   : > { %4249 = vpow2.f32 %v2288_v7  ;;  %v2336_v55 = vsel %vm868_vm6, %v2327_v27, 0  ;;  %4025 = vmatprep.subr.msk.bf16.mxu1 %vm868_vm6, %v2327_v27 }
0x1167   : > { %2291 = vadd.xlane.f32.xlu1 %v2290_v5  ;;  %3912 = vmatpush3.bf16.msra.mxu1 %v2336_v55  ;;  %4251 = vpow2.f32 %v2284_v17 }
0x1168   : > { %4027 = vmatprep.subr.msk.bf16.mxu1 %vm647_vm3, %v2453_v9 }
0x1170   : > { %v4250_v35 = vpop.eup %4249 }
0x1171   : > { %v2305_v39 = vsel %vm786_vm5, %v4250_v35, 0.0  ;;  %v4252_v30 = vpop.eup %4251 }
0x1172   : > { %2306 = vadd.xlane.f32.xlu0 %v2305_v39  ;;  %v2299_v40 = vsel %vm786_vm5, %v4252_v30, 0.0 }
0x1176   : > { %2300 = vadd.xlane.f32.xlu0 %v2299_v40 }
0x1178   : > { %2520 = vrot.lane.b32.xlu1 %v5130_v33, %s4400_s22 }
0x1189   : > { %v2268_v12 = vpop.xlane.xlu1 %2267 }
0x118a   : > { %v2276_v15 = vsub.f32 %v2252_v58, %v2268_v12 }
0x118c   : > { %v2286_v38 = vmul.f32 1.442695, %v2276_v15  ;;  %2454 = vrot.lane.b32.xlu0 %v5126_v13, %s4400_s22 }
0x118d   : > { %v2389_v41 = vpop.permute.xlu1 %2388 }
0x118e   : > { %4253 = vpow2.f32 %v2286_v38  ;;  %v2398_v32 = vsel %vm868_vm6, %v2389_v41, 0  ;;  %4026 = vmatprep.subr.msk.bf16.mxu0 %vm868_vm6, %v2389_v41 }
0x118f   : > { %3920 = vmatpush3.bf16.msra.mxu0 %v2398_v32 }
0x1190   : > { %2448 = vrot.lane.b32.xlu0 %v5120_v42, %s4401_s23 }
0x1194   : > { %2522 = vrot.lane.b32.xlu0 %v5136_v14, %s4400_s22 }
0x1198   : > { %v4254_v16 = vpop.eup %4253  ;;  %2518 = vrot.lane.b32.xlu0 %v5136_v14, %s4401_s23 }
0x1199   : > { %v2302_v52 = vsel %vm786_vm5, %v4254_v16, 0.0 }
0x119c   : > { %2303 = vadd.xlane.f32.xlu1 %v2302_v52 }
0x11ad   : > { %2450 = vrot.lane.b32.xlu1 %v5126_v13, %s4401_s23 }
0x11b1   : > { %2516 = vrot.lane.b32.xlu1 %v5130_v33, %s4401_s23 }
0x11ec   : > { %v2295_v19 = vpop.xlane.xlu0 %2294 }
0x11f0   : > { %v2298_v53 = vpop.xlane.xlu1 %2297 }
0x11f1   : > { %4255 = vrcp.f32 %v2298_v53 }
0x11f2   : > { %4257 = vrcp.f32 %v2295_v19 }
0x11f4   : > { %v2292_v47 = vpop.xlane.xlu1 %2291 }
0x11f5   : > { %4259 = vrcp.f32 %v2292_v47 }
0x11f8   : > { %v2521_v58 = vpop.permute.xlu1 %2520 }
0x11f9   : > { %4029 = vmatprep.subr.msk.bf16.mxu0 %vm647_vm3, %v2521_v58  ;;  %v2531_v5 = vsel %vm647_vm3, %v2521_v58, 0 }
0x11fb   : > { %v4256_v60 = vpop.eup %4255 }
0x11fc   : > { %v4258_v6 = vpop.eup %4257  ;;  %v2316_v20 = vmul.f32 %v4256_v60, %v4246_v51 }
0x11fd   : > { %v2315_v3 = vmul.f32 %v4258_v6, %v4244_v2 }
0x11fe   : > { %v2321_v8 = vpack.c.bf16 %v2316_v20, %v2316_v20 }
0x11ff   : > { %v4260_v25 = vpop.eup %4259  ;;  %v2307_v28 = vpop.xlane.xlu0 %2306 }
0x1200   : > { %v2314_v44 = vmul.f32 %v4260_v25, %v4248_v57  ;;  %4261 = vrcp.f32 %v2307_v28 }
0x1202   : > { %v2320_v36 = vpack.c.bf16 %v2315_v3, %v2314_v44 }
0x1203   : > { %v2301_v62 = vpop.xlane.xlu0 %2300 }
0x1204   : > { %3913 = vmatprep.mubr.msk.bf16.mxu1 %vm786_vm5, %v2320_v36  ;;  %4263 = vrcp.f32 %v2301_v62 }
0x1205   : > { %3914 = vmatmul.mubr.msk.bf16.vlgmr.msra.gmra.mrb[52].mxu1 %vm786_vm5, %v2321_v8 }
0x1206   : > { %3926 = vmatpush3.bf16.xpose.msra.mxu1 %v2463_v63 }
0x1207   : > { %v2455_v10 = vpop.permute.xlu0 %2454 }
0x1208   : > { %4028 = vmatprep.subr.msk.bf16.mxu1 %vm647_vm3, %v2455_v10  ;;  %v2466_v45 = vsel %vm647_vm3, %v2455_v10, 0 }
0x120a   : > { %v4262_v22 = vpop.eup %4261 }
0x120b   : > { %v2449_v24 = vpop.permute.xlu0 %2448  ;;  %v2319_v57 = vmul.f32 %v4262_v22, %v4250_v35 }
0x120c   : > { %3929 = vmatprep.mubr.msk.bf16.mxu1 %vm647_vm3, %v2449_v24 }
0x120d   : > { %v2323_v27 = vpack.c.bf16 %v2319_v57, %v2319_v57 }
0x120e   : > { %3928 = vmatpush3.bf16.xpose.msra.mxu1 %v2466_v45  ;;  %v4264_v4 = vpop.eup %4263 }
0x120f   : > { %v2317_v37 = vmul.f32 %v4264_v4, %v4252_v30  ;;  %v2523_v9 = vpop.permute.xlu0 %2522 }
0x1210   : > { %v2534_v39 = vsel %vm647_vm3, %v2523_v9, 0 }
0x1213   : > { %v2519_v35 = vpop.permute.xlu0 %2518 }
0x1229   : > { %v2304_v2 = vpop.xlane.xlu1 %2303 }
0x122a   : > { %4265 = vrcp.f32 %v2304_v2 }
0x122d   : > { %v2451_v51 = vpop.permute.xlu1 %2450 }
0x122e   : > { %3930 = vmatmul.mubr.msk.bf16.vlgmr.msra.gmra.mrb[56].mxu1 %vm647_vm3, %v2451_v51 }
0x1231   : > { %v2517_v55 = vpop.permute.xlu1 %2516 }
0x1234   : > { %v4266_v0 = vpop.eup %4265 }
0x1235   : > { %v2318_v17 = vmul.f32 %v4266_v0, %v4254_v16 }
0x1237   : > { %v2322_v7 = vpack.c.bf16 %v2318_v17, %v2317_v37 }
0x1239   : > { %3921 = vmatprep.mubr.msk.bf16.mxu0 %vm786_vm5, %v2322_v7 }
0x123a   : > { %3922 = vmatmul.mubr.msk.bf16.vlgmr.msra.gmra.mrb[60].mxu0 %vm786_vm5, %v2323_v27 }
0x123b   : > { %3934 = vmatpush3.bf16.xpose.msra.mxu0 %v2531_v5  ;;  %3937 = vmatprep.mubr.msk.bf16.mxu0 %vm647_vm3, %v2517_v55 }
0x123c   : > { %4030 = vmatprep.subr.msk.bf16.mxu0 %vm647_vm3, %v2523_v9 }
0x1243   : > { %3936 = vmatpush3.bf16.xpose.msra.mxu0 %v2534_v39 }
0x124a   : > { %3938 = vmatmul.mubr.msk.bf16.vlgmr.msra.gmra.mrb[64].mxu0 %vm647_vm3, %v2519_v35 }
0x12d8   : > { %v5214_v30 = vpop.f32.mrb[52].mxu1 }
0x12d9   : > { %v5216_v40 = vpop.f32.mrb[53].mxu1 }
0x12da   : > { %v3916_v12 = vpop.f32.mrb[54].mxu1 }
0x12db   : > { %v5218_v15 = vpop.f32.mrb[55].mxu1 }
0x1301   : > { %v3931_v38 = vpop.f32.mrb[56].mxu1 }
0x1302   : > { %v2502_v41 = vpop.f32.mrb[57].mxu1  ;;  %v2586_v19 = vmul.f32 0.25, %v3931_v38 }
0x1303   : > { %v2584_v32 = vmul.f32 0.25, %v2502_v41  ;;  %v3932_v16 = vpop.f32.mrb[58].mxu1 }
0x1304   : > { %v2505_v52 = vpop.f32.mrb[59].mxu1  ;;  %v2592_v6 = vadd.f32 %v2586_v19, %v4668_v50 }
0x1305   : > { %v2590_v53 = vadd.f32 %v2584_v32, %v4668_v50  ;;  %v2585_v47 = vmul.f32 0.25, %v2505_v52 }
0x1306   : > { %v2602_v28 = vsel %vm786_vm5, %v2592_v6, -inf }
0x1307   : > { %v2591_v58 = vadd.f32 %v2585_v47, %v4668_v50  ;;  %v2596_v60 = vsel %vm786_vm5, %v2590_v53, -inf }
0x1308   : > { %2597 = vmax.xlane.f32.xlu1 %v2596_v60 }
0x1309   : > { %v2599_v25 = vsel %vm786_vm5, %v2591_v58, -inf }
0x130a   : > { %2600 = vmax.xlane.f32.xlu0 %v2599_v25 }
0x130d   : > { %v5225_v20 = vpop.f32.mrb[60].mxu0 }
0x130e   : > { %v5228_v44 = vpop.f32.mrb[61].mxu0  ;;  %2603 = vmax.xlane.f32.xlu0 %v2602_v28 }
0x130f   : > { %v3924_v3 = vpop.f32.mrb[62].mxu0 }
0x1310   : > { %v5230_v36 = vpop.f32.mrb[63].mxu0 }
0x131d   : > { %v3939_v8 = vpop.f32.mrb[64].mxu0 }
0x131e   : > { %v2570_v62 = vpop.f32.mrb[65].mxu0  ;;  %v2589_v63 = vmul.f32 0.25, %v3939_v8 }
0x131f   : > { %v2587_v10 = vmul.f32 0.25, %v2570_v62  ;;  %v3940_v24 = vpop.f32.mrb[66].mxu0 }
0x1320   : > { %v2573_v45 = vpop.f32.mrb[67].mxu0  ;;  %v2595_v22 = vadd.f32 %v2589_v63, %v4668_v50 }
0x1321   : > { %v2593_v2 = vadd.f32 %v2587_v10, %v4668_v50  ;;  %v2588_v51 = vmul.f32 0.25, %v2573_v45 }
0x1322   : > { %v2611_v37 = vsel %vm786_vm5, %v2595_v22, -inf }
0x1323   : > { %v2594_v4 = vadd.f32 %v2588_v51, %v4668_v50  ;;  %v2605_v0 = vsel %vm786_vm5, %v2593_v2, -inf }
0x1324   : > { %2606 = vmax.xlane.f32.xlu0 %v2605_v0 }
0x1325   : > { %v2608_v57 = vsel %vm786_vm5, %v2594_v4, -inf }
0x1326   : > { %2609 = vmax.xlane.f32.xlu1 %v2608_v57 }
0x1328   : > { %2612 = vmax.xlane.f32.xlu0 %v2611_v37 }
0x1337   : > { %2666 = vrot.lane.b32.xlu1 %v5120_v42, %s4402_s24 }
0x1395   : > { %v2598_v17 = vpop.xlane.xlu1 %2597 }
0x1396   : > { %v2614_v5 = vsub.f32 %v2590_v53, %v2598_v17 }
0x1397   : > { %v2601_v7 = vpop.xlane.xlu0 %2600 }
0x1398   : > { %v2615_v27 = vsub.f32 %v2591_v58, %v2601_v7  ;;  %v2620_v39 = vmul.f32 1.442695, %v2614_v5 }
0x139a   : > { %v2622_v55 = vmul.f32 1.442695, %v2615_v27 }
0x139b   : > { %v2604_v9 = vpop.xlane.xlu0 %2603 }
0x139c   : > { %4267 = vpow2.f32 %v2622_v55  ;;  %v2616_v50 = vsub.f32 %v2592_v6, %v2604_v9 }
0x139e   : > { %v2624_v35 = vmul.f32 1.442695, %v2616_v50 }
0x13a0   : > { %4269 = vpow2.f32 %v2624_v35 }
0x13a1   : > { %4271 = vpow2.f32 %v2620_v39 }
0x13a6   : > { %v4268_v12 = vpop.eup %4267 }
0x13a7   : > { %v2635_v38 = vsel %vm786_vm5, %v4268_v12, 0.0 }
0x13a8   : > { %2636 = vadd.xlane.f32.xlu0 %v2635_v38 }
0x13aa   : > { %v4270_v41 = vpop.eup %4269 }
0x13ab   : > { %v2638_v32 = vsel %vm786_vm5, %v4270_v41, 0.0  ;;  %v4272_v42 = vpop.eup %4271 }
0x13ac   : > { %2639 = vadd.xlane.f32.xlu1 %v2638_v32  ;;  %v2632_v16 = vsel %vm786_vm5, %v4272_v42, 0.0 }
0x13b0   : > { %2633 = vadd.xlane.f32.xlu1 %v2632_v16 }
0x13b1   : > { %v2607_v52 = vpop.xlane.xlu0 %2606 }
0x13b2   : > { %v2617_v53 = vsub.f32 %v2593_v2, %v2607_v52 }
0x13b3   : > { %v2610_v19 = vpop.xlane.xlu1 %2609 }
0x13b4   : > { %v2626_v6 = vmul.f32 1.442695, %v2617_v53  ;;  %v2618_v63 = vsub.f32 %v2594_v4, %v2610_v19  ;;  %v4127_v53 = vld [vmem:[%s5504_s5 + $0x10] sm:$0xff]  }
0x13b5   : > { %v2613_v47 = vpop.xlane.xlu0 %2612 }
0x13b6   : > { %v2619_v58 = vsub.f32 %v2595_v22, %v2613_v47  ;;  %v2628_v10 = vmul.f32 1.442695, %v2618_v63  ;;  %v4128_v47 = vld [vmem:[%s5504_s5 + $0x18] sm:$0xff]  }
0x13b7   : > { %v2667_v60 = vpop.permute.xlu1 %2666 }
0x13b8   : > { %v2630_v25 = vmul.f32 1.442695, %v2619_v58  ;;  %3941 = vmatprep.subr.bf16.mxu1 %v2667_v60 }
0x13b9   : > { %3942 = vmatpush3.bf16.msra.mxu1 %v2667_v60 }
0x13ba   : > { %4273 = vpow2.f32 %v2630_v25 }
0x13bb   : > { %4275 = vpow2.f32 %v2626_v6 }
0x13bc   : > { %4277 = vpow2.f32 %v2628_v10 }
0x13c1   : > { %2728 = vrot.lane.b32.xlu1 %v5130_v33, %s4402_s24 }
0x13c4   : > { %v4274_v28 = vpop.eup %4273 }
0x13c5   : > { %v2647_v3 = vsel %vm786_vm5, %v4274_v28, 0.0  ;;  %v4276_v8 = vpop.eup %4275 }
0x13c6   : > { %2648 = vadd.xlane.f32.xlu0 %v2647_v3  ;;  %v2641_v62 = vsel %vm786_vm5, %v4276_v8, 0.0  ;;  %v4278_v24 = vpop.eup %4277 }
0x13c7   : > { %v2644_v45 = vsel %vm786_vm5, %v4278_v24, 0.0 }
0x13ca   : > { %2642 = vadd.xlane.f32.xlu0 %v2641_v62 }
0x13e0   : > { %2668 = vrot.lane.b32.xlu0 %v5126_v13, %s4402_s24 }
0x13e5   : > { %2645 = vadd.xlane.f32.xlu1 %v2644_v45 }
0x13f6   : > { %2730 = vrot.lane.b32.xlu1 %v5136_v14, %s4402_s24  ;;  %s5513_s24 = smov 16  }
0x1435   : > { %v2637_v33 = vpop.xlane.xlu0 %2636 }
0x1436   : > { %4279 = vrcp.f32 %v2637_v33 }
0x1439   : > { %v2640_v2 = vpop.xlane.xlu1 %2639 }
0x143d   : > { %v2634_v51 = vpop.xlane.xlu1 %2633 }
0x143e   : > { %4281 = vrcp.f32 %v2634_v51 }
0x143f   : > { %4283 = vrcp.f32 %v2640_v2 }
0x1440   : > { %v4280_v4 = vpop.eup %4279 }
0x1441   : > { %v2729_v22 = vpop.permute.xlu1 %2728  ;;  %v2657_v37 = vmul.f32 %v4280_v4, %v4268_v12 }
0x1442   : > { %3949 = vmatprep.subr.bf16.mxu0 %v2729_v22 }
0x1443   : > { %3950 = vmatpush3.bf16.msra.mxu0 %v2729_v22 }
0x1448   : > { %v4282_v0 = vpop.eup %4281 }
0x1449   : > { %v2656_v57 = vmul.f32 %v4282_v0, %v4272_v42  ;;  %v4284_v7 = vpop.eup %4283 }
0x144a   : > { %v2658_v14 = vmul.f32 %v4284_v7, %v4270_v41 }
0x144b   : > { %v2662_v13 = vpack.c.bf16 %v2657_v37, %v2656_v57 }
0x144c   : > { %v2663_v9 = vpack.c.bf16 %v2658_v14, %v2658_v14 }
0x144d   : > { %3945 = vmatprep.mubr.msk.bf16.mxu1 %vm786_vm5, %v2662_v13 }
0x1453   : > { %v2649_v17 = vpop.xlane.xlu0 %2648 }
0x1454   : > { %4285 = vrcp.f32 %v2649_v17 }
0x1457   : > { %v2643_v27 = vpop.xlane.xlu0 %2642 }
0x1458   : > { %4287 = vrcp.f32 %v2643_v27 }
0x145b   : > { %v2669_v5 = vpop.permute.xlu0 %2668 }
0x145c   : > { %v2678_v55 = vsel %vm868_vm6, %v2669_v5, 0  ;;  %4031 = vmatprep.subr.msk.bf16.mxu1 %vm868_vm6, %v2669_v5 }
0x145d   : > { %3944 = vmatpush3.bf16.msra.mxu1 %v2678_v55 }
0x145e   : > { %3957 = vmatprep.subr.bf16.mxu1 %v4395_v1  ;;  %v4286_v12 = vpop.eup %4285 }
0x145f   : > { %v2661_v32 = vmul.f32 %v4286_v12, %v4274_v28 }
0x1460   : > { %3946 = vmatmul.mubr.msk.bf16.vlgmr.msra.gmra.mrb[60].mxu1 %vm786_vm5, %v2663_v9 }
0x1461   : > { %3961 = vmatprep.mubr.msk.bf16.mxu1 %vm4396_vm0, %v4395_v1  ;;  %v2665_v19 = vpack.c.bf16 %v2661_v32, %v2661_v32  ;;  %3958 = vmatpush3.bf16.msra.mxu1 %v4127_v53 }
0x1462   : > { %v4288_v38 = vpop.eup %4287  ;;  %3959 = vmatprep.subr.bf16.mxu1 %v4395_v1 }
0x1463   : > { %v2659_v42 = vmul.f32 %v4288_v38, %v4276_v8 }
0x1465   : > { %3960 = vmatpush3.bf16.msra.mxu1 %v4128_v47 }
0x1466   : > { %3989 = vmatprep.subr.bf16.mxu1 %v4395_v1 }
0x1472   : > { %v2646_v50 = vpop.xlane.xlu1 %2645 }
0x1473   : > { %4289 = vrcp.f32 %v2646_v50 }
0x1476   : > { %v2731_v39 = vpop.permute.xlu1 %2730 }
0x1477   : > { %v2740_v35 = vsel %vm868_vm6, %v2731_v39, 0  ;;  %4032 = vmatprep.subr.msk.bf16.mxu0 %vm868_vm6, %v2731_v39 }
0x1478   : > { %3952 = vmatpush3.bf16.msra.mxu0 %v2740_v35 }
0x1479   : > { %3973 = vmatprep.subr.bf16.mxu0 %v4395_v1 }
0x147d   : > { %v4290_v41 = vpop.eup %4289 }
0x147e   : > { %v2660_v16 = vmul.f32 %v4290_v41, %v4278_v24 }
0x1480   : > { %v2664_v52 = vpack.c.bf16 %v2660_v16, %v2659_v42 }
0x1482   : > { %3953 = vmatprep.mubr.msk.bf16.mxu0 %vm786_vm5, %v2664_v52 }
0x1483   : > { %3954 = vmatmul.mubr.msk.bf16.vlgmr.msra.gmra.mrb[68].mxu0 %vm786_vm5, %v2665_v19  ;;  %vm3379_vm5 = vcmask 254976  }
0x1484   : > { %3977 = vmatprep.mubr.msk.bf16.mxu0 %vm4396_vm0, %v4395_v1 }
0x1533   : > { %v3947_v58 = vpop.f32.mrb[60].mxu1 }
0x1534   : > { %v2714_v60 = vpop.f32.mrb[61].mxu1 }
0x1535   : > { %v3948_v6 = vpop.f32.mrb[62].mxu1 }
0x1536   : > { %v2717_v25 = vpop.f32.mrb[63].mxu1 }
0x1537   : > { %v4097_v28 = vpack.i.bf16 %v2717_v25, %v2714_v60 }
0x1539   : > { %4098 = vrot.lane.b32.xlu1 %v4097_v28, %s5513_s24 }
0x1556   : > { %v3955_v3 = vpop.f32.mrb[68].mxu0 }
0x1557   : > { %v2776_v8 = vpop.f32.mrb[69].mxu0 }
0x1558   : > { %v4102_v62 = vpack.i.bf16 %v2776_v8, %v3947_v58  ;;  %v3956_v63 = vpop.f32.mrb[70].mxu0 }
0x1559   : > { %v2779_v10 = vpop.f32.mrb[71].mxu0 }
0x155a   : > { %v4107_v24 = vpack.i.bf16 %v3955_v3, %v2779_v10  ;;  %4103 = vrot.lane.b32.xlu0 %v4102_v62, %s5513_s24 }
0x155c   : > { %4108 = vrot.lane.b32.xlu1 %v4107_v24, %s5513_s24  ;;  %s5455_s24 = scalar_lea.hbm %s5508_s9, %s3610_s28 }
0x15ab   : > { %v4099_v45 = vpop.permute.xlu1 %4098 }
0x15ac   : > { %v4101_v33 = vunpack.i.h.bf16 %v4099_v45  ;;  %v4100_v2 = vunpack.i.l.bf16 %v4099_v45 }
0x15ae   : > { %v2815_v51 = vsel %vm647_vm3, %v5218_v15, %v4101_v33  ;;  %v2814_v22 = vsel %vm647_vm3, %v5216_v40, %v4100_v2 }
0x15af   : > { %v2820_v4 = vpack.c.bf16 %v2815_v51, %v2814_v22 }
0x15b1   : > { %3962 = vmatmul.mubr.msk.bf16.vlgmr.msra.gmra.mrb[64].mxu1 %vm448_vm2, %v2820_v4 }
0x15b2   : > { %3965 = vmatprep.mubr.msk.bf16.mxu1 %vm4396_vm0, %v4395_v1 }
0x15cc   : > { %v4104_v0 = vpop.permute.xlu0 %4103 }
0x15cd   : > { %v4106_v57 = vunpack.i.h.bf16 %v4104_v0  ;;  %v4105_v37 = vunpack.i.l.bf16 %v4104_v0 }
0x15ce   : > { %v4109_v13 = vpop.permute.xlu1 %4108 }
0x15cf   : > { %v2817_v17 = vsel %vm647_vm3, %v5228_v44, %v4106_v57  ;;  %v2816_v7 = vsel %vm647_vm3, %v5214_v30, %v4105_v37  ;;  %v4111_v15 = vunpack.i.h.bf16 %v4109_v13  ;;  %v4110_v27 = vunpack.i.l.bf16 %v4109_v13  ;;  %v4129_v13 = vld [vmem:[%s5505_s6 + $0x10] sm:$0xff]  }
0x15d0   : > { %v2821_v14 = vpack.c.bf16 %v2817_v17, %v2816_v7  ;;  %v2831_v30 = vrot.slane %v5101_v43, %v1363_v54  ;;  %3974 = vmatpush3.bf16.msra.mxu0 %v4129_v13  ;;  %v4133_v13 = vld [vmem:[%s5506_s7 + $0x30] sm:$0xff]  }
0x15d1   : > { %v2819_v40 = vsel %vm647_vm3, %v5225_v20, %v4111_v15  ;;  %v2818_v5 = vsel %vm647_vm3, %v5230_v36, %v4110_v27  ;;  %3975 = vmatprep.subr.bf16.mxu0 %v4395_v1 }
0x15d2   : > { %v2822_v55 = vpack.c.bf16 %v2819_v40, %v2818_v5  ;;  %3966 = vmatmul.mubr.msk.bf16.gmra.mrb[68].mxu1 %vm448_vm2, %v2821_v14  ;;  %v4130_v14 = vld [vmem:[%s5505_s6 + $0x18] sm:$0xff]  }
0x15d3   : > { %3969 = vmatprep.mubr.msk.bf16.mxu1 %vm4396_vm0, %v4395_v1 }
0x15d4   : > { %3976 = vmatpush3.bf16.msra.mxu0 %v4130_v14 }
0x15da   : > { %3970 = vmatmul.mubr.msk.bf16.gmra.mrb[72].mxu1 %vm448_vm2, %v2822_v55 }
0x15db   : > { %3997 = vmatprep.mubr.msk.bf16.mxu1 %vm4396_vm0, %v4395_v1 }
0x1684   : > { %v2887_v44 = vpop.f32.mrb[64].mxu1 }
0x1685   : > { %v2888_v20 = vadd.f32 %v2887_v44, %v2831_v30  ;;  %v3963_v9 = vpop.f32.mrb[65].mxu1 }
0x1686   : > { %v2890_v50 = vpop.f32.mrb[66].mxu1 }
0x1687   : > { %v5302_v36 = vadd.f32 %v2888_v20, %v5038_v21  ;;  %v2891_v39 = vadd.f32 %v2890_v50, %v2831_v30  ;;  %v3964_v35 = vpop.f32.mrb[67].mxu1 }
0x1689   : > { %v2911_v12 = vadd.f32 %v2891_v39, %v5041_v46  ;;  %v2916_v38 = vsel %vm448_vm2, %v5302_v36, 0.0 }
0x168a   : > { %2917 = vadd.xlane.f32.xlu0 %v2916_v38 }
0x168b   : > { %v2919_v41 = vsel %vm448_vm2, %v2911_v12, 0.0 }
0x168c   : > { %2920 = vadd.xlane.f32.xlu1 %v2919_v41 }
0x16a5   : > { %v2895_v32 = vpop.f32.mrb[68].mxu1 }
0x16a6   : > { %v2896_v54 = vadd.f32 %v2895_v32, %v2831_v30  ;;  %v3967_v42 = vpop.f32.mrb[69].mxu1 }
0x16a7   : > { %v2898_v16 = vpop.f32.mrb[70].mxu1 }
0x16a8   : > { %v2912_v52 = vadd.f32 %v2896_v54, %v5048_v31  ;;  %v2899_v19 = vadd.f32 %v2898_v16, %v2831_v30  ;;  %v3968_v21 = vpop.f32.mrb[71].mxu1  ;;  %v5345_v54 = vld [vmem:[%s5507_s8 + $0x8] sm:$0xff] }
0x16a9   : > { %v5350_v42 = vrot.slane %v5345_v54, %v1539_v59 }
0x16aa   : > { %v5310_v53 = vadd.f32 %v2899_v19, %v5051_v56  ;;  %v2922_v46 = vsel %vm448_vm2, %v2912_v52, 0.0 }
0x16ab   : > { %2923 = vadd.xlane.f32.xlu0 %v2922_v46 }
0x16ac   : > { %v2925_v6 = vsel %vm448_vm2, %v5310_v53, 0.0 }
0x16ad   : > { %v2903_v47 = vpop.f32.mrb[72].mxu1 }
0x16ae   : > { %v2904_v58 = vadd.f32 %v2903_v47, %v2831_v30  ;;  %v3971_v60 = vpop.f32.mrb[73].mxu1 }
0x16af   : > { %2926 = vadd.xlane.f32.xlu0 %v2925_v6  ;;  %v2906_v25 = vpop.f32.mrb[74].mxu1 }
0x16b0   : > { %v2907_v28 = vadd.f32 %v2906_v25, %v2831_v30  ;;  %v3972_v3 = vpop.f32.mrb[75].mxu1  ;;  %v2914_v17 = vadd.f32 %v2904_v58, %v5058_v11 }
0x16b2   : > { %v2915_v40 = vadd.f32 %v2907_v28, %v5061_v61  ;;  %v2928_v55 = vsel %vm448_vm2, %v2914_v17, 0.0  ;;  %v5339_v61 = vrot.slane %v5101_v43, %v1529_v48 }
0x16b4   : > { %v2931_v11 = vsel %vm448_vm2, %v2915_v40, 0.0 }
0x1717   : > { %v2918_v8 = vpop.xlane.xlu0 %2917 }
0x1718   : > { %v2934_v31 = vmul.f32 0.03125, %v2918_v8 }
0x1719   : > { %v2921_v62 = vpop.xlane.xlu1 %2920 }
0x171a   : > { %v2940_v63 = vsub.f32 %v5302_v36, %v2934_v31  ;;  %v2935_v56 = vmul.f32 0.03125, %v2921_v62 }
0x171c   : > { %v2941_v10 = vsub.f32 %v2911_v12, %v2935_v56  ;;  %v2946_v24 = vmul.f32 %v2940_v63, %v2940_v63 }
0x171e   : > { %v2952_v45 = vsel %vm448_vm2, %v2946_v24, 0.0  ;;  %v2947_v33 = vmul.f32 %v2941_v10, %v2941_v10 }
0x171f   : > { %2953 = vadd.xlane.f32.xlu0 %v2952_v45 }
0x1720   : > { %v2955_v2 = vsel %vm448_vm2, %v2947_v33, 0.0 }
0x1721   : > { %2956 = vadd.xlane.f32.xlu1 %v2955_v2 }
0x1738   : > { %v2924_v51 = vpop.xlane.xlu0 %2923 }
0x1739   : > { %v2936_v22 = vmul.f32 0.03125, %v2924_v51 }
0x173b   : > { %v5318_v4 = vsub.f32 %v2912_v52, %v2936_v22 }
0x173c   : > { %v2927_v0 = vpop.xlane.xlu0 %2926 }
0x173d   : > { %v2937_v57 = vmul.f32 0.03125, %v2927_v0  ;;  %v2948_v37 = vmul.f32 %v5318_v4, %v5318_v4 }
0x173f   : > { %v2943_v7 = vsub.f32 %v5310_v53, %v2937_v57  ;;  %v2958_v15 = vsel %vm448_vm2, %v2948_v37, 0.0  ;;  %v4132_v37 = vld [vmem:[%s5506_s7 + $0x28] sm:$0xff]  }
0x1740   : > { %2959 = vadd.xlane.f32.xlu0 %v2958_v15 }
0x1741   : > { %v2949_v27 = vmul.f32 %v2943_v7, %v2943_v7 }
0x1743   : > { %v2961_v5 = vsel %vm448_vm2, %v2949_v27, 0.0 }
0x1744   : > { %2962 = vadd.xlane.f32.xlu1 %v2961_v5  ;;  %2929 = vadd.xlane.f32.xlu0 %v2928_v55 }
0x1748   : > { %2932 = vadd.xlane.f32.xlu1 %v2931_v11 }
0x17ac   : > { %v2954_v30 = vpop.xlane.xlu0 %2953 }
0x17ad   : > { %v2970_v44 = vmul.f32 0.03125, %v2954_v30 }
0x17ae   : > { %v2957_v20 = vpop.xlane.xlu1 %2956 }
0x17af   : > { %v2976_v9 = vadd.f32 1e-06, %v2970_v44  ;;  %v2971_v50 = vmul.f32 0.03125, %v2957_v20 }
0x17b1   : > { %4291 = vrsqrt.f32 %v2976_v9  ;;  %v2977_v39 = vadd.f32 1e-06, %v2971_v50 }
0x17b3   : > { %4293 = vrsqrt.f32 %v2977_v39 }
0x17bb   : > { %v4292_v35 = vpop.eup %4291 }
0x17bc   : > { %v2988_v12 = vmul.f32 %v4292_v35, %v2940_v63 }
0x17bd   : > { %v4294_v38 = vpop.eup %4293 }
0x17be   : > { %v2998_v41 = vmul.f32 %v5339_v61, %v2988_v12  ;;  %v2989_v32 = vmul.f32 %v4294_v38, %v2941_v10  ;;  %v5391_v12 = vrot.slane %v5345_v54, %v1556_v26 }
0x17c0   : > { %v2999_v16 = vmul.f32 %v5339_v61, %v2989_v32  ;;  %v3008_v48 = vadd.f32 %v5350_v42, %v2998_v41 }
0x17c2   : > { %v3009_v43 = vadd.f32 %v5350_v42, %v2999_v16 }
0x17c4   : > { %v3014_v52 = vpack.c.bf16 %v3009_v43, %v3008_v48 }
0x17c6   : > { %3978 = vmatmul.mubr.msk.bf16.vlgmr.msra.gmra.mrb[72].mxu0 %vm448_vm2, %v3014_v52 }
0x17c7   : > { %3981 = vmatprep.mubr.msk.bf16.mxu0 %vm4396_vm0, %v4395_v1 }
0x17cd   : > { %v2960_v19 = vpop.xlane.xlu0 %2959 }
0x17ce   : > { %v2972_v21 = vmul.f32 0.03125, %v2960_v19 }
0x17d0   : > { %v2978_v46 = vadd.f32 1e-06, %v2972_v21 }
0x17d1   : > { %v2963_v47 = vpop.xlane.xlu1 %2962  ;;  %v2930_v58 = vpop.xlane.xlu0 %2929 }
0x17d2   : > { %4295 = vrsqrt.f32 %v2978_v46  ;;  %v2973_v59 = vmul.f32 0.03125, %v2963_v47  ;;  %v2938_v60 = vmul.f32 0.03125, %v2930_v58 }
0x17d4   : > { %v2979_v6 = vadd.f32 1e-06, %v2973_v59  ;;  %v2944_v25 = vsub.f32 %v2914_v17, %v2938_v60  ;;  %v4134_v17 = vld [vmem:[%s5506_s7 + $0x38] sm:$0xff]  }
0x17d5   : > { %v2933_v28 = vpop.xlane.xlu1 %2932 }
0x17d6   : > { %4297 = vrsqrt.f32 %v2979_v6  ;;  %v2939_v3 = vmul.f32 0.03125, %v2933_v28  ;;  %v2950_v8 = vmul.f32 %v2944_v25, %v2944_v25 }
0x17d8   : > { %v2945_v31 = vsub.f32 %v2915_v40, %v2939_v3  ;;  %v2964_v62 = vsel %vm448_vm2, %v2950_v8, 0.0 }
0x17d9   : > { %2965 = vadd.xlane.f32.xlu0 %v2964_v62 }
0x17da   : > { %v2951_v63 = vmul.f32 %v2945_v31, %v2945_v31 }
0x17dc   : > { %v4296_v56 = vpop.eup %4295  ;;  %v2967_v10 = vsel %vm448_vm2, %v2951_v63, 0.0 }
0x17dd   : > { %v2990_v24 = vmul.f32 %v4296_v56, %v5318_v4  ;;  %2968 = vadd.xlane.f32.xlu1 %v2967_v10  ;;  %v4131_v4 = vld [vmem:[%s5506_s7 + $0x20] sm:$0xff]  }
0x17de   : > { %3990 = vmatpush3.bf16.msra.mxu1 %v4131_v4 }
0x17df   : > { %v3000_v2 = vmul.f32 %v5339_v61, %v2990_v24  ;;  %3991 = vmatprep.subr.bf16.mxu1 %v4395_v1 }
0x17e0   : > { %v4298_v45 = vpop.eup %4297 }
0x17e1   : > { %v2991_v33 = vmul.f32 %v4298_v45, %v2943_v7  ;;  %v3010_v22 = vadd.f32 %v5350_v42, %v3000_v2 }
0x17e2   : > { %3992 = vmatpush3.bf16.msra.mxu1 %v4132_v37 }
0x17e3   : > { %v3001_v51 = vmul.f32 %v5339_v61, %v2991_v33  ;;  %3993 = vmatprep.subr.bf16.mxu1 %v4395_v1 }
0x17e5   : > { %v3011_v0 = vadd.f32 %v5350_v42, %v3001_v51 }
0x17e6   : > { %3994 = vmatpush3.bf16.msra.mxu1 %v4133_v13 }
0x17e7   : > { %v3015_v57 = vpack.c.bf16 %v3011_v0, %v3010_v22  ;;  %3995 = vmatprep.subr.bf16.mxu1 %v4395_v1 }
0x17e9   : > { %3982 = vmatmul.mubr.msk.bf16.gmra.mrb[76].mxu0 %vm448_vm2, %v3015_v57 }
0x17ea   : > { %3985 = vmatprep.mubr.msk.bf16.mxu0 %vm4396_vm0, %v4395_v1  ;;  %3996 = vmatpush3.bf16.msra.mxu1 %v4134_v17 }
0x1866   : > { %v2966_v7 = vpop.xlane.xlu0 %2965 }
0x1867   : > { %v2974_v15 = vmul.f32 0.03125, %v2966_v7 }
0x1869   : > { %v2980_v27 = vadd.f32 1e-06, %v2974_v15 }
0x186a   : > { %v2969_v14 = vpop.xlane.xlu1 %2968 }
0x186b   : > { %4299 = vrsqrt.f32 %v2980_v27  ;;  %v2975_v40 = vmul.f32 0.03125, %v2969_v14 }
0x186d   : > { %v2981_v5 = vadd.f32 1e-06, %v2975_v40 }
0x186f   : > { %4301 = vrsqrt.f32 %v2981_v5 }
0x1875   : > { %v4300_v55 = vpop.eup %4299 }
0x1876   : > { %v2992_v11 = vmul.f32 %v4300_v55, %v2944_v25 }
0x1878   : > { %v3002_v20 = vmul.f32 %v5339_v61, %v2992_v11 }
0x1879   : > { %v4302_v30 = vpop.eup %4301 }
0x187a   : > { %v2993_v44 = vmul.f32 %v4302_v30, %v2945_v31  ;;  %v3012_v50 = vadd.f32 %v5350_v42, %v3002_v20 }
0x187c   : > { %v3003_v9 = vmul.f32 %v5339_v61, %v2993_v44 }
0x187e   : > { %v3013_v39 = vadd.f32 %v5350_v42, %v3003_v9 }
0x1880   : > { %v3016_v35 = vpack.c.bf16 %v3013_v39, %v3012_v50 }
0x1882   : > { %3986 = vmatmul.mubr.msk.bf16.gmra.mrb[80].mxu0 %vm448_vm2, %v3016_v35 }
0x1899   : > { %v3081_v38 = vpop.f32.mrb[72].mxu0 }
0x189a   : > { %v5394_v41 = vadd.f32 %v3081_v38, %v5391_v12  ;;  %v3979_v32 = vpop.f32.mrb[73].mxu0 }
0x189b   : > { %v3084_v16 = vpop.f32.mrb[74].mxu0 }
0x189c   : > { %v3110_v61 = vmul.f32 0.70710677, %v5394_v41  ;;  %v5398_v48 = vadd.f32 %v3084_v16, %v5391_v12  ;;  %v3980_v42 = vpop.f32.mrb[75].mxu0 }
0x189e   : > { %v3128_v43 = vand.u32 2147483647, %v3110_v61  ;;  %v3111_v52 = vmul.f32 0.70710677, %v5398_v48  ;;  %vm3116_vm14 = vcmp.ge.f32.partialorder %v3110_v61, 0.0 }
0x189f   : > { %v3122_v38 = vsel %vm3116_vm14, 1.0, %v4404_v29 }
0x18a0   : > { %v3134_v19 = vmul.f32 0.3275911, %v3128_v43  ;;  %v3129_v21 = vand.u32 2147483647, %v3111_v52  ;;  %v3212_v58 = vsub.f32 0.0, %v3128_v43  ;;  %vm3117_vm15 = vcmp.ge.f32.partialorder %v3111_v52, 0.0 }
0x18a2   : > { %v3140_v46 = vadd.f32 1.0, %v3134_v19  ;;  %v3135_v26 = vmul.f32 0.3275911, %v3129_v21  ;;  %v3213_v59 = vsub.f32 0.0, %v3129_v21  ;;  %v3218_v6 = vmul.f32 %v3212_v58, %v3128_v43 }
0x18a3   : > { %v3104_v58 = vmul.f32 0.5, %v5394_v41 }
0x18a4   : > { %4303 = vrcp.f32 %v3140_v46  ;;  %v3141_v47 = vadd.f32 1.0, %v3135_v26  ;;  %v3219_v8 = vmul.f32 %v3213_v59, %v3129_v21  ;;  %v3224_v31 = vmul.f32 1.442695, %v3218_v6 }
0x18a5   : > { %v3123_v21 = vsel %vm3117_vm15, 1.0, %v4404_v29  ;;  %v3105_v59 = vmul.f32 0.5, %v5398_v48 }
0x18a6   : > { %4305 = vrcp.f32 %v3141_v47  ;;  %v3226_v24 = vmul.f32 1.442695, %v3219_v8 }
0x18a7   : > { %4307 = vpow2.f32 %v3224_v31 }
0x18a8   : > { %4309 = vpow2.f32 %v3226_v24 }
0x18ae   : > { %v4304_v60 = vpop.eup %4303 }
0x18af   : > { %v3158_v25 = vmul.f32 1.0614054, %v4304_v60 }
0x18b0   : > { %v4306_v28 = vpop.eup %4305 }
0x18b1   : > { %v3164_v3 = vadd.f32 -1.4531521, %v3158_v25  ;;  %v3159_v62 = vmul.f32 1.0614054, %v4306_v28  ;;  %v4308_v55 = vpop.eup %4307 }
0x18b2   : > { %v4310_v50 = vpop.eup %4309 }
0x18b3   : > { %v3170_v63 = vmul.f32 %v4304_v60, %v3164_v3  ;;  %v3165_v56 = vadd.f32 -1.4531521, %v3159_v62 }
0x18b5   : > { %v3176_v10 = vadd.f32 1.4214138, %v3170_v63  ;;  %v3171_v45 = vmul.f32 %v4306_v28, %v3165_v56 }
0x18b7   : > { %v3182_v33 = vmul.f32 %v4304_v60, %v3176_v10  ;;  %v3177_v2 = vadd.f32 1.4214138, %v3171_v45 }
0x18b9   : > { %v3188_v51 = vadd.f32 -0.28449672, %v3182_v33  ;;  %v3183_v22 = vmul.f32 %v4306_v28, %v3177_v2 }
0x18bb   : > { %v3194_v0 = vmul.f32 %v4304_v60, %v3188_v51  ;;  %v3189_v57 = vadd.f32 -0.28449672, %v3183_v22 }
0x18bc   : > { %v3089_v4 = vpop.f32.mrb[76].mxu0 }
0x18bd   : > { %v3200_v37 = vadd.f32 0.2548296, %v3194_v0  ;;  %v5402_v13 = vadd.f32 %v3089_v4, %v5391_v12  ;;  %v3983_v17 = vpop.f32.mrb[77].mxu0  ;;  %v3195_v7 = vmul.f32 %v4306_v28, %v3189_v57 }
0x18be   : > { %v3092_v15 = vpop.f32.mrb[78].mxu0 }
0x18bf   : > { %v3206_v27 = vmul.f32 %v4304_v60, %v3200_v37  ;;  %v5405_v14 = vmul.f32 0.70710677, %v5402_v13  ;;  %v5408_v40 = vadd.f32 %v3092_v15, %v5391_v12  ;;  %v3984_v5 = vpop.f32.mrb[79].mxu0  ;;  %v3201_v11 = vadd.f32 0.2548296, %v3195_v7 }
0x18c1   : > { %v3236_v30 = vmul.f32 %v4308_v55, %v3206_v27  ;;  %v3130_v44 = vand.u32 2147483647, %v5405_v14  ;;  %v3207_v20 = vmul.f32 %v4306_v28, %v3201_v11  ;;  %v5412_v9 = vmul.f32 0.70710677, %v5408_v40 }
0x18c2   : > { %vm3118_vm1 = vcmp.ge.f32.partialorder %v5405_v14, 0.0 }
0x18c3   : > { %v3242_v39 = vsub.f32 1.0, %v3236_v30  ;;  %v3136_v35 = vmul.f32 0.3275911, %v3130_v44  ;;  %v3237_v32 = vmul.f32 %v4310_v50, %v3207_v20  ;;  %v3131_v16 = vand.u32 2147483647, %v5412_v9 }
0x18c4   : > { %v3214_v25 = vsub.f32 0.0, %v3130_v44  ;;  %v3124_v50 = vsel %vm3118_vm1, 1.0, %v4404_v29  ;;  %vm3119_vm2 = vcmp.ge.f32.partialorder %v5412_v9, 0.0 }
0x18c5   : > { %v3248_v42 = vmul.f32 %v3242_v39, %v3122_v38  ;;  %v3142_v43 = vadd.f32 1.0, %v3136_v35  ;;  %v3243_v19 = vsub.f32 1.0, %v3237_v32  ;;  %v3137_v61 = vmul.f32 0.3275911, %v3131_v16 }
0x18c6   : > { %v3215_v3 = vsub.f32 0.0, %v3131_v16  ;;  %v3220_v31 = vmul.f32 %v3214_v25, %v3130_v44  ;;  %v3125_v32 = vsel %vm3119_vm2, 1.0, %v4404_v29 }
0x18c7   : > { %4311 = vrcp.f32 %v3142_v43  ;;  %v3254_v46 = vadd.f32 1.0, %v3248_v42  ;;  %v3249_v26 = vmul.f32 %v3243_v19, %v3123_v21  ;;  %v3143_v47 = vadd.f32 1.0, %v3137_v61 }
0x18c8   : > { %v3221_v41 = vmul.f32 %v3215_v3, %v3131_v16  ;;  %v3228_v10 = vmul.f32 1.442695, %v3220_v31  ;;  %v3106_v43 = vmul.f32 0.5, %v5402_v13  ;;  %v3107_v19 = vmul.f32 0.5, %v5408_v40 }
0x18c9   : > { %v3255_v60 = vadd.f32 1.0, %v3249_v26  ;;  %4313 = vrcp.f32 %v3143_v47  ;;  %v3260_v52 = vmul.f32 %v3254_v46, %v3104_v58 }
0x18ca   : > { %v3230_v2 = vmul.f32 1.442695, %v3221_v41  ;;  %4315 = vpow2.f32 %v3228_v10 }
0x18cb   : > { %v3261_v6 = vmul.f32 %v3255_v60, %v3105_v59 }
0x18cc   : > { %4317 = vpow2.f32 %v3230_v2 }
0x18cd   : > { %v3266_v28 = vpack.c.bf16 %v3261_v6, %v3260_v52 }
0x18cf   : > { %3998 = vmatmul.mubr.msk.bf16.vlgmr.msra.gmra.mrb[76].mxu1 %vm1833_vm10, %v3266_v28 }
0x18d0   : > { %4001 = vmatprep.mubr.msk.bf16.mxu1 %vm4396_vm0, %v4395_v1 }
0x18d1   : > { %v4312_v8 = vpop.eup %4311 }
0x18d2   : > { %v3160_v62 = vmul.f32 1.0614054, %v4312_v8 }
0x18d3   : > { %v4314_v63 = vpop.eup %4313 }
0x18d4   : > { %v3166_v56 = vadd.f32 -1.4531521, %v3160_v62  ;;  %v3161_v48 = vmul.f32 1.0614054, %v4314_v63  ;;  %v4316_v5 = vpop.eup %4315 }
0x18d6   : > { %v3172_v24 = vmul.f32 %v4312_v8, %v3166_v56  ;;  %v3167_v45 = vadd.f32 -1.4531521, %v3161_v48  ;;  %v4318_v44 = vpop.eup %4317 }
0x18d8   : > { %v3178_v33 = vadd.f32 1.4214138, %v3172_v24  ;;  %v3173_v51 = vmul.f32 %v4314_v63, %v3167_v45 }
0x18da   : > { %v3184_v22 = vmul.f32 %v4312_v8, %v3178_v33  ;;  %v3179_v0 = vadd.f32 1.4214138, %v3173_v51 }
0x18dc   : > { %v3190_v57 = vadd.f32 -0.28449672, %v3184_v22  ;;  %v3185_v4 = vmul.f32 %v4314_v63, %v3179_v0 }
0x18de   : > { %v3196_v37 = vmul.f32 %v4312_v8, %v3190_v57  ;;  %v3191_v17 = vadd.f32 -0.28449672, %v3185_v4 }
0x18e0   : > { %v3202_v7 = vadd.f32 0.2548296, %v3196_v37  ;;  %v3197_v15 = vmul.f32 %v4314_v63, %v3191_v17 }
0x18e2   : > { %v3208_v27 = vmul.f32 %v4312_v8, %v3202_v7  ;;  %v3203_v55 = vadd.f32 0.2548296, %v3197_v15 }
0x18e4   : > { %v3238_v11 = vmul.f32 %v4316_v5, %v3208_v27  ;;  %v3209_v30 = vmul.f32 %v4314_v63, %v3203_v55 }
0x18e6   : > { %v3244_v20 = vsub.f32 1.0, %v3238_v11  ;;  %v3239_v39 = vmul.f32 %v4318_v44, %v3209_v30 }
0x18e8   : > { %v3250_v35 = vmul.f32 %v3244_v20, %v3124_v50  ;;  %v3245_v38 = vsub.f32 1.0, %v3239_v39 }
0x18ea   : > { %v3256_v16 = vadd.f32 1.0, %v3250_v35  ;;  %v3251_v42 = vmul.f32 %v3245_v38, %v3125_v32 }
0x18ec   : > { %v3257_v14 = vadd.f32 1.0, %v3251_v42  ;;  %v3262_v61 = vmul.f32 %v3256_v16, %v3106_v43 }
0x18ee   : > { %v3263_v21 = vmul.f32 %v3257_v14, %v3107_v19 }
0x18f0   : > { %v3267_v46 = vpack.c.bf16 %v3263_v21, %v3262_v61 }
0x18f2   : > { %4002 = vmatmul.mubr.msk.bf16.gmra.mrb[80].mxu1 %vm1833_vm10, %v3267_v46 }
0x18f3   : > { %4005 = vmatprep.mubr.msk.bf16.mxu1 %vm4396_vm0, %v4395_v1 }
0x1955   : > { %v3097_v9 = vpop.f32.mrb[80].mxu0 }
0x1956   : > { %v3098_v26 = vadd.f32 %v3097_v9, %v5391_v12  ;;  %v3987_v47 = vpop.f32.mrb[81].mxu0 }
0x1957   : > { %v3100_v58 = vpop.f32.mrb[82].mxu0 }
0x1958   : > { %v3114_v59 = vmul.f32 0.70710677, %v3098_v26  ;;  %v3101_v60 = vadd.f32 %v3100_v58, %v5391_v12  ;;  %v3988_v13 = vpop.f32.mrb[83].mxu0  ;;  %v3108_v19 = vmul.f32 0.5, %v3098_v26 }
0x195a   : > { %v3132_v52 = vand.u32 2147483647, %v3114_v59  ;;  %v3115_v40 = vmul.f32 0.70710677, %v3101_v60  ;;  %vm3120_vm0 = vcmp.ge.f32.partialorder %v3114_v59, 0.0  ;;  %v3109_v14 = vmul.f32 0.5, %v3101_v60 }
0x195b   : > { %v3126_v39 = vsel %vm3120_vm0, 1.0, %v4404_v29 }
0x195c   : > { %v3138_v6 = vmul.f32 0.3275911, %v3132_v52  ;;  %v3133_v25 = vand.u32 2147483647, %v3115_v40  ;;  %v3216_v31 = vsub.f32 0.0, %v3132_v52  ;;  %vm3121_vm3 = vcmp.ge.f32.partialorder %v3115_v40, 0.0 }
0x195d   : > { %v3127_v16 = vsel %vm3121_vm3, 1.0, %v4404_v29  ;;  %v3369_v29 = vrot.slane %v5345_v54, %v1908_v49 }
0x195e   : > { %v3144_v28 = vadd.f32 1.0, %v3138_v6  ;;  %v3139_v3 = vmul.f32 0.3275911, %v3133_v25  ;;  %v3217_v1 = vsub.f32 0.0, %v3133_v25  ;;  %v3222_v63 = vmul.f32 %v3216_v31, %v3132_v52 }
0x1960   : > { %4319 = vrcp.f32 %v3144_v28  ;;  %v3145_v8 = vadd.f32 1.0, %v3139_v3  ;;  %v3223_v48 = vmul.f32 %v3217_v1, %v3133_v25  ;;  %v3232_v24 = vmul.f32 1.442695, %v3222_v63 }
0x1962   : > { %4321 = vrcp.f32 %v3145_v8  ;;  %v3234_v51 = vmul.f32 1.442695, %v3223_v48 }
0x1963   : > { %4323 = vpow2.f32 %v3232_v24 }
0x1964   : > { %4325 = vpow2.f32 %v3234_v51 }
0x196a   : > { %v4320_v62 = vpop.eup %4319 }
0x196b   : > { %v3162_v56 = vmul.f32 1.0614054, %v4320_v62 }
0x196c   : > { %v4322_v41 = vpop.eup %4321 }
0x196d   : > { %v3168_v10 = vadd.f32 -1.4531521, %v3162_v56  ;;  %v3163_v12 = vmul.f32 1.0614054, %v4322_v41  ;;  %v4324_v55 = vpop.eup %4323 }
0x196e   : > { %v4326_v20 = vpop.eup %4325 }
0x196f   : > { %v3174_v45 = vmul.f32 %v4320_v62, %v3168_v10  ;;  %v3169_v33 = vadd.f32 -1.4531521, %v3163_v12 }
0x1971   : > { %v3180_v2 = vadd.f32 1.4214138, %v3174_v45  ;;  %v3175_v22 = vmul.f32 %v4322_v41, %v3169_v33 }
0x1973   : > { %v3186_v0 = vmul.f32 %v4320_v62, %v3180_v2  ;;  %v3181_v57 = vadd.f32 1.4214138, %v3175_v22  ;;  %v3372_v22 = vld [vmem:[%s5502_s3] sm:$0x3] }
0x1975   : > { %v3192_v4 = vadd.f32 -0.28449672, %v3186_v0  ;;  %v3187_v37 = vmul.f32 %v4322_v41, %v3181_v57 }
0x1977   : > { %v3198_v17 = vmul.f32 %v4320_v62, %v3192_v4  ;;  %v3193_v7 = vadd.f32 -0.28449672, %v3187_v37  ;;  %v3412_v37 = vrot.slane %v3372_v22, %v4605_v23 }
0x1979   : > { %v3204_v15 = vadd.f32 0.2548296, %v3198_v17  ;;  %v3199_v27 = vmul.f32 %v4322_v41, %v3193_v7 }
0x197b   : > { %v3210_v5 = vmul.f32 %v4320_v62, %v3204_v15  ;;  %v3205_v11 = vadd.f32 0.2548296, %v3199_v27  ;;  %v3418_v27 = vrot.slane %v3372_v22, %v4615_v34 }
0x197d   : > { %v3240_v30 = vmul.f32 %v4324_v55, %v3210_v5  ;;  %v3211_v44 = vmul.f32 %v4322_v41, %v3205_v11 }
0x197f   : > { %v3246_v50 = vsub.f32 1.0, %v3240_v30  ;;  %v3241_v35 = vmul.f32 %v4326_v20, %v3211_v44 }
0x1981   : > { %v3252_v38 = vmul.f32 %v3246_v50, %v3126_v39  ;;  %v3247_v32 = vsub.f32 1.0, %v3241_v35 }
0x1983   : > { %v3258_v42 = vadd.f32 1.0, %v3252_v38  ;;  %v3253_v43 = vmul.f32 %v3247_v32, %v3127_v16 }
0x1985   : > { %v3259_v61 = vadd.f32 1.0, %v3253_v43  ;;  %v3264_v21 = vmul.f32 %v3258_v42, %v3108_v19 }
0x1987   : > { %v3265_v46 = vmul.f32 %v3259_v61, %v3109_v14 }
0x1989   : > { %v3268_v9 = vpack.c.bf16 %v3265_v46, %v3264_v21 }
0x198b   : > { %4006 = vmatmul.mubr.msk.bf16.gmra.mrb[84].mxu1 %vm1833_vm10, %v3268_v9 }
0x19a2   : > { %v3345_v47 = vpop.f32.mrb[76].mxu1 }
0x19a3   : > { %v3999_v58 = vpop.f32.mrb[77].mxu1  ;;  %v3364_v25 = vadd.f32 %v3345_v47, %v5302_v36 }
0x19a4   : > { %v3348_v59 = vpop.f32.mrb[78].mxu1 }
0x19a5   : > { %v4000_v13 = vpop.f32.mrb[79].mxu1  ;;  %v3370_v3 = vadd.f32 %v3369_v29, %v3364_v25 }
0x19c5   : > { %v3352_v52 = vpop.f32.mrb[80].mxu1 }
0x19c6   : > { %v4003_v40 = vpop.f32.mrb[81].mxu1 }
0x19c7   : > { %v3354_v6 = vpop.f32.mrb[82].mxu1 }
0x19c8   : > { %v3365_v26 = vadd.f32 %v3354_v6, %v5310_v53  ;;  %v4004_v60 = vpop.f32.mrb[83].mxu1 }
0x19ca   : > { %v3371_v28 = vadd.f32 %v3369_v29, %v3365_v26 }
0x19cc   : > { %v3375_v8 = vrot.slane %v3371_v28, 7 }
0x19ce   : > { %v3377_v31 = vsel %vm3376_vm4, %v3375_v8, %v3370_v3 }
0x19cf   : > { %v3380_v1 = vsel %vm3379_vm5, %v3377_v31, 0.0 }
0x19d0   : > { %3381 = vadd.xlane.f32.xlu0 %v3380_v1 }
0x1a5d   : > { %v3382_v62 = vpop.xlane.xlu0 %3381 }
0x1a5e   : > { %v3383_v63 = vmul.f32 0.03125, %v3382_v62  ;;  %v3359_v36 = vpop.f32.mrb[84].mxu1 }
0x1a5f   : > { %v4007_v56 = vpop.f32.mrb[85].mxu1 }
0x1a60   : > { %v3385_v18 = vrot.slane %v3383_v63, 1  ;;  %v3361_v49 = vpop.f32.mrb[86].mxu1  ;;  %v3388_v53 = vsub.f32 %v3370_v3, %v3383_v63 }
0x1a61   : > { %v4008_v54 = vpop.f32.mrb[87].mxu1 }
0x1a62   : > { %v3389_v41 = vsub.f32 %v3371_v28, %v3385_v18  ;;  %v3390_v48 = vmul.f32 %v3388_v53, %v3388_v53 }
0x1a64   : > { %v3391_v10 = vmul.f32 %v3389_v41, %v3389_v41 }
0x1a66   : > { %v3394_v24 = vrot.slane %v3391_v10, 7 }
0x1a68   : > { %v3395_v12 = vsel %vm3376_vm4, %v3394_v24, %v3390_v48 }
0x1a69   : > { %v3397_v45 = vsel %vm3379_vm5, %v3395_v12, 0.0 }
0x1a6a   : > { %3398 = vadd.xlane.f32.xlu1 %v3397_v45 }
0x1af7   : > { %v3399_v33 = vpop.xlane.xlu1 %3398 }
0x1af8   : > { %v3400_v2 = vmul.f32 0.03125, %v3399_v33 }
0x1afa   : > { %v3401_v51 = vadd.f32 1e-06, %v3400_v2 }
0x1afc   : > { %4327 = vrsqrt.f32 %v3401_v51 }
0x1b06   : > { %v4328_v0 = vpop.eup %4327 }
0x1b07   : > { %v3404_v57 = vrot.slane %v4328_v0, 1  ;;  %v3407_v4 = vmul.f32 %v4328_v0, %v3388_v53 }
0x1b09   : > { %v3408_v17 = vmul.f32 %v3404_v57, %v3389_v41  ;;  %v3413_v7 = vmul.f32 %v3412_v37, %v3407_v4 }
0x1b0b   : > { %v3414_v15 = vmul.f32 %v3412_v37, %v3408_v17  ;;  %v3419_v55 = vadd.f32 %v3418_v27, %v3413_v7 }
0x1b0d   : > { %v3420_v5 = vadd.f32 %v3418_v27, %v3414_v15 }
0x1b0f   : > { %v3423_v11 = vrot.slane %v3420_v5, 7 }
0x1b11   : > { %v3424_v23 = vsel %vm3376_vm4, %v3423_v11, %v3419_v55 }
0x1b12   : > { %3426 = vst.msk [vmem:[%s326_s17] sm:$0x3] %vm3379_vm5, %v3424_v23 }
0x1b13   : > { %4344 = shalt.err (!%p4341_p3)
}
0x1b14   : > { %s4345_s16 = scalar_lea.hbm %s5455_s24, 32  ;;  %s4349_s17 = scalar_lea.hbm %s5508_s9, 64 }
0x1b15   : > { %p4346_p4 = scmp.ne.s32.totalorder %s5455_s24, %s4345_s16  ;;  %p4350_p9 = scmp.lt.u32.totalorder %s5455_s24, %s5508_s9 }
0x1b16   : > { %p4351_p10 = scmp.lt.u32.totalorder %s4349_s17, %s4345_s16  ;;  %p4353_p12 = scmp.lt.u32.totalorder %s4345_s16, %s5455_s24 }
0x1b17   : > { %p4347_p7 = pnand %p4346_p4, %p4494_p5 }
0x1b18   : > { %p4352_p11 = por %p4351_p10, %p4350_p9 }
0x1b19   : > { %p4348_p8 = pneg %p4347_p7 }
0x1b1a   : > { %p4354_p13 = por %p4353_p12, %p4352_p11 }
0x1b1c   : > { %p4355_p0 = pnand %p4354_p13, %p4348_p8 }
0x1b1e   : > { %4358 = shalt.err (!%p4355_p0)
}
0x1b1f   : > { %4033 = dma.vmem_to_hbm [thread:$0]  (%p4494_p5), %s5457_s21, 32, %s5455_s24, %s3428_s14  }
0x1b20 PF: > { %p4039_p1 = scmp.ge.s32.totalorder %s4393_s12, 2  ;;  %s3453_s13 = sand.u32 1, %s4381_s30  }
0x1b21   : > { %s3454_s29 = scalar_lea.sflag [#allocation3], %s3453_s13 }
0x1b22   : > { %p4036_p2 = pnand %p4039_p1, %p4498_p6 }
0x1b24   : > { %4376 = dma.done.wait (!%p4036_p2), %s3454_s29, 32  }
0x1b25   : > { %4378 = vsyncadd (!%p4036_p2), %s3454_s29, 4294967264  ;;  %p19_p3 = scmp.ge.s32.totalorder %s4481_s15, 4   ;;  %s5514_s30 = smov %s4385_s10 }
0x1b26   : > { %s5515_s10 = smov %s4389_s11  ;;  %s5516_s11 = smov %s4492_s18 }
0x1b27   : > { %s5517_s12 = smov %s4481_s15  ;;  %21 = sbr.rel (!%p19_p3) target bundleno = 3 (0x3), region = 96 }
0x1b2e   :  { %3459 = vsyncpa [#allocation3], 1 }
0x1b2f   :  { %3461 = vsyncpa [#allocation3 + $0x1], 1 }

</bundles_post_ra>
